<compile_context>
chip_gen: v6e
topology: v6e:2x2x1
jax: 0.10.0
libtpu: 0.0.40
codegen_flags: <defaults>
</compile_context>

<pallas_src>
import jax
import jax.numpy as jnp
from jax import lax
from jax.experimental import pallas as pl
from jax.experimental.pallas import tpu as pltpu


def _round_up(x, m):
    return ((x + m - 1) // m) * m


def _choose_tile(B, block_b):
    """Batch tile: multiple of 16 (bf16 sublane packing), 128-aligned when big,
    capped at block_b, and split into >=2 grid steps when possible (v7x 2xTC)."""
    if B <= 32:
        return _round_up(B, 16)
    if B <= 2 * block_b:
        align = 128 if B >= 256 else 16
        return min(_round_up(B, 16), _round_up(pl.cdiv(B, 2), align))
    return block_b


def mlp_kernel(x_ref,
               w1_ref, b1_ref,
               w2_ref, b2_ref,
               w3_ref, b3_ref,
               w4_ref, b4_ref,
               w5_ref, b5_ref,
               o_ref):
    # fc1 + relu (bf16 MXU operands, f32 accumulation, f32 bias+ReLU epilogue —
    # the f32 epilogue is required on v5e which has no bf16 VPU path).
    h = jnp.dot(x_ref[...], w1_ref[...], preferred_element_type=jnp.float32)
    h = jnp.maximum(h + b1_ref[...], 0.0)
    # fc2..fc4 + relu (dropout is identity at inference).
    for w_ref, b_ref in ((w2_ref, b2_ref), (w3_ref, b3_ref), (w4_ref, b4_ref)):
        h = jnp.dot(h.astype(jnp.bfloat16), w_ref[...],
                    preferred_element_type=jnp.float32)
        h = jnp.maximum(h + b_ref[...], 0.0)
    # fc5 (128 -> 1) on the MXU as a (1, TB) row: w5_row (1,128) contracted with
    # h (TB,128) along their last dims.  Lane-dense output, no XLU reduce.
    out_row = lax.dot_general(
        w5_ref[...], h,
        dimension_numbers=(((1,), (1,)), ((), ())),
        preferred_element_type=jnp.float32)          # (1, TB)
    o_ref[...] = (out_row + b5_ref[...]).astype(o_ref.dtype)


def simple_mlp_forward(x, params, *, block_b=1024):
    """x: (B, input_size) f32. params: list of 5 (W, b) with W stored (in, out).

    block_b=1024 is safe on all generations; on v5e/v6e (128 MiB VMEM) it may be
    raised to 2048 together with vmem_limit_bytes=64 MiB for large batches.
    """
    B, in_f = x.shape
    (w1, b1), (w2, b2), (w3, b3), (w4, b4), (w5, b5) = params

    tb = _choose_tile(B, block_b)
    b_pad = _round_up(B, tb)
    n_tiles = b_pad // tb

    # Pad + cast in one expression (single fusion; no separate full HBM pass).
    if b_pad != B:
        x_bf = jnp.pad(x, ((0, b_pad - B), (0, 0))).astype(jnp.bfloat16)
    else:
        x_bf = x.astype(jnp.bfloat16)

    # bf16 operands for the four wide matmuls; fc5 row + all biases stay f32.
    w1b, w2b, w3b, w4b = (w.astype(jnp.bfloat16) for w in (w1, w2, w3, w4))
    w5_row = jnp.reshape(w5, (1, w5.shape[0])).astype(jnp.float32)   # (1, 128)

    def call_kernel(single_buffer_weights):
        def resident(shape):
            # Full-shape block, constant index_map -> DMA'd once, VMEM-resident.
            if single_buffer_weights:
                return pl.BlockSpec(shape, lambda i: (0, 0),
                                    pipeline_mode=pl.Buffered(1))
            return pl.BlockSpec(shape, lambda i: (0, 0))

        return pl.pallas_call(
            mlp_kernel,
            out_shape=jax.ShapeDtypeStruct((n_tiles, tb), jnp.float32),
            grid_spec=pltpu.PrefetchScalarGridSpec(
                num_scalar_prefetch=0,
                grid=(n_tiles,),
                in_specs=[
                    pl.BlockSpec((tb, in_f), lambda i: (i, 0)),
                    resident(w1b.shape), resident(b1.shape),
                    resident(w2b.shape), resident(b2.shape),
                    resident(w3b.shape), resident(b3.shape),
                    resident(w4b.shape), resident(b4.shape),
                    resident(w5_row.shape), resident(b5.shape),
                ],
                # Lane-dense (1, TB) output block -> unmasked full-lane stores.
                out_specs=pl.BlockSpec((1, tb), lambda i: (i, 0)),
            ),
            compiler_params=pltpu.CompilerParams(
                dimension_semantics=("parallel",),
                vmem_limit_bytes=48 << 20,   # safe on v7x (64 MiB physical)
            ),
        )(x_bf, w1b, b1, w2b, b2, w3b, b3, w4b, b4, w5_row, b5)

    try:
        out = call_kernel(True)
    except Exception:
        # Fallback for jax versions without BlockSpec(pipeline_mode=...):
        # default double-buffered resident weights (slightly more VMEM).
        out = call_kernel(False)

    # (n_tiles, TB) slab -> (B, 1); row-major flatten matches batch order.
    return out.reshape(b_pad, 1)[:B]


def init_params(key, input_size):
    """Deterministic init of the 5 Linear layers; weights stored as (in, out)."""
    dims = [input_size, 1024, 512, 256, 128, 1]
    params = []
    for i in range(5):
        key, kw, kb = jax.random.split(key, 3)
        bound = 1.0 / jnp.sqrt(dims[i])  # match nn.Linear default init range
        w = jax.random.uniform(kw, (dims[i], dims[i + 1]),
                               minval=-bound, maxval=bound, dtype=jnp.float32)
        b = jax.random.uniform(kb, (1, dims[i + 1]),
                               minval=-bound, maxval=bound, dtype=jnp.float32)
        params.append((w, b))
    return params


def reference_forward_bf16(x, params):
    """Mirrors the kernel's dtype path (bf16 matmul operands, f32 accumulation,
    f32 fc5)."""
    (w1, b1), (w2, b2), (w3, b3), (w4, b4), (w5, b5) = params
    h = jnp.dot(x.astype(jnp.bfloat16), w1.astype(jnp.bfloat16),
                preferred_element_type=jnp.float32)
    h = jnp.maximum(h + b1, 0.0)
    for w, b in ((w2, b2), (w3, b3), (w4, b4)):
        h = jnp.dot(h.astype(jnp.bfloat16), w.astype(jnp.bfloat16),
                    preferred_element_type=jnp.float32)
        h = jnp.maximum(h + b, 0.0)
    return h @ w5 + b5


def reference_forward_f32(x, params):
    h = x
    for i, (w, b) in enumerate(params):
        h = h @ w + b
        if i < 4:
            h = jnp.maximum(h, 0.0)
    return h


if __name__ == "__main__":
    key = jax.random.PRNGKey(0)
    input_size = 32
    batch = 8

    kx, kp = jax.random.split(key)
    x = jax.random.normal(kx, (batch, input_size), dtype=jnp.float32)
    params = init_params(kp, input_size)

    out = simple_mlp_forward(x, params)
    out = jax.block_until_ready(out)
    assert out.shape == (batch, 1), out.shape

    # Tight check against a reference that mirrors the kernel's bf16/f32 path.
    ref_bf16 = reference_forward_bf16(x, params)
    assert jnp.allclose(out, ref_bf16, atol=2e-3, rtol=2e-3), (out, ref_bf16)

    # Loose check against the pure-f32 PyTorch-equivalent forward.
    ref_f32 = reference_forward_f32(x, params)
    assert jnp.allclose(out, ref_f32, atol=1e-1, rtol=1e-1), (out, ref_f32)

    print("KERNEL_OK")
</pallas_src>

<mosaic_0001>
module attributes {stable_mosaic.version = 11 : i64} {
  func.func @mlp_kernel(%arg0: i32, %arg1: memref<16x32xbf16, #tpu.memory_space<vmem>>, %arg2: memref<32x1024xbf16, #tpu.memory_space<vmem>>, %arg3: memref<1x1024xf32, #tpu.memory_space<vmem>>, %arg4: memref<1024x512xbf16, #tpu.memory_space<vmem>>, %arg5: memref<1x512xf32, #tpu.memory_space<vmem>>, %arg6: memref<512x256xbf16, #tpu.memory_space<vmem>>, %arg7: memref<1x256xf32, #tpu.memory_space<vmem>>, %arg8: memref<256x128xbf16, #tpu.memory_space<vmem>>, %arg9: memref<1x128xf32, #tpu.memory_space<vmem>>, %arg10: memref<1x128xf32, #tpu.memory_space<vmem>>, %arg11: memref<1x1xf32, #tpu.memory_space<vmem>>, %arg12: memref<1x16xf32, #tpu.memory_space<vmem>>) attributes {dimension_semantics = [#tpu.dimension_semantics<parallel>], iteration_bounds = array<i64: 1>, scalar_prefetch = 0 : i64, scratch_operands = 0 : i64, tpu.core_type = #tpu.core_type<tc>, window_params = [{transform_indices = @transform_0, window_bounds = array<i64: 16, 32>}, {pipeline_mode = #tpu.pipeline_mode<synchronous>, transform_indices = @transform_1, window_bounds = array<i64: 32, 1024>}, {pipeline_mode = #tpu.pipeline_mode<synchronous>, transform_indices = @transform_2, window_bounds = array<i64: 1, 1024>}, {pipeline_mode = #tpu.pipeline_mode<synchronous>, transform_indices = @transform_3, window_bounds = array<i64: 1024, 512>}, {pipeline_mode = #tpu.pipeline_mode<synchronous>, transform_indices = @transform_4, window_bounds = array<i64: 1, 512>}, {pipeline_mode = #tpu.pipeline_mode<synchronous>, transform_indices = @transform_5, window_bounds = array<i64: 512, 256>}, {pipeline_mode = #tpu.pipeline_mode<synchronous>, transform_indices = @transform_6, window_bounds = array<i64: 1, 256>}, {pipeline_mode = #tpu.pipeline_mode<synchronous>, transform_indices = @transform_7, window_bounds = array<i64: 256, 128>}, {pipeline_mode = #tpu.pipeline_mode<synchronous>, transform_indices = @transform_8, window_bounds = array<i64: 1, 128>}, {pipeline_mode = #tpu.pipeline_mode<synchronous>, transform_indices = @transform_9, window_bounds = array<i64: 1, 128>}, {pipeline_mode = #tpu.pipeline_mode<synchronous>, transform_indices = @transform_10, window_bounds = array<i64: 1, 1>}, {transform_indices = @transform_11, window_bounds = array<i64: 1, 16>}]} {
    %c0 = arith.constant 0 : index
    %c0_0 = arith.constant 0 : index
    %0 = vector.load %arg1[%c0, %c0_0] : memref<16x32xbf16, #tpu.memory_space<vmem>>, vector<16x32xbf16>
    %c0_1 = arith.constant 0 : index
    %c0_2 = arith.constant 0 : index
    %1 = vector.load %arg2[%c0_1, %c0_2] : memref<32x1024xbf16, #tpu.memory_space<vmem>>, vector<32x1024xbf16>
    %cst = arith.constant dense<0.000000e+00> : vector<16x1024xf32>
    %2 = tpu.matmul %0, %1, %cst {dimension_numbers = #tpu.dot_dimension_numbers<[1], [0], [0], [1], [0, 0, 1, 1], [], []>} : vector<16x32xbf16>, vector<32x1024xbf16>, vector<16x1024xf32> -> vector<16x1024xf32>
    %c0_3 = arith.constant 0 : index
    %c0_4 = arith.constant 0 : index
    %3 = vector.load %arg3[%c0_3, %c0_4] : memref<1x1024xf32, #tpu.memory_space<vmem>>, vector<1x1024xf32>
    %4 = vector.broadcast %3 : vector<1x1024xf32> to vector<16x1024xf32>
    %5 = arith.addf %2, %4 : vector<16x1024xf32>
    %cst_5 = arith.constant 0.000000e+00 : f32
    %6 = vector.broadcast %cst_5 : f32 to vector<16x1024xf32>
    %7 = arith.maximumf %5, %6 : vector<16x1024xf32>
    %8 = arith.truncf %7 : vector<16x1024xf32> to vector<16x1024xbf16>
    %c0_6 = arith.constant 0 : index
    %c0_7 = arith.constant 0 : index
    %9 = vector.load %arg4[%c0_6, %c0_7] : memref<1024x512xbf16, #tpu.memory_space<vmem>>, vector<1024x512xbf16>
    %cst_8 = arith.constant dense<0.000000e+00> : vector<16x512xf32>
    %10 = tpu.matmul %8, %9, %cst_8 {dimension_numbers = #tpu.dot_dimension_numbers<[1], [0], [0], [1], [0, 0, 1, 1], [], []>} : vector<16x1024xbf16>, vector<1024x512xbf16>, vector<16x512xf32> -> vector<16x512xf32>
    %c0_9 = arith.constant 0 : index
    %c0_10 = arith.constant 0 : index
    %11 = vector.load %arg5[%c0_9, %c0_10] : memref<1x512xf32, #tpu.memory_space<vmem>>, vector<1x512xf32>
    %12 = vector.broadcast %11 : vector<1x512xf32> to vector<16x512xf32>
    %13 = arith.addf %10, %12 : vector<16x512xf32>
    %cst_11 = arith.constant 0.000000e+00 : f32
    %14 = vector.broadcast %cst_11 : f32 to vector<16x512xf32>
    %15 = arith.maximumf %13, %14 : vector<16x512xf32>
    %16 = arith.truncf %15 : vector<16x512xf32> to vector<16x512xbf16>
    %c0_12 = arith.constant 0 : index
    %c0_13 = arith.constant 0 : index
    %17 = vector.load %arg6[%c0_12, %c0_13] : memref<512x256xbf16, #tpu.memory_space<vmem>>, vector<512x256xbf16>
    %cst_14 = arith.constant dense<0.000000e+00> : vector<16x256xf32>
    %18 = tpu.matmul %16, %17, %cst_14 {dimension_numbers = #tpu.dot_dimension_numbers<[1], [0], [0], [1], [0, 0, 1, 1], [], []>} : vector<16x512xbf16>, vector<512x256xbf16>, vector<16x256xf32> -> vector<16x256xf32>
    %c0_15 = arith.constant 0 : index
    %c0_16 = arith.constant 0 : index
    %19 = vector.load %arg7[%c0_15, %c0_16] : memref<1x256xf32, #tpu.memory_space<vmem>>, vector<1x256xf32>
    %20 = vector.broadcast %19 : vector<1x256xf32> to vector<16x256xf32>
    %21 = arith.addf %18, %20 : vector<16x256xf32>
    %cst_17 = arith.constant 0.000000e+00 : f32
    %22 = vector.broadcast %cst_17 : f32 to vector<16x256xf32>
    %23 = arith.maximumf %21, %22 : vector<16x256xf32>
    %24 = arith.truncf %23 : vector<16x256xf32> to vector<16x256xbf16>
    %c0_18 = arith.constant 0 : index
    %c0_19 = arith.constant 0 : index
    %25 = vector.load %arg8[%c0_18, %c0_19] : memref<256x128xbf16, #tpu.memory_space<vmem>>, vector<256x128xbf16>
    %cst_20 = arith.constant dense<0.000000e+00> : vector<16x128xf32>
    %26 = tpu.matmul %24, %25, %cst_20 {dimension_numbers = #tpu.dot_dimension_numbers<[1], [0], [0], [1], [0, 0, 1, 1], [], []>} : vector<16x256xbf16>, vector<256x128xbf16>, vector<16x128xf32> -> vector<16x128xf32>
    %c0_21 = arith.constant 0 : index
    %c0_22 = arith.constant 0 : index
    %27 = vector.load %arg9[%c0_21, %c0_22] : memref<1x128xf32, #tpu.memory_space<vmem>>, vector<1x128xf32>
    %28 = vector.broadcast %27 : vector<1x128xf32> to vector<16x128xf32>
    %29 = arith.addf %26, %28 : vector<16x128xf32>
    %cst_23 = arith.constant 0.000000e+00 : f32
    %30 = vector.broadcast %cst_23 : f32 to vector<16x128xf32>
    %31 = arith.maximumf %29, %30 : vector<16x128xf32>
    %c0_24 = arith.constant 0 : index
    %c0_25 = arith.constant 0 : index
    %32 = vector.load %arg10[%c0_24, %c0_25] : memref<1x128xf32, #tpu.memory_space<vmem>>, vector<1x128xf32>
    %cst_26 = arith.constant dense<0.000000e+00> : vector<1x16xf32>
    %33 = tpu.matmul %32, %31, %cst_26 {dimension_numbers = #tpu.dot_dimension_numbers<[1], [1], [0], [0], [0, 0, 1, 0], [], []>} : vector<1x128xf32>, vector<16x128xf32>, vector<1x16xf32> -> vector<1x16xf32>
    %c0_27 = arith.constant 0 : index
    %c0_28 = arith.constant 0 : index
    %34 = vector.load %arg11[%c0_27, %c0_28] : memref<1x1xf32, #tpu.memory_space<vmem>>, vector<1x1xf32>
    %35 = vector.broadcast %34 : vector<1x1xf32> to vector<1x16xf32>
    %36 = arith.addf %33, %35 : vector<1x16xf32>
    %c0_29 = arith.constant 0 : index
    %c0_30 = arith.constant 0 : index
    %37 = vector.load %arg12[%c0_29, %c0_30] : memref<1x16xf32, #tpu.memory_space<vmem>>, vector<1x16xf32>
    tpu.vector_store %arg12[%c0_29, %c0_30], %36 {strides = array<i32>} : memref<1x16xf32, #tpu.memory_space<vmem>>, vector<1x16xf32>,
    return
  }
  func.func @transform_0(%arg0: i32) -> (i32, i32) {
    %c0_i32 = arith.constant 0 : i32
    %c0_i32_0 = arith.constant 0 : i32
    return %arg0, %c0_i32 : i32, i32
  }
  func.func @transform_1(%arg0: i32) -> (i32, i32) {
    %c0_i32 = arith.constant 0 : i32
    %c0_i32_0 = arith.constant 0 : i32
    %c0_i32_1 = arith.constant 0 : i32
    return %c0_i32, %c0_i32_0 : i32, i32
  }
  func.func @transform_2(%arg0: i32) -> (i32, i32) {
    %c0_i32 = arith.constant 0 : i32
    %c0_i32_0 = arith.constant 0 : i32
    %c0_i32_1 = arith.constant 0 : i32
    return %c0_i32, %c0_i32_0 : i32, i32
  }
  func.func @transform_3(%arg0: i32) -> (i32, i32) {
    %c0_i32 = arith.constant 0 : i32
    %c0_i32_0 = arith.constant 0 : i32
    %c0_i32_1 = arith.constant 0 : i32
    return %c0_i32, %c0_i32_0 : i32, i32
  }
  func.func @transform_4(%arg0: i32) -> (i32, i32) {
    %c0_i32 = arith.constant 0 : i32
    %c0_i32_0 = arith.constant 0 : i32
    %c0_i32_1 = arith.constant 0 : i32
    return %c0_i32, %c0_i32_0 : i32, i32
  }
  func.func @transform_5(%arg0: i32) -> (i32, i32) {
    %c0_i32 = arith.constant 0 : i32
    %c0_i32_0 = arith.constant 0 : i32
    %c0_i32_1 = arith.constant 0 : i32
    return %c0_i32, %c0_i32_0 : i32, i32
  }
  func.func @transform_6(%arg0: i32) -> (i32, i32) {
    %c0_i32 = arith.constant 0 : i32
    %c0_i32_0 = arith.constant 0 : i32
    %c0_i32_1 = arith.constant 0 : i32
    return %c0_i32, %c0_i32_0 : i32, i32
  }
  func.func @transform_7(%arg0: i32) -> (i32, i32) {
    %c0_i32 = arith.constant 0 : i32
    %c0_i32_0 = arith.constant 0 : i32
    %c0_i32_1 = arith.constant 0 : i32
    return %c0_i32, %c0_i32_0 : i32, i32
  }
  func.func @transform_8(%arg0: i32) -> (i32, i32) {
    %c0_i32 = arith.constant 0 : i32
    %c0_i32_0 = arith.constant 0 : i32
    %c0_i32_1 = arith.constant 0 : i32
    return %c0_i32, %c0_i32_0 : i32, i32
  }
  func.func @transform_9(%arg0: i32) -> (i32, i32) {
    %c0_i32 = arith.constant 0 : i32
    %c0_i32_0 = arith.constant 0 : i32
    %c0_i32_1 = arith.constant 0 : i32
    return %c0_i32, %c0_i32_0 : i32, i32
  }
  func.func @transform_10(%arg0: i32) -> (i32, i32) {
    %c0_i32 = arith.constant 0 : i32
    %c0_i32_0 = arith.constant 0 : i32
    %c0_i32_1 = arith.constant 0 : i32
    return %c0_i32, %c0_i32_0 : i32, i32
  }
  func.func @transform_11(%arg0: i32) -> (i32, i32) {
    %c0_i32 = arith.constant 0 : i32
    %c0_i32_0 = arith.constant 0 : i32
    return %arg0, %c0_i32 : i32, i32
  }
}

module attributes {stable_mosaic.version = 11 : i64} {
  func.func @mlp_kernel(%arg0: i32, %arg1: memref<16x32xbf16, #tpu.memory_space<vmem>>, %arg2: memref<32x1024xbf16, #tpu.memory_space<vmem>>, %arg3: memref<1x1024xf32, #tpu.memory_space<vmem>>, %arg4: memref<1024x512xbf16, #tpu.memory_space<vmem>>, %arg5: memref<1x512xf32, #tpu.memory_space<vmem>>, %arg6: memref<512x256xbf16, #tpu.memory_space<vmem>>, %arg7: memref<1x256xf32, #tpu.memory_space<vmem>>, %arg8: memref<256x128xbf16, #tpu.memory_space<vmem>>, %arg9: memref<1x128xf32, #tpu.memory_space<vmem>>, %arg10: memref<1x128xf32, #tpu.memory_space<vmem>>, %arg11: memref<1x1xf32, #tpu.memory_space<vmem>>, %arg12: memref<1x16xf32, #tpu.memory_space<vmem>>) attributes {dimension_semantics = [#tpu.dimension_semantics<parallel>], iteration_bounds = array<i64: 1>, scalar_prefetch = 0 : i64, scratch_operands = 0 : i64, tpu.core_type = #tpu.core_type<tc>, window_params = [{transform_indices = @transform_0, window_bounds = array<i64: 16, 32>}, {pipeline_mode = #tpu.pipeline_mode<synchronous>, transform_indices = @transform_1, window_bounds = array<i64: 32, 1024>}, {pipeline_mode = #tpu.pipeline_mode<synchronous>, transform_indices = @transform_2, window_bounds = array<i64: 1, 1024>}, {pipeline_mode = #tpu.pipeline_mode<synchronous>, transform_indices = @transform_3, window_bounds = array<i64: 1024, 512>}, {pipeline_mode = #tpu.pipeline_mode<synchronous>, transform_indices = @transform_4, window_bounds = array<i64: 1, 512>}, {pipeline_mode = #tpu.pipeline_mode<synchronous>, transform_indices = @transform_5, window_bounds = array<i64: 512, 256>}, {pipeline_mode = #tpu.pipeline_mode<synchronous>, transform_indices = @transform_6, window_bounds = array<i64: 1, 256>}, {pipeline_mode = #tpu.pipeline_mode<synchronous>, transform_indices = @transform_7, window_bounds = array<i64: 256, 128>}, {pipeline_mode = #tpu.pipeline_mode<synchronous>, transform_indices = @transform_8, window_bounds = array<i64: 1, 128>}, {pipeline_mode = #tpu.pipeline_mode<synchronous>, transform_indices = @transform_9, window_bounds = array<i64: 1, 128>}, {pipeline_mode = #tpu.pipeline_mode<synchronous>, transform_indices = @transform_10, window_bounds = array<i64: 1, 1>}, {transform_indices = @transform_11, window_bounds = array<i64: 1, 16>}]} {
    %c0 = arith.constant 0 : index
    %c0_0 = arith.constant 0 : index
    %0 = vector.load %arg1[%c0, %c0_0] : memref<16x32xbf16, #tpu.memory_space<vmem>>, vector<16x32xbf16>
    %c0_1 = arith.constant 0 : index
    %c0_2 = arith.constant 0 : index
    %1 = vector.load %arg2[%c0_1, %c0_2] : memref<32x1024xbf16, #tpu.memory_space<vmem>>, vector<32x1024xbf16>
    %cst = arith.constant dense<0.000000e+00> : vector<16x1024xf32>
    %2 = tpu.matmul %0, %1, %cst {dimension_numbers = #tpu.dot_dimension_numbers<[1], [0], [0], [1], [0, 0, 1, 1], [], []>} : vector<16x32xbf16>, vector<32x1024xbf16>, vector<16x1024xf32> -> vector<16x1024xf32>
    %c0_3 = arith.constant 0 : index
    %c0_4 = arith.constant 0 : index
    %3 = vector.load %arg3[%c0_3, %c0_4] : memref<1x1024xf32, #tpu.memory_space<vmem>>, vector<1x1024xf32>
    %4 = vector.broadcast %3 : vector<1x1024xf32> to vector<16x1024xf32>
    %5 = arith.addf %2, %4 : vector<16x1024xf32>
    %cst_5 = arith.constant 0.000000e+00 : f32
    %6 = vector.broadcast %cst_5 : f32 to vector<16x1024xf32>
    %7 = arith.maximumf %5, %6 : vector<16x1024xf32>
    %8 = arith.truncf %7 : vector<16x1024xf32> to vector<16x1024xbf16>
    %c0_6 = arith.constant 0 : index
    %c0_7 = arith.constant 0 : index
    %9 = vector.load %arg4[%c0_6, %c0_7] : memref<1024x512xbf16, #tpu.memory_space<vmem>>, vector<1024x512xbf16>
    %cst_8 = arith.constant dense<0.000000e+00> : vector<16x512xf32>
    %10 = tpu.matmul %8, %9, %cst_8 {dimension_numbers = #tpu.dot_dimension_numbers<[1], [0], [0], [1], [0, 0, 1, 1], [], []>} : vector<16x1024xbf16>, vector<1024x512xbf16>, vector<16x512xf32> -> vector<16x512xf32>
    %c0_9 = arith.constant 0 : index
    %c0_10 = arith.constant 0 : index
    %11 = vector.load %arg5[%c0_9, %c0_10] : memref<1x512xf32, #tpu.memory_space<vmem>>, vector<1x512xf32>
    %12 = vector.broadcast %11 : vector<1x512xf32> to vector<16x512xf32>
    %13 = arith.addf %10, %12 : vector<16x512xf32>
    %cst_11 = arith.constant 0.000000e+00 : f32
    %14 = vector.broadcast %cst_11 : f32 to vector<16x512xf32>
    %15 = arith.maximumf %13, %14 : vector<16x512xf32>
    %16 = arith.truncf %15 : vector<16x512xf32> to vector<16x512xbf16>
    %c0_12 = arith.constant 0 : index
    %c0_13 = arith.constant 0 : index
    %17 = vector.load %arg6[%c0_12, %c0_13] : memref<512x256xbf16, #tpu.memory_space<vmem>>, vector<512x256xbf16>
    %cst_14 = arith.constant dense<0.000000e+00> : vector<16x256xf32>
    %18 = tpu.matmul %16, %17, %cst_14 {dimension_numbers = #tpu.dot_dimension_numbers<[1], [0], [0], [1], [0, 0, 1, 1], [], []>} : vector<16x512xbf16>, vector<512x256xbf16>, vector<16x256xf32> -> vector<16x256xf32>
    %c0_15 = arith.constant 0 : index
    %c0_16 = arith.constant 0 : index
    %19 = vector.load %arg7[%c0_15, %c0_16] : memref<1x256xf32, #tpu.memory_space<vmem>>, vector<1x256xf32>
    %20 = vector.broadcast %19 : vector<1x256xf32> to vector<16x256xf32>
    %21 = arith.addf %18, %20 : vector<16x256xf32>
    %cst_17 = arith.constant 0.000000e+00 : f32
    %22 = vector.broadcast %cst_17 : f32 to vector<16x256xf32>
    %23 = arith.maximumf %21, %22 : vector<16x256xf32>
    %24 = arith.truncf %23 : vector<16x256xf32> to vector<16x256xbf16>
    %c0_18 = arith.constant 0 : index
    %c0_19 = arith.constant 0 : index
    %25 = vector.load %arg8[%c0_18, %c0_19] : memref<256x128xbf16, #tpu.memory_space<vmem>>, vector<256x128xbf16>
    %cst_20 = arith.constant dense<0.000000e+00> : vector<16x128xf32>
    %26 = tpu.matmul %24, %25, %cst_20 {dimension_numbers = #tpu.dot_dimension_numbers<[1], [0], [0], [1], [0, 0, 1, 1], [], []>} : vector<16x256xbf16>, vector<256x128xbf16>, vector<16x128xf32> -> vector<16x128xf32>
    %c0_21 = arith.constant 0 : index
    %c0_22 = arith.constant 0 : index
    %27 = vector.load %arg9[%c0_21, %c0_22] : memref<1x128xf32, #tpu.memory_space<vmem>>, vector<1x128xf32>
    %28 = vector.broadcast %27 : vector<1x128xf32> to vector<16x128xf32>
    %29 = arith.addf %26, %28 : vector<16x128xf32>
    %cst_23 = arith.constant 0.000000e+00 : f32
    %30 = vector.broadcast %cst_23 : f32 to vector<16x128xf32>
    %31 = arith.maximumf %29, %30 : vector<16x128xf32>
    %c0_24 = arith.constant 0 : index
    %c0_25 = arith.constant 0 : index
    %32 = vector.load %arg10[%c0_24, %c0_25] : memref<1x128xf32, #tpu.memory_space<vmem>>, vector<1x128xf32>
    %cst_26 = arith.constant dense<0.000000e+00> : vector<1x16xf32>
    %33 = tpu.matmul %32, %31, %cst_26 {dimension_numbers = #tpu.dot_dimension_numbers<[1], [1], [0], [0], [0, 0, 1, 0], [], []>} : vector<1x128xf32>, vector<16x128xf32>, vector<1x16xf32> -> vector<1x16xf32>
    %c0_27 = arith.constant 0 : index
    %c0_28 = arith.constant 0 : index
    %34 = vector.load %arg11[%c0_27, %c0_28] : memref<1x1xf32, #tpu.memory_space<vmem>>, vector<1x1xf32>
    %35 = vector.broadcast %34 : vector<1x1xf32> to vector<1x16xf32>
    %36 = arith.addf %33, %35 : vector<1x16xf32>
    %c0_29 = arith.constant 0 : index
    %c0_30 = arith.constant 0 : index
    %37 = vector.load %arg12[%c0_29, %c0_30] : memref<1x16xf32, #tpu.memory_space<vmem>>, vector<1x16xf32>
    tpu.vector_store %arg12[%c0_29, %c0_30], %36 {strides = array<i32>} : memref<1x16xf32, #tpu.memory_space<vmem>>, vector<1x16xf32>,
    return
  }
  func.func @transform_0(%arg0: i32) -> (i32, i32) {
    %c0_i32 = arith.constant 0 : i32
    %c0_i32_0 = arith.constant 0 : i32
    return %arg0, %c0_i32 : i32, i32
  }
  func.func @transform_1(%arg0: i32) -> (i32, i32) {
    %c0_i32 = arith.constant 0 : i32
    %c0_i32_0 = arith.constant 0 : i32
    %c0_i32_1 = arith.constant 0 : i32
    return %c0_i32, %c0_i32_0 : i32, i32
  }
  func.func @transform_2(%arg0: i32) -> (i32, i32) {
    %c0_i32 = arith.constant 0 : i32
    %c0_i32_0 = arith.constant 0 : i32
    %c0_i32_1 = arith.constant 0 : i32
    return %c0_i32, %c0_i32_0 : i32, i32
  }
  func.func @transform_3(%arg0: i32) -> (i32, i32) {
    %c0_i32 = arith.constant 0 : i32
    %c0_i32_0 = arith.constant 0 : i32
    %c0_i32_1 = arith.constant 0 : i32
    return %c0_i32, %c0_i32_0 : i32, i32
  }
  func.func @transform_4(%arg0: i32) -> (i32, i32) {
    %c0_i32 = arith.constant 0 : i32
    %c0_i32_0 = arith.constant 0 : i32
    %c0_i32_1 = arith.constant 0 : i32
    return %c0_i32, %c0_i32_0 : i32, i32
  }
  func.func @transform_5(%arg0: i32) -> (i32, i32) {
    %c0_i32 = arith.constant 0 : i32
    %c0_i32_0 = arith.constant 0 : i32
    %c0_i32_1 = arith.constant 0 : i32
    return %c0_i32, %c0_i32_0 : i32, i32
  }
  func.func @transform_6(%arg0: i32) -> (i32, i32) {
    %c0_i32 = arith.constant 0 : i32
    %c0_i32_0 = arith.constant 0 : i32
    %c0_i32_1 = arith.constant 0 : i32
    return %c0_i32, %c0_i32_0 : i32, i32
  }
  func.func @transform_7(%arg0: i32) -> (i32, i32) {
    %c0_i32 = arith.constant 0 : i32
    %c0_i32_0 = arith.constant 0 : i32
    %c0_i32_1 = arith.constant 0 : i32
    return %c0_i32, %c0_i32_0 : i32, i32
  }
  func.func @transform_8(%arg0: i32) -> (i32, i32) {
    %c0_i32 = arith.constant 0 : i32
    %c0_i32_0 = arith.constant 0 : i32
    %c0_i32_1 = arith.constant 0 : i32
    return %c0_i32, %c0_i32_0 : i32, i32
  }
  func.func @transform_9(%arg0: i32) -> (i32, i32) {
    %c0_i32 = arith.constant 0 : i32
    %c0_i32_0 = arith.constant 0 : i32
    %c0_i32_1 = arith.constant 0 : i32
    return %c0_i32, %c0_i32_0 : i32, i32
  }
  func.func @transform_10(%arg0: i32) -> (i32, i32) {
    %c0_i32 = arith.constant 0 : i32
    %c0_i32_0 = arith.constant 0 : i32
    %c0_i32_1 = arith.constant 0 : i32
    return %c0_i32, %c0_i32_0 : i32, i32
  }
  func.func @transform_11(%arg0: i32) -> (i32, i32) {
    %c0_i32 = arith.constant 0 : i32
    %c0_i32_0 = arith.constant 0 : i32
    return %arg0, %c0_i32 : i32, i32
  }
}

</mosaic_0001>

<bundles_post_ra>
// kernel: tpu_custom_call.1
= control target key start
LH: loop header
LB: loop body
LE: loop exit
PB: predicated region body
PF: predicated region fallthrough
CT: control target
= control target key end

     0   :  { %s4428_s0 = inlined_call_operand.hbm [shape: bf16[16,32], index: 0, kind: input, shape index: {}]   ;;  %s4429_s1 = inlined_call_operand.hbm [shape: bf16[32,1024], index: 1, kind: input, shape index: {}]   ;;  %s4430_s2 = inlined_call_operand.hbm [shape: f32[1,1024], index: 2, kind: input, shape index: {}]   ;;  %s4431_s3 = inlined_call_operand.hbm [shape: bf16[1024,512], index: 3, kind: input, shape index: {}]   ;;  %s4432_s4 = inlined_call_operand.vmem [shape: f32[1,512], index: 4, kind: input, shape index: {}]   ;;  %s4433_s5 = inlined_call_operand.hbm [shape: bf16[512,256], index: 5, kind: input, shape index: {}]   ;;  %s4434_s6 = inlined_call_operand.vmem [shape: f32[1,256], index: 6, kind: input, shape index: {}]   ;;  %s4435_s7 = inlined_call_operand.hbm [shape: bf16[256,128], index: 7, kind: input, shape index: {}]   ;;  %s4436_s8 = inlined_call_operand.vmem [shape: f32[1,128], index: 8, kind: input, shape index: {}]   ;;  %s4437_s9 = inlined_call_operand.vmem [shape: f32[1,128], index: 9, kind: input, shape index: {}]   ;;  %s4438_s10 = inlined_call_operand.<no memory space> [shape: f32[1,1], index: 10, kind: input, shape index: {}]   ;;  %s4439_s11 = inlined_call_operand.hbm [shape: f32[1,16], index: 11, kind: output, shape index: {}]  }
   0x1   :  { %v16_v0 = vstv %s4438_s10 }
   0x2   :  { %17 = vst [vmem:[#allocation2] sm:$0x1] %v16_v0 }
   0x3   :  { %18 = vsyncpa [#allocation4], 0 }
   0x4   :  { %19 = vsyncpa [#allocation7], 0 }
   0x5   :  { %20 = vsyncpa [#allocation10], 0 }
   0x6   :  { %21 = vsyncpa [#allocation13], 0 }
   0x7   :  { %22 = vsyncpa [#allocation5], 0  ;;  %s4204_s19 = smov [#allocation6]  }
   0x8   :  { %s40_s20 = sshll.u32 %s4204_s19, 4  ;;  %s41_s20 = int_to_ptr.vmem [resolvable:$true] %s40_s20 }
   0x9   :  { %s4062_s21 = scalar_lea.vmem %s41_s20, 2048  ;;  %p4067_p1 = scmp.lt.s32.totalorder %s41_s20, %s41_s20 }
   0xa   :  { %p4063_p0 = scmp.ne.s32.totalorder %s41_s20, %s4062_s21  ;;  %p4068_p2 = scmp.lt.s32.totalorder %s4062_s21, %s4062_s21 }
   0xc   :  { %p4069_p3 = por %p4068_p2, %p4067_p1 }
   0xe   :  { %p4070_p4 = pnand %p4069_p3, %p4063_p0 }
  0x10   :  { %4073 = shalt.err (!%p4070_p4)
}
  0x11   :  { %s4205_s22 = smov 512   ;;  %s4206_s23 = smov 32  }
  0x12   :  { %46 = dma.hbm_to_vmem [thread:$0]  %s4429_s1, 2048, %s41_s20, [#allocation7], %s4205_s22, %s4205_s22, %s4206_s23  }
  0x13   :  { %s4207_s25 = smov [#allocation9]  }
  0x14   :  { %s62_s26 = sshll.u32 %s4207_s25, 4  ;;  %s63_s26 = int_to_ptr.vmem [resolvable:$true] %s62_s26 }
  0x15   :  { %s4082_s27 = scalar_lea.vmem %s63_s26, 32768  ;;  %p4087_p6 = scmp.lt.s32.totalorder %s63_s26, %s63_s26 }
  0x16   :  { %p4083_p5 = scmp.ne.s32.totalorder %s63_s26, %s4082_s27  ;;  %p4088_p7 = scmp.lt.s32.totalorder %s4082_s27, %s4082_s27 }
  0x18   :  { %p4089_p8 = por %p4088_p7, %p4087_p6 }
  0x1a   :  { %p4090_p9 = pnand %p4089_p8, %p4083_p5 }
  0x1c   :  { %4093 = shalt.err (!%p4090_p9)
}
  0x1d   :  { %s4208_s28 = smov 256   ;;  %s4209_s29 = smov 16  }
  0x1e   :  { %68 = dma.hbm_to_vmem [thread:$0]  %s4431_s3, 32768, %s63_s26, [#allocation10], %s4208_s28, %s4208_s28, %s4209_s29  }
  0x1f   :  { %s4210_s13 = smov [#allocation3]  }
  0x20   :  { %s28_s14 = sshll.u32 %s4210_s13, 4  ;;  %s29_s14 = int_to_ptr.vmem [resolvable:$true] %s28_s14 }
  0x21   :  { %s4102_s1 = scalar_lea.vmem %s29_s14, 128  ;;  %p4107_p11 = scmp.lt.s32.totalorder %s29_s14, %s29_s14 }
  0x22   :  { %p4103_p10 = scmp.ne.s32.totalorder %s29_s14, %s4102_s1  ;;  %p4108_p12 = scmp.lt.s32.totalorder %s4102_s1, %s4102_s1 }
  0x24   :  { %p4109_p13 = por %p4108_p12, %p4107_p11 }
  0x26   :  { %p4110_p0 = pnand %p4109_p13, %p4103_p10 }
  0x28   :  { %4113 = shalt.err (!%p4110_p0)
}
  0x29   :  { %s4211_s15 = smov 64   ;;  %s4212_s16 = smov 4  }
  0x2a   :  { %34 = dma.hbm_to_vmem [thread:$0]  %s4428_s0, 128, %s29_s14, [#allocation4], %s4211_s15, %s4211_s15, %s4212_s16  }
  0x2b   :  { %s4213_s3 = smov [#allocation8]   ;;  %s4214_s20 = smov [#allocation11]  }
  0x2c   :  { %s53_s19 = sshll.u32 %s4213_s3, 4  ;;  %s76_s21 = sshll.u32 %s4214_s20, 4  ;;  %s54_s19 = int_to_ptr.vmem [resolvable:$true] %s53_s19  ;;  %s77_s21 = int_to_ptr.vmem [resolvable:$true] %s76_s21 }
  0x2d   :  { %s4122_s22 = scalar_lea.vmem %s54_s19, 128  ;;  %p4127_p2 = scmp.lt.s32.totalorder %s54_s19, %s54_s19 }
  0x2e   :  { %p4123_p1 = scmp.ne.s32.totalorder %s54_s19, %s4122_s22  ;;  %p4128_p3 = scmp.lt.s32.totalorder %s4122_s22, %s4122_s22 }
  0x30   :  { %p4129_p4 = por %p4128_p3, %p4127_p2 }
  0x32   :  { %p4130_p5 = pnand %p4129_p4, %p4123_p1 }
  0x34   :  { %4133 = shalt.err (!%p4130_p5)
}
  0x35   :  { %56 = dma.hbm_to_vmem [thread:$0]  %s4430_s2, 128, %s54_s19, [#allocation7]  }
  0x36   :  { %s4142_s10 = scalar_lea.vmem %s77_s21, 8192  ;;  %p4147_p7 = scmp.lt.s32.totalorder %s77_s21, %s77_s21 }
  0x37   :  { %p4143_p6 = scmp.ne.s32.totalorder %s77_s21, %s4142_s10  ;;  %p4148_p8 = scmp.lt.s32.totalorder %s4142_s10, %s4142_s10 }
  0x39   :  { %p4149_p9 = por %p4148_p8, %p4147_p7 }
  0x3b   :  { %p4150_p10 = pnand %p4149_p9, %p4143_p6 }
  0x3d   :  { %4153 = shalt.err (!%p4150_p10)
}
  0x3e   :  { %s4215_s0 = smov 128   ;;  %s4216_s25 = smov 8  }
  0x3f   :  { %82 = dma.hbm_to_vmem [thread:$0]  %s4433_s5, 8192, %s77_s21, [#allocation10], %s4215_s0, %s4215_s0, %s4216_s25  }
  0x40   :  { %s4217_s28 = smov [#allocation12]  }
  0x41   :  { %s90_s29 = sshll.u32 %s4217_s28, 4  ;;  %s91_s29 = int_to_ptr.vmem [resolvable:$true] %s90_s29 }
  0x42   :  { %s4162_s30 = scalar_lea.vmem %s91_s29, 2048  ;;  %p4167_p12 = scmp.lt.s32.totalorder %s91_s29, %s91_s29 }
  0x43   :  { %p4163_p11 = scmp.ne.s32.totalorder %s91_s29, %s4162_s30  ;;  %p4168_p13 = scmp.lt.s32.totalorder %s4162_s30, %s4162_s30 }
  0x45   :  { %p4169_p0 = por %p4168_p13, %p4167_p12 }
  0x47   :  { %p4170_p1 = pnand %p4169_p0, %p4163_p11 }
  0x49   :  { %4173 = shalt.err (!%p4170_p1)
}
  0x4a   :  { %96 = dma.hbm_to_vmem [thread:$0]  %s4435_s7, 2048, %s91_s29, [#allocation13], %s4211_s15, %s4211_s15, %s4212_s16  }
  0x4b   :  { %4194 = dma.done.wait [#allocation4], 128  }
  0x4c   :  { %4195 = vsyncadd [#allocation4], 4294967168 }
  0x4d   :  { %4196 = dma.done.wait [#allocation7], 2176  }
  0x4e   :  { %4197 = vsyncadd [#allocation7], 4294965120 }
  0x4f   :  { %4198 = dma.done.wait [#allocation10], 40960  }
  0x50   :  { %4199 = vsyncadd [#allocation10], 4294926336 }
  0x51   :  { %4200 = dma.done.wait [#allocation13], 2048  }
  0x52   :  { %4201 = vsyncadd [#allocation13], 4294965248  ;;  %v4218_v1 = vmov 0   ;;  %v132_v2 = vld [vmem:[#allocation6 + $0x40] sm:$0xff]  ;;  %v133_v9 = vld [vmem:[#allocation6 + $0x48] sm:$0xff]  ;;  %vm267_vm0 = vcmask 261120  }
  0x53   :  { %303 = vmatprep.mubr.bf16.mxu1 %v4218_v1  ;;  %3556 = vset.pattern.permute.xlu0 %v4218_v1  ;;  %v136_v3 = vld [vmem:[#allocation6 + $0x60] sm:$0xff]  ;;  %v137_v10 = vld [vmem:[#allocation6 + $0x68] sm:$0xff]  ;;  %v4311_v12 = vld [vmem:[#allocation3] sm:$0xff]   ;;  %vm4220_vm1 = vmmov 0   ;;  %s4221_s16 = smov [#allocation14]   ;;  %vm3128_vm2 = vcmask 122880  }
  0x54   :  { %v124_v4 = vld [vmem:[#allocation6] sm:$0xff]  ;;  %v3158_v5 = vcombine.high %v132_v2, %v136_v3  ;;  %v3157_v6 = vcombine.low %v132_v2, %v136_v3  ;;  %v3160_v13 = vcombine.high %v133_v9, %v137_v10  ;;  %v125_v14 = vld [vmem:[#allocation6 + $0x8] sm:$0xff]  ;;  %v3159_v18 = vcombine.low %v133_v9, %v137_v10  ;;  %v134_v19 = vld [vmem:[#allocation6 + $0x50] sm:$0xff]  ;;  %s3136_s17 = sshll.u32 %s4221_s16, 4  ;;  %s3137_s17 = int_to_ptr.vmem [resolvable:$true] %s3136_s17 }
  0x55   :  { %v128_v7 = vld [vmem:[#allocation6 + $0x20] sm:$0xff]  ;;  %v129_v15 = vld [vmem:[#allocation6 + $0x28] sm:$0xff]  ;;  %v138_v22 = vld [vmem:[#allocation6 + $0x70] sm:$0xff]  ;;  %s4178_s18 = scalar_lea.vmem %s3137_s17, 32  ;;  %p4179_p3 = scmp.lt.s32.totalorder %s3137_s17, %s3137_s17 }
  0x56   :  { %v3150_v8 = vcombine.high %v124_v4, %v128_v7  ;;  %283 = vmatprep.subr.bf16.mxu1 %v3158_v5  ;;  %v3149_v11 = vcombine.low %v124_v4, %v128_v7  ;;  %v3558_v16 = vld [vmem:[#allocation9 + $0xe4] ss:$16 sps:$4 sm:$0xff]   ;;  %v3560_v17 = vld [vmem:[#allocation9 + $0xe0] ss:$16 sps:$4 sm:$0xff]   ;;  %v3152_v21 = vcombine.high %v125_v14, %v129_v15  ;;  %v3151_v25 = vcombine.low %v125_v14, %v129_v15  ;;  %v126_v27 = vld [vmem:[#allocation6 + $0x10] sm:$0xff] }
  0x57   :  { %284 = vmatpush1.bf16.msra.mxu1 %v3157_v6  ;;  %v3561_v20 = vld [vmem:[#allocation9 + $0xc4] ss:$16 sps:$4 sm:$0xff]   ;;  %2025 = vmatprep.subr.bf16.mxu0 %v3558_v16  ;;  %v3563_v23 = vld [vmem:[#allocation9 + $0xc0] ss:$16 sps:$4 sm:$0xff]   ;;  %v3162_v26 = vcombine.high %v134_v19, %v138_v22  ;;  %v130_v28 = vld [vmem:[#allocation6 + $0x30] sm:$0xff]  ;;  %v3161_v31 = vcombine.low %v134_v19, %v138_v22 }
  0x58   :  { %285 = vmatprep.subr.bf16.mxu1 %v3150_v8  ;;  %2026 = vmatpush1.bf16.msra.mxu0 %v3560_v17  ;;  %v3564_v24 = vld [vmem:[#allocation9 + $0xa4] ss:$16 sps:$4 sm:$0xff]   ;;  %v3569_v29 = vld [vmem:[#allocation9 + $0xa0] ss:$16 sps:$4 sm:$0xff]   ;;  %v3154_v33 = vcombine.high %v126_v27, %v130_v28  ;;  %v3153_v37 = vcombine.low %v126_v27, %v130_v28 }
  0x59   :  { %2027 = vmatprep.subr.bf16.mxu0 %v3561_v20  ;;  %v3570_v30 = vld [vmem:[#allocation9 + $0x84] ss:$16 sps:$4 sm:$0xff]   ;;  %v3575_v35 = vld [vmem:[#allocation9 + $0x80] ss:$16 sps:$4 sm:$0xff]  }
  0x5a   :  { %v135_v32 = vld [vmem:[#allocation6 + $0x58] sm:$0xff] }
  0x5b   :  { %286 = vmatpush1.bf16.msra.mxu1 %v3149_v11  ;;  %v139_v34 = vld [vmem:[#allocation6 + $0x78] sm:$0xff] }
  0x5c   :  { %326 = vmatprep.subr.bf16.mxu1 %v3160_v13  ;;  %2028 = vmatpush1.bf16.msra.mxu0 %v3563_v23  ;;  %v3576_v36 = vld [vmem:[#allocation9 + $0x64] ss:$16 sps:$4 sm:$0xff]   ;;  %v3164_v38 = vcombine.high %v135_v32, %v139_v34  ;;  %v3581_v41 = vld [vmem:[#allocation9 + $0x60] ss:$16 sps:$4 sm:$0xff]   ;;  %v3163_v43 = vcombine.low %v135_v32, %v139_v34 }
  0x5d   :  { %2029 = vmatprep.subr.bf16.mxu0 %v3564_v24  ;;  %v127_v39 = vld [vmem:[#allocation6 + $0x18] sm:$0xff] }
  0x5e   :  { %3165 = vmatmul.mubr.msk.bf16.vlgmr.msra.gmra.mxu1 %vm267_vm0, %v4311_v12  ;;  %v131_v40 = vld [vmem:[#allocation6 + $0x38] sm:$0xff] }
  0x5f   :  { %327 = vmatpush1.bf16.msra.mxu1 %v3159_v18  ;;  %346 = vmatprep.mubr.bf16.mxu1 %v4218_v1  ;;  %v3582_v42 = vld [vmem:[#allocation9 + $0x44] ss:$16 sps:$4 sm:$0xff]   ;;  %v3156_v44 = vcombine.high %v127_v39, %v131_v40  ;;  %v3587_v45 = vld [vmem:[#allocation9 + $0x40] ss:$16 sps:$4 sm:$0xff]   ;;  %v3155_v47 = vcombine.low %v127_v39, %v131_v40 }
  0x60   :  { %328 = vmatprep.subr.bf16.mxu1 %v3152_v21  ;;  %2030 = vmatpush1.bf16.msra.mxu0 %v3569_v29  ;;  %v3588_v46 = vld [vmem:[#allocation9 + $0x24] ss:$16 sps:$4 sm:$0xff]   ;;  %v3593_v49 = vld [vmem:[#allocation9 + $0x20] ss:$16 sps:$4 sm:$0xff]  }
  0x61   :  { %2031 = vmatprep.subr.bf16.mxu0 %v3570_v30  ;;  %v3568_v48 = vld [vmem:[#allocation9 + $0x2e4] ss:$16 sps:$4 sm:$0xff]   ;;  %v3566_v51 = vld [vmem:[#allocation9 + $0x2e0] ss:$16 sps:$4 sm:$0xff]  }
  0x62   :  { %v3594_v50 = vld [vmem:[#allocation9 + $0x4] ss:$16 sps:$4 sm:$0xff]   ;;  %v3599_v53 = vld [vmem:[#allocation9] ss:$16 sps:$4 sm:$0xff]  }
  0x63   :  { %329 = vmatpush1.bf16.msra.mxu1 %v3151_v25  ;;  %v3574_v52 = vld [vmem:[#allocation9 + $0x2c4] ss:$16 sps:$4 sm:$0xff]   ;;  %v3572_v55 = vld [vmem:[#allocation9 + $0x2c0] ss:$16 sps:$4 sm:$0xff]  }
  0x64   :  { %369 = vmatprep.subr.bf16.mxu1 %v3162_v26  ;;  %2032 = vmatpush1.bf16.msra.mxu0 %v3575_v35  ;;  %v3600_v54 = vld [vmem:[#allocation9 + $0x1e4] ss:$16 sps:$4 sm:$0xff]   ;;  %v3578_v57 = vld [vmem:[#allocation9 + $0x2a0] ss:$16 sps:$4 sm:$0xff]  }
  0x65   :  { %2033 = vmatprep.subr.bf16.mxu0 %v3576_v36  ;;  %v3580_v56 = vld [vmem:[#allocation9 + $0x2a4] ss:$16 sps:$4 sm:$0xff]   ;;  %v3605_v58 = vld [vmem:[#allocation9 + $0x1e0] ss:$16 sps:$4 sm:$0xff]  }
  0x66   :  { %3166 = vmatmul.mubr.msk.bf16.vlgmr.msra.gmra.mxu1 %vm267_vm0, %v4311_v12  ;;  %v3606_v59 = vld [vmem:[#allocation9 + $0x1c4] ss:$16 sps:$4 sm:$0xff]   ;;  %v3611_v61 = vld [vmem:[#allocation9 + $0x1c0] ss:$16 sps:$4 sm:$0xff]  }
  0x67   :  { %370 = vmatpush1.bf16.msra.mxu1 %v3161_v31  ;;  %389 = vmatprep.mubr.bf16.mxu1 %v4218_v1  ;;  %v3586_v60 = vld [vmem:[#allocation9 + $0x284] ss:$16 sps:$4 sm:$0xff]   ;;  %v3584_v63 = vld [vmem:[#allocation9 + $0x280] ss:$16 sps:$4 sm:$0xff]  }
  0x68   :  { %371 = vmatprep.subr.bf16.mxu1 %v3154_v33  ;;  %2034 = vmatpush1.bf16.msra.mxu0 %v3581_v41  ;;  %v3612_v62 = vld [vmem:[#allocation9 + $0x1a4] ss:$16 sps:$4 sm:$0xff]   ;;  %v3590_v3 = vld [vmem:[#allocation9 + $0x260] ss:$16 sps:$4 sm:$0xff]   ;;  %v4332_v41 = vld [vmem:[#allocation8] sm:$0xff] }
  0x69   :  { %2035 = vmatprep.subr.bf16.mxu0 %v3582_v42  ;;  %v3592_v0 = vld [vmem:[#allocation9 + $0x264] ss:$16 sps:$4 sm:$0xff]   ;;  %v3623_v5 = vld [vmem:[#allocation9 + $0x180] ss:$16 sps:$4 sm:$0xff]  }
  0x6a   :  { %v3618_v2 = vld [vmem:[#allocation9 + $0x184] ss:$16 sps:$4 sm:$0xff]   ;;  %v3596_v7 = vld [vmem:[#allocation9 + $0x240] ss:$16 sps:$4 sm:$0xff]  }
  0x6b   :  { %372 = vmatpush1.bf16.msra.mxu1 %v3153_v37  ;;  %v3598_v4 = vld [vmem:[#allocation9 + $0x244] ss:$16 sps:$4 sm:$0xff]   ;;  %v3629_v9 = vld [vmem:[#allocation9 + $0x160] ss:$16 sps:$4 sm:$0xff]   ;;  %v142_v37 = vlaneseq }
  0x6c   :  { %412 = vmatprep.subr.bf16.mxu1 %v3164_v38  ;;  %2036 = vmatpush1.bf16.msra.mxu0 %v3587_v45  ;;  %v3624_v6 = vld [vmem:[#allocation9 + $0x164] ss:$16 sps:$4 sm:$0xff]   ;;  %v3602_v10 = vld [vmem:[#allocation9 + $0x220] ss:$16 sps:$4 sm:$0xff]  }
  0x6d   :  { %2037 = vmatprep.subr.bf16.mxu0 %v3588_v46  ;;  %v3604_v8 = vld [vmem:[#allocation9 + $0x224] ss:$16 sps:$4 sm:$0xff]   ;;  %v3614_v14 = vld [vmem:[#allocation9 + $0x3e0] ss:$16 sps:$4 sm:$0xff]   ;;  %v4324_v38 = vshrl.u32 %v142_v37, 7 }
  0x6e   :  { %3167 = vmatmul.mubr.msk.bf16.vlgmr.msra.gmra.mxu1 %vm267_vm0, %v4311_v12  ;;  %v3610_v11 = vld [vmem:[#allocation9 + $0x204] ss:$16 sps:$4 sm:$0xff]   ;;  %v3620_v16 = vld [vmem:[#allocation9 + $0x3c0] ss:$16 sps:$4 sm:$0xff]  }
  0x6f   :  { %413 = vmatpush1.bf16.msra.mxu1 %v3163_v43  ;;  %432 = vmatprep.mubr.bf16.mxu1 %v4218_v1  ;;  %v3617_v1 = vld [vmem:[#allocation9 + $0x1a0] ss:$16 sps:$4 sm:$0xff]   ;;  %v3616_v13 = vld [vmem:[#allocation9 + $0x3e4] ss:$16 sps:$4 sm:$0xff]   ;;  %v4327_v39 = vsub.s32 1, %v4324_v38  ;;  %v4330_v40 = vsub.s32 0, %v4324_v38 }
  0x70   :  { %414 = vmatprep.subr.bf16.mxu1 %v3156_v44  ;;  %2038 = vmatpush1.bf16.msra.mxu0 %v3593_v49  ;;  %v3622_v15 = vld [vmem:[#allocation9 + $0x3c4] ss:$16 sps:$4 sm:$0xff]   ;;  %v3626_v18 = vld [vmem:[#allocation9 + $0x3a0] ss:$16 sps:$4 sm:$0xff]   ;;  %v156_v49 = vsub.s32 3, %v4324_v38 }
  0x71   :  { %2039 = vmatprep.subr.bf16.mxu0 %v3594_v50  ;;  %v3628_v17 = vld [vmem:[#allocation9 + $0x3a4] ss:$16 sps:$4 sm:$0xff]   ;;  %v3632_v21 = vld [vmem:[#allocation9 + $0x380] ss:$16 sps:$4 sm:$0xff]   ;;  %v149_v43 = vrot.slane %v4332_v41, %v4327_v39  ;;  %v145_v44 = vrot.slane %v4332_v41, %v4330_v40 }
  0x72   :  { %v3630_v19 = vld [vmem:[#allocation9 + $0x144] ss:$16 sps:$4 sm:$0xff]   ;;  %v3635_v22 = vld [vmem:[#allocation9 + $0x140] ss:$16 sps:$4 sm:$0xff]  }
  0x73   :  { %415 = vmatpush1.bf16.msra.mxu1 %v3155_v47  ;;  %v3634_v20 = vld [vmem:[#allocation9 + $0x384] ss:$16 sps:$4 sm:$0xff]   ;;  %v3638_v25 = vld [vmem:[#allocation9 + $0x360] ss:$16 sps:$4 sm:$0xff]  }
  0x74   :  { %2068 = vmatprep.subr.bf16.mxu1 %v3568_v48  ;;  %2040 = vmatpush1.bf16.msra.mxu0 %v3599_v53  ;;  %v3636_v23 = vld [vmem:[#allocation9 + $0x124] ss:$16 sps:$4 sm:$0xff]   ;;  %v3641_v26 = vld [vmem:[#allocation9 + $0x120] ss:$16 sps:$4 sm:$0xff]  }
  0x75   :  { %2041 = vmatprep.subr.bf16.mxu0 %v3600_v54  ;;  %v3640_v24 = vld [vmem:[#allocation9 + $0x364] ss:$16 sps:$4 sm:$0xff]   ;;  %v3644_v29 = vld [vmem:[#allocation9 + $0x340] ss:$16 sps:$4 sm:$0xff]  }
  0x76   :  { %3168 = vmatmul.mubr.msk.bf16.vlgmr.msra.gmra.mxu1 %vm267_vm0, %v4311_v12  ;;  %v3608_v12 = vld [vmem:[#allocation9 + $0x200] ss:$16 sps:$4 sm:$0xff]   ;;  %v3642_v27 = vld [vmem:[#allocation9 + $0x104] ss:$16 sps:$4 sm:$0xff]  }
  0x77   :  { %2069 = vmatpush1.bf16.msra.mxu1 %v3566_v51  ;;  %v3646_v28 = vld [vmem:[#allocation9 + $0x344] ss:$16 sps:$4 sm:$0xff]   ;;  %v3647_v30 = vld [vmem:[#allocation9 + $0x100] ss:$16 sps:$4 sm:$0xff]  }
  0x78   :  { %2070 = vmatprep.subr.bf16.mxu1 %v3574_v52  ;;  %2042 = vmatpush2.bf16.msra.mxu0 %v3605_v58  ;;  %v3650_v31 = vld [vmem:[#allocation9 + $0x324] ss:$16 sps:$4 sm:$0xff]   ;;  %v3648_v33 = vld [vmem:[#allocation9 + $0x320] ss:$16 sps:$4 sm:$0xff]   ;;  %v152_v52 = vsub.s32 2, %v4324_v38  ;;  %v157_v58 = vrot.slane %v4332_v41, %v156_v49 }
  0x79   :  { %2043 = vmatprep.subr.bf16.mxu0 %v3606_v59  ;;  %v3653_v32 = vld [vmem:[#allocation9 + $0x4e4] ss:$16 sps:$4 sm:$0xff]   ;;  %v3654_v35 = vld [vmem:[#allocation9 + $0x300] ss:$16 sps:$4 sm:$0xff]  }
  0x7a   :  { %v3656_v34 = vld [vmem:[#allocation9 + $0x304] ss:$16 sps:$4 sm:$0xff]  }
  0x7b   :  { %2071 = vmatpush1.bf16.msra.mxu1 %v3572_v55  ;;  %v3665_v36 = vld [vmem:[#allocation9 + $0x6e4] ss:$16 sps:$4 sm:$0xff]  }
  0x7c   :  { %2072 = vmatprep.subr.bf16.mxu1 %v3580_v56  ;;  %2044 = vmatpush2.bf16.msra.mxu0 %v3611_v61 }
  0x7d   :  { %2045 = vmatprep.subr.bf16.mxu0 %v3612_v62 }
  0x7f   :  { %2073 = vmatpush1.bf16.msra.mxu1 %v3578_v57 }
  0x80   :  { %2074 = vmatprep.subr.bf16.mxu1 %v3586_v60  ;;  %2046 = vmatpush2.bf16.msra.mxu0 %v3617_v1  ;;  %v153_v60 = vrot.slane %v4332_v41, %v152_v52 }
  0x81   :  { %2047 = vmatprep.subr.bf16.mxu0 %v3618_v2 }
  0x83   :  { %2075 = vmatpush1.bf16.msra.mxu1 %v3584_v63  ;;  %v3651_v63 = vld [vmem:[#allocation9 + $0x4e0] ss:$16 sps:$4 sm:$0xff]  }
  0x84   :  { %2076 = vmatprep.subr.bf16.mxu1 %v3592_v0  ;;  %2048 = vmatpush2.bf16.msra.mxu0 %v3623_v5  ;;  %v164_v0 = vsub.s32 5, %v4324_v38 }
  0x85   :  { %2049 = vmatprep.subr.bf16.mxu0 %v3624_v6 }
  0x87   :  { %2077 = vmatpush1.bf16.msra.mxu1 %v3590_v3  ;;  %v3659_v3 = vld [vmem:[#allocation9 + $0x4c4] ss:$16 sps:$4 sm:$0xff]  }
  0x88   :  { %2078 = vmatprep.subr.bf16.mxu1 %v3598_v4  ;;  %2050 = vmatpush2.bf16.msra.mxu0 %v3629_v9  ;;  %v3657_v9 = vld [vmem:[#allocation9 + $0x4c0] ss:$16 sps:$4 sm:$0xff]  }
  0x89   :  { %2051 = vmatprep.subr.bf16.mxu0 %v3630_v19  ;;  %v3660_v19 = vld [vmem:[#allocation9 + $0x4a0] ss:$16 sps:$4 sm:$0xff]  }
  0x8b   :  { %2079 = vmatpush1.bf16.msra.mxu1 %v3596_v7 }
  0x8c   :  { %2080 = vmatprep.subr.bf16.mxu1 %v3604_v8  ;;  %2052 = vmatpush2.bf16.msra.mxu0 %v3635_v22  ;;  %v172_v22 = vsub.s32 7, %v4324_v38 }
  0x8d   :  { %2053 = vmatprep.subr.bf16.mxu0 %v3636_v23 }
  0x8f   :  { %2081 = vmatpush1.bf16.msra.mxu1 %v3602_v10  ;;  %v165_v10 = vrot.slane %v4332_v41, %v164_v0  ;;  %v3695_v0 = vld [vmem:[#allocation9 + $0x644] ss:$16 sps:$4 sm:$0xff]  }
  0x90   :  { %2082 = vmatprep.subr.bf16.mxu1 %v3610_v11  ;;  %2054 = vmatpush2.bf16.msra.mxu0 %v3641_v26 }
  0x91   :  { %2055 = vmatprep.subr.bf16.mxu0 %v3642_v27 }
  0x93   :  { %2083 = vmatpush1.bf16.msra.mxu1 %v3608_v12  ;;  %v3662_v12 = vld [vmem:[#allocation9 + $0x4a4] ss:$16 sps:$4 sm:$0xff]  }
  0x94   :  { %2084 = vmatprep.subr.bf16.mxu1 %v3616_v13  ;;  %2056 = vmatpush2.bf16.msra.mxu0 %v3647_v30 }
  0x95   :  { %2111 = vmatprep.subr.bf16.mxu0 %v3653_v32  ;;  %v173_v32 = vrot.slane %v4332_v41, %v172_v22  ;;  %v3722_v22 = vld [vmem:[#allocation9 + $0x564] ss:$16 sps:$4 sm:$0xff]  }
  0x97   :  { %2085 = vmatpush2.bf16.msra.mxu1 %v3614_v14 }
  0x98   :  { %2086 = vmatprep.subr.bf16.mxu1 %v3622_v15 }
  0x9b   :  { %2087 = vmatpush2.bf16.msra.mxu1 %v3620_v16 }
  0x9c   :  { %2088 = vmatprep.subr.bf16.mxu1 %v3628_v17 }
  0x9f   :  { %2089 = vmatpush2.bf16.msra.mxu1 %v3626_v18 }
  0xa0   :  { %2090 = vmatprep.subr.bf16.mxu1 %v3634_v20  ;;  %v3663_v20 = vld [vmem:[#allocation9 + $0x6e0] ss:$16 sps:$4 sm:$0xff]  }
  0xa3   :  { %2091 = vmatpush2.bf16.msra.mxu1 %v3632_v21 }
  0xa4   :  { %2092 = vmatprep.subr.bf16.mxu1 %v3640_v24  ;;  %v3668_v24 = vld [vmem:[#allocation9 + $0x484] ss:$16 sps:$4 sm:$0xff]  }
  0xa7   :  { %2093 = vmatpush2.bf16.msra.mxu1 %v3638_v25  ;;  %v3671_v25 = vld [vmem:[#allocation9 + $0x6c4] ss:$16 sps:$4 sm:$0xff]  }
  0xa8   :  { %2094 = vmatprep.subr.bf16.mxu1 %v3646_v28  ;;  %v3666_v28 = vld [vmem:[#allocation9 + $0x480] ss:$16 sps:$4 sm:$0xff]  }
  0xab   :  { %2095 = vmatpush2.bf16.msra.mxu1 %v3644_v29  ;;  %v3669_v29 = vld [vmem:[#allocation9 + $0x6c0] ss:$16 sps:$4 sm:$0xff]  }
  0xac   :  { %2096 = vmatprep.subr.bf16.mxu1 %v3650_v31 }
  0xaf   :  { %2097 = vmatpush2.bf16.msra.mxu1 %v3648_v33  ;;  %v3674_v33 = vld [vmem:[#allocation9 + $0x464] ss:$16 sps:$4 sm:$0xff]  }
  0xb0   :  { %2098 = vmatprep.subr.bf16.mxu1 %v3656_v34  ;;  %v3677_v34 = vld [vmem:[#allocation9 + $0x6a4] ss:$16 sps:$4 sm:$0xff]  }
  0xb3   :  { %2099 = vmatpush2.bf16.msra.mxu1 %v3654_v35 }
  0xb4   :  { %2154 = vmatprep.subr.bf16.mxu1 %v3665_v36 }
 0x11e   :  { %v305_v42 = vpop.f32.mrf.mxu1 }
 0x11f   :  { %v306_v50 = vadd.f32 %v305_v42, %v145_v44  ;;  %v3672_v42 = vld [vmem:[#allocation9 + $0x460] ss:$16 sps:$4 sm:$0xff]  }
 0x120   :  { %v307_v45 = vpop.f32.mrf.mxu1 }
 0x121   :  { %v308_v47 = vadd.f32 %v307_v45, %v149_v43  ;;  %v443_v59 = vmax.f32 %v306_v50, 0.0 }
 0x122   :  { %v309_v46 = vpop.f32.mrf.mxu1 }
 0x123   :  { %v310_v48 = vadd.f32 %v309_v46, %v145_v44  ;;  %v444_v56 = vmax.f32 %v308_v47, 0.0  ;;  %v3680_v46 = vld [vmem:[#allocation9 + $0x444] ss:$16 sps:$4 sm:$0xff]  }
 0x124   :  { %v311_v51 = vpop.f32.mrf.mxu1  ;;  %v3683_v47 = vld [vmem:[#allocation9 + $0x684] ss:$16 sps:$4 sm:$0xff]  }
 0x125   :  { %v312_v53 = vadd.f32 %v311_v51, %v149_v43  ;;  %v451_v54 = vmax.f32 %v310_v48, 0.0  ;;  %v3675_v43 = vld [vmem:[#allocation9 + $0x6a0] ss:$16 sps:$4 sm:$0xff]  }
 0x126   :  { %v348_v55 = vpop.f32.mrf.mxu1  ;;  %v3678_v51 = vld [vmem:[#allocation9 + $0x440] ss:$16 sps:$4 sm:$0xff]  }
 0x127   :  { %v452_v57 = vmax.f32 %v312_v53, 0.0  ;;  %v4349_v1 = vpack.c.bf16 %v451_v54, %v443_v59  ;;  %v349_v6 = vadd.f32 %v348_v55, %v153_v60  ;;  %v3681_v53 = vld [vmem:[#allocation9 + $0x680] ss:$16 sps:$4 sm:$0xff]  }
 0x128   :  { %v350_v61 = vpop.f32.mrf.mxu1  ;;  %v3684_v59 = vld [vmem:[#allocation9 + $0x420] ss:$16 sps:$4 sm:$0xff]  }
 0x129   :  { %v4346_v62 = vpack.c.bf16 %v452_v57, %v444_v56  ;;  %v351_v4 = vadd.f32 %v350_v61, %v157_v58  ;;  %v445_v16 = vmax.f32 %v349_v6, 0.0  ;;  %v3686_v56 = vld [vmem:[#allocation9 + $0x424] ss:$16 sps:$4 sm:$0xff]   ;;  %v3696_v6 = vld [vmem:[#allocation9 + $0x5e0] ss:$16 sps:$4 sm:$0xff]  }
 0x12a   :  { %v352_v2 = vpop.f32.mrf.mxu1  ;;  %v3689_v57 = vld [vmem:[#allocation9 + $0x664] ss:$16 sps:$4 sm:$0xff]  }
 0x12b   :  { %v353_v5 = vadd.f32 %v352_v2, %v153_v60  ;;  %2057 = vmatprep.mubr.bf16.mxu0 %v4346_v62  ;;  %v446_v14 = vmax.f32 %v351_v4, 0.0  ;;  %v3687_v60 = vld [vmem:[#allocation9 + $0x660] ss:$16 sps:$4 sm:$0xff]   ;;  %v3698_v4 = vld [vmem:[#allocation9 + $0x5e4] ss:$16 sps:$4 sm:$0xff]  }
 0x12c   :  { %v354_v7 = vpop.f32.mrf.mxu1  ;;  %2058 = vmatmul.mubr.bf16.vlgmr.msra.gmra.mxu0 %v4349_v1  ;;  %v3690_v2 = vld [vmem:[#allocation9 + $0x400] ss:$16 sps:$4 sm:$0xff]  }
 0x12d   :  { %v355_v8 = vadd.f32 %v354_v7, %v157_v58  ;;  %2112 = vmatpush1.bf16.msra.mxu0 %v3651_v63  ;;  %v453_v11 = vmax.f32 %v353_v5, 0.0  ;;  %v3692_v63 = vld [vmem:[#allocation9 + $0x404] ss:$16 sps:$4 sm:$0xff]   ;;  %v3699_v7 = vld [vmem:[#allocation9 + $0x620] ss:$16 sps:$4 sm:$0xff]  }
 0x12e   :  { %2113 = vmatprep.subr.bf16.mxu0 %v3659_v3  ;;  %v4354_v13 = vpop.f32.mrf.mxu1  ;;  %v3693_v3 = vld [vmem:[#allocation9 + $0x640] ss:$16 sps:$4 sm:$0xff]   ;;  %v3701_v5 = vld [vmem:[#allocation9 + $0x624] ss:$16 sps:$4 sm:$0xff]  }
 0x12f   :  { %v454_v15 = vmax.f32 %v355_v8, 0.0  ;;  %v4359_v23 = vpack.c.bf16 %v453_v11, %v445_v16  ;;  %v3704_v8 = vld [vmem:[#allocation9 + $0x5c4] ss:$16 sps:$4 sm:$0xff]   ;;  %v3705_v11 = vld [vmem:[#allocation9 + $0x600] ss:$16 sps:$4 sm:$0xff]  }
 0x130   :  { %v393_v17 = vpop.f32.mrf.mxu1  ;;  %v3711_v16 = vld [vmem:[#allocation9 + $0x7e0] ss:$16 sps:$4 sm:$0xff]  }
 0x131   :  { %v4356_v18 = vpack.c.bf16 %v454_v15, %v446_v14  ;;  %2114 = vmatpush1.bf16.msra.mxu0 %v3657_v9  ;;  %v394_v21 = vadd.f32 %v393_v17, %v165_v10  ;;  %v3707_v9 = vld [vmem:[#allocation9 + $0x604] ss:$16 sps:$4 sm:$0xff]   ;;  %v3708_v15 = vld [vmem:[#allocation9 + $0x5a0] ss:$16 sps:$4 sm:$0xff]  }
 0x132   :  { %2115 = vmatprep.subr.bf16.mxu0 %v3662_v12  ;;  %v4361_v26 = vpop.f32.mrf.mxu1  ;;  %v3710_v12 = vld [vmem:[#allocation9 + $0x5a4] ss:$16 sps:$4 sm:$0xff]  }
 0x133   :  { %2100 = vmatprep.mubr.bf16.mxu1 %v4356_v18  ;;  %v448_v30 = vmax.f32 %v394_v21, 0.0  ;;  %v3713_v14 = vld [vmem:[#allocation9 + $0x7e4] ss:$16 sps:$4 sm:$0xff]   ;;  %v3717_v21 = vld [vmem:[#allocation9 + $0x7c0] ss:$16 sps:$4 sm:$0xff]  }
 0x134   :  { %2101 = vmatmul.mubr.bf16.vlgmr.msra.gmra.mxu1 %v4359_v23  ;;  %v397_v27 = vpop.f32.mrf.mxu1  ;;  %v3716_v17 = vld [vmem:[#allocation9 + $0x584] ss:$16 sps:$4 sm:$0xff]  }
 0x135   :  { %2116 = vmatpush1.bf16.msra.mxu0 %v3660_v19  ;;  %2155 = vmatpush1.bf16.msra.mxu1 %v3663_v20  ;;  %v398_v31 = vadd.f32 %v397_v27, %v165_v10  ;;  %v3702_v10 = vld [vmem:[#allocation9 + $0x5c0] ss:$16 sps:$4 sm:$0xff]   ;;  %v3719_v19 = vld [vmem:[#allocation9 + $0x7c4] ss:$16 sps:$4 sm:$0xff]  }
 0x136   :  { %2117 = vmatprep.subr.bf16.mxu0 %v3668_v24  ;;  %2156 = vmatprep.subr.bf16.mxu1 %v3671_v25  ;;  %v4366_v35 = vpop.f32.mrf.mxu1  ;;  %v3714_v20 = vld [vmem:[#allocation9 + $0x580] ss:$16 sps:$4 sm:$0xff]   ;;  %v3725_v24 = vld [vmem:[#allocation9 + $0x7a4] ss:$16 sps:$4 sm:$0xff]  }
 0x137   :  { %v456_v36 = vmax.f32 %v398_v31, 0.0  ;;  %v3720_v25 = vld [vmem:[#allocation9 + $0x560] ss:$16 sps:$4 sm:$0xff]  }
 0x138   :  { %v436_v37 = vpop.f32.mrf.mxu1  ;;  %v3723_v27 = vld [vmem:[#allocation9 + $0x7a0] ss:$16 sps:$4 sm:$0xff]  }
 0x139   :  { %2118 = vmatpush1.bf16.msra.mxu0 %v3666_v28  ;;  %2157 = vmatpush1.bf16.msra.mxu1 %v3669_v29  ;;  %v4368_v44 = vpack.c.bf16 %v456_v36, %v448_v30  ;;  %v437_v45 = vadd.f32 %v436_v37, %v173_v32  ;;  %v160_v28 = vsub.s32 4, %v4324_v38  ;;  %v3728_v29 = vld [vmem:[#allocation9 + $0x544] ss:$16 sps:$4 sm:$0xff]   ;;  %v3726_v31 = vld [vmem:[#allocation9 + $0x540] ss:$16 sps:$4 sm:$0xff]  }
 0x13a   :  { %2119 = vmatprep.subr.bf16.mxu0 %v3674_v33  ;;  %2158 = vmatprep.subr.bf16.mxu1 %v3677_v34  ;;  %v4370_v48 = vpop.f32.mrf.mxu1  ;;  %v3731_v30 = vld [vmem:[#allocation9 + $0x784] ss:$16 sps:$4 sm:$0xff]   ;;  %v3732_v37 = vld [vmem:[#allocation9 + $0x520] ss:$16 sps:$4 sm:$0xff]  }
 0x13b   :  { %2143 = vmatprep.mubr.bf16.mxu0 %v4368_v44  ;;  %v450_v54 = vmax.f32 %v437_v45, 0.0  ;;  %v161_v33 = vrot.slane %v4332_v41, %v160_v28  ;;  %v3734_v34 = vld [vmem:[#allocation9 + $0x524] ss:$16 sps:$4 sm:$0xff]   ;;  %v3791_v28 = vld [vmem:[#allocation9 + $0x24c] ss:$16 sps:$4 sm:$0xff]  }
 0x13c   :  { %v440_v50 = vpop.f32.mrf.mxu1  ;;  %v3737_v36 = vld [vmem:[#allocation9 + $0x764] ss:$16 sps:$4 sm:$0xff]  }
 0x13d   :  { %2120 = vmatpush1.bf16.msra.mxu0 %v3672_v42  ;;  %2159 = vmatpush1.bf16.msra.mxu1 %v3675_v43  ;;  %v441_v55 = vadd.f32 %v440_v50, %v173_v32  ;;  %v3729_v32 = vld [vmem:[#allocation9 + $0x780] ss:$16 sps:$4 sm:$0xff]   ;;  %v392_v43 = vadd.f32 %v4354_v13, %v161_v33  ;;  %v396_v45 = vadd.f32 %v4361_v26, %v161_v33  ;;  %v3743_v50 = vld [vmem:[#allocation9 + $0x744] ss:$16 sps:$4 sm:$0xff]   ;;  %v3749_v13 = vld [vmem:[#allocation9 + $0xec] ss:$16 sps:$4 sm:$0xff]  }
 0x13e   :  { %2121 = vmatprep.subr.bf16.mxu0 %v3680_v46  ;;  %2160 = vmatprep.subr.bf16.mxu1 %v3683_v47  ;;  %v3735_v42 = vld [vmem:[#allocation9 + $0x760] ss:$16 sps:$4 sm:$0xff]   ;;  %v168_v46 = vsub.s32 6, %v4324_v38  ;;  %v3740_v47 = vld [vmem:[#allocation9 + $0x504] ss:$16 sps:$4 sm:$0xff]  }
 0x13f   :  { %v458_v58 = vmax.f32 %v441_v55, 0.0  ;;  %v455_v55 = vmax.f32 %v396_v45, 0.0  ;;  %v3744_v26 = vld [vmem:[#allocation9 + $0x720] ss:$16 sps:$4 sm:$0xff]   ;;  %v3792_v33 = vld [vmem:[#allocation9 + $0x1e8] ss:$16 sps:$4 sm:$0xff]  }
 0x140   :  { %v3806_v45 = vld [vmem:[#allocation9 + $0x1ac] ss:$16 sps:$4 sm:$0xff]  }
 0x141   :  { %2122 = vmatpush1.bf16.msra.mxu0 %v3678_v51  ;;  %2161 = vmatpush1.bf16.msra.mxu1 %v3681_v53  ;;  %v4373_v61 = vpack.c.bf16 %v458_v58, %v450_v54  ;;  %v3738_v51 = vld [vmem:[#allocation9 + $0x500] ss:$16 sps:$4 sm:$0xff]   ;;  %v447_v54 = vmax.f32 %v392_v43, 0.0  ;;  %v3747_v58 = vld [vmem:[#allocation9 + $0xe8] ss:$16 sps:$4 sm:$0xff]  }
 0x142   :  { %2123 = vmatprep.subr.bf16.mxu0 %v3686_v56  ;;  %2162 = vmatprep.subr.bf16.mxu1 %v3689_v57  ;;  %v3741_v53 = vld [vmem:[#allocation9 + $0x740] ss:$16 sps:$4 sm:$0xff]   ;;  %v169_v56 = vrot.slane %v4332_v41, %v168_v46  ;;  %v3746_v57 = vld [vmem:[#allocation9 + $0x724] ss:$16 sps:$4 sm:$0xff]   ;;  %v3801_v43 = vld [vmem:[#allocation9 + $0x208] ss:$16 sps:$4 sm:$0xff]  }
 0x143   :  { %2186 = vmatprep.mubr.bf16.mxu1 %v4373_v61  ;;  %v3750_v41 = vld [vmem:[#allocation9 + $0x700] ss:$16 sps:$4 sm:$0xff]   ;;  %v3809_v46 = vld [vmem:[#allocation9 + $0x3ec] ss:$16 sps:$4 sm:$0xff]  }
 0x145   :  { %2124 = vmatpush1.bf16.msra.mxu0 %v3684_v59  ;;  %2163 = vmatpush1.bf16.msra.mxu1 %v3687_v60  ;;  %v4382_v59 = vpack.c.bf16 %v455_v55, %v447_v54  ;;  %v435_v60 = vadd.f32 %v4366_v35, %v169_v56  ;;  %v3756_v35 = vld [vmem:[#allocation9 + $0xa8] ss:$16 sps:$4 sm:$0xff]  }
 0x146   :  { %2125 = vmatprep.subr.bf16.mxu0 %v3692_v63  ;;  %2164 = vmatprep.subr.bf16.mxu1 %v3695_v0  ;;  %v439_v63 = vadd.f32 %v4370_v48, %v169_v56  ;;  %v3752_v0 = vld [vmem:[#allocation9 + $0x704] ss:$16 sps:$4 sm:$0xff]   ;;  %v3759_v48 = vld [vmem:[#allocation9 + $0x2e8] ss:$16 sps:$4 sm:$0xff]   ;;  %v3818_v56 = vld [vmem:[#allocation9 + $0x16c] ss:$16 sps:$4 sm:$0xff]  }
 0x147   :  { %v3810_v54 = vld [vmem:[#allocation9 + $0x188] ss:$16 sps:$4 sm:$0xff]  }
 0x148   :  { %v3813_v55 = vld [vmem:[#allocation9 + $0x3c8] ss:$16 sps:$4 sm:$0xff]  }
 0x149   :  { %2126 = vmatpush1.bf16.msra.mxu0 %v3690_v2  ;;  %2165 = vmatpush1.bf16.msra.mxu1 %v3693_v3  ;;  %v3755_v2 = vld [vmem:[#allocation9 + $0xcc] ss:$16 sps:$4 sm:$0xff]   ;;  %v3753_v3 = vld [vmem:[#allocation9 + $0xc8] ss:$16 sps:$4 sm:$0xff]  }
 0x14a   :  { %2127 = vmatprep.subr.bf16.mxu0 %v3698_v4  ;;  %2166 = vmatprep.subr.bf16.mxu1 %v3701_v5  ;;  %v449_v4 = vmax.f32 %v435_v60, 0.0  ;;  %v457_v5 = vmax.f32 %v439_v63, 0.0  ;;  %v3827_v60 = vld [vmem:[#allocation9 + $0x38c] ss:$16 sps:$4 sm:$0xff]   ;;  %v3822_v63 = vld [vmem:[#allocation9 + $0x148] ss:$16 sps:$4 sm:$0xff]  }
 0x14d   :  { %2128 = vmatpush2.bf16.msra.mxu0 %v3696_v6  ;;  %2167 = vmatpush1.bf16.msra.mxu1 %v3699_v7  ;;  %v3758_v6 = vld [vmem:[#allocation9 + $0xac] ss:$16 sps:$4 sm:$0xff]  }
 0x14e   :  { %2129 = vmatprep.subr.bf16.mxu0 %v3704_v8  ;;  %2168 = vmatprep.subr.bf16.mxu1 %v3707_v9  ;;  %v3761_v7 = vld [vmem:[#allocation9 + $0x2ec] ss:$16 sps:$4 sm:$0xff]   ;;  %v4388_v8 = vpack.c.bf16 %v457_v5, %v449_v4  ;;  %v3831_v4 = vld [vmem:[#allocation9 + $0x368] ss:$16 sps:$4 sm:$0xff]  }
 0x14f   :  { %v3764_v9 = vld [vmem:[#allocation9 + $0x8c] ss:$16 sps:$4 sm:$0xff]  }
 0x150   :  { %v3836_v5 = vld [vmem:[#allocation9 + $0x10c] ss:$16 sps:$4 sm:$0xff]  }
 0x151   :  { %2130 = vmatpush2.bf16.msra.mxu0 %v3702_v10  ;;  %2169 = vmatpush1.bf16.msra.mxu1 %v3705_v11  ;;  %v3767_v10 = vld [vmem:[#allocation9 + $0x2cc] ss:$16 sps:$4 sm:$0xff]   ;;  %v3762_v11 = vld [vmem:[#allocation9 + $0x88] ss:$16 sps:$4 sm:$0xff]  }
 0x152   :  { %2131 = vmatprep.subr.bf16.mxu0 %v3710_v12  ;;  %2170 = vmatprep.subr.bf16.mxu1 %v3713_v14  ;;  %v3770_v12 = vld [vmem:[#allocation9 + $0x6c] ss:$16 sps:$4 sm:$0xff]  }
 0x153   :  { %v3773_v14 = vld [vmem:[#allocation9 + $0x2ac] ss:$16 sps:$4 sm:$0xff]  }
 0x155   :  { %2132 = vmatpush2.bf16.msra.mxu0 %v3708_v15  ;;  %2171 = vmatpush2.bf16.msra.mxu1 %v3711_v16  ;;  %v3768_v15 = vld [vmem:[#allocation9 + $0x68] ss:$16 sps:$4 sm:$0xff]  }
 0x156   :  { %2133 = vmatprep.subr.bf16.mxu0 %v3716_v17  ;;  %2172 = vmatprep.subr.bf16.mxu1 %v3719_v19  ;;  %v3771_v16 = vld [vmem:[#allocation9 + $0x2a8] ss:$16 sps:$4 sm:$0xff]   ;;  %v3776_v17 = vld [vmem:[#allocation9 + $0x4c] ss:$16 sps:$4 sm:$0xff]  }
 0x157   :  { %v3779_v19 = vld [vmem:[#allocation9 + $0x28c] ss:$16 sps:$4 sm:$0xff]  }
 0x159   :  { %2134 = vmatpush2.bf16.msra.mxu0 %v3714_v20  ;;  %2173 = vmatpush2.bf16.msra.mxu1 %v3717_v21  ;;  %v3774_v20 = vld [vmem:[#allocation9 + $0x48] ss:$16 sps:$4 sm:$0xff]  }
 0x15a   :  { %2135 = vmatprep.subr.bf16.mxu0 %v3722_v22  ;;  %2174 = vmatprep.subr.bf16.mxu1 %v3725_v24  ;;  %v3777_v21 = vld [vmem:[#allocation9 + $0x288] ss:$16 sps:$4 sm:$0xff]   ;;  %v3782_v22 = vld [vmem:[#allocation9 + $0x2c] ss:$16 sps:$4 sm:$0xff]  }
 0x15b   :  { %v3780_v24 = vld [vmem:[#allocation9 + $0x28] ss:$16 sps:$4 sm:$0xff]  }
 0x15d   :  { %2136 = vmatpush2.bf16.msra.mxu0 %v3720_v25  ;;  %2175 = vmatpush2.bf16.msra.mxu1 %v3723_v27  ;;  %v3783_v25 = vld [vmem:[#allocation9 + $0x268] ss:$16 sps:$4 sm:$0xff]   ;;  %v3788_v27 = vld [vmem:[#allocation9 + $0xc] ss:$16 sps:$4 sm:$0xff]  }
 0x15e   :  { %2137 = vmatprep.subr.bf16.mxu0 %v3728_v29  ;;  %2176 = vmatprep.subr.bf16.mxu1 %v3731_v30  ;;  %v3786_v29 = vld [vmem:[#allocation9 + $0x8] ss:$16 sps:$4 sm:$0xff]  }
 0x15f   :  { %v3789_v30 = vld [vmem:[#allocation9 + $0x248] ss:$16 sps:$4 sm:$0xff]  }
 0x161   :  { %2138 = vmatpush2.bf16.msra.mxu0 %v3726_v31  ;;  %2177 = vmatpush2.bf16.msra.mxu1 %v3729_v32  ;;  %v3794_v31 = vld [vmem:[#allocation9 + $0x1ec] ss:$16 sps:$4 sm:$0xff]  }
 0x162   :  { %2139 = vmatprep.subr.bf16.mxu0 %v3734_v34  ;;  %2178 = vmatprep.subr.bf16.mxu1 %v3737_v36  ;;  %v3797_v32 = vld [vmem:[#allocation9 + $0x22c] ss:$16 sps:$4 sm:$0xff]   ;;  %v3795_v34 = vld [vmem:[#allocation9 + $0x228] ss:$16 sps:$4 sm:$0xff]  }
 0x163   :  { %v3800_v36 = vld [vmem:[#allocation9 + $0x1cc] ss:$16 sps:$4 sm:$0xff]  }
 0x165   :  { %2140 = vmatpush2.bf16.msra.mxu0 %v3732_v37  ;;  %2179 = vmatpush2.bf16.msra.mxu1 %v3735_v42  ;;  %v3803_v37 = vld [vmem:[#allocation9 + $0x20c] ss:$16 sps:$4 sm:$0xff]   ;;  %v3798_v42 = vld [vmem:[#allocation9 + $0x1c8] ss:$16 sps:$4 sm:$0xff]  }
 0x166   :  { %2141 = vmatprep.subr.bf16.mxu0 %v3740_v47  ;;  %2180 = vmatprep.subr.bf16.mxu1 %v3743_v50  ;;  %v3804_v47 = vld [vmem:[#allocation9 + $0x1a8] ss:$16 sps:$4 sm:$0xff]  }
 0x167   :  { %v3807_v50 = vld [vmem:[#allocation9 + $0x3e8] ss:$16 sps:$4 sm:$0xff]  }
 0x169   :  { %2142 = vmatpush2.bf16.msra.mxu0 %v3738_v51  ;;  %2181 = vmatpush2.bf16.msra.mxu1 %v3741_v53  ;;  %v3812_v51 = vld [vmem:[#allocation9 + $0x18c] ss:$16 sps:$4 sm:$0xff]  }
 0x16a   :  { %2182 = vmatprep.subr.bf16.mxu1 %v3746_v57  ;;  %2197 = vmatprep.subr.bf16.mxu0 %v3749_v13  ;;  %v3815_v53 = vld [vmem:[#allocation9 + $0x3cc] ss:$16 sps:$4 sm:$0xff]   ;;  %v3816_v13 = vld [vmem:[#allocation9 + $0x168] ss:$16 sps:$4 sm:$0xff]  }
 0x16b   :  { %v3821_v57 = vld [vmem:[#allocation9 + $0x3ac] ss:$16 sps:$4 sm:$0xff]  }
 0x16c   :  { %2144 = vmatmul.mubr.bf16.vlgmr.msra.gmra.mxu0 %v4382_v59 }
 0x16d   :  { %2183 = vmatpush2.bf16.msra.mxu1 %v3744_v26  ;;  %2198 = vmatpush1.bf16.msra.mxu0 %v3747_v58  ;;  %v3819_v26 = vld [vmem:[#allocation9 + $0x3a8] ss:$16 sps:$4 sm:$0xff]   ;;  %v3824_v58 = vld [vmem:[#allocation9 + $0x14c] ss:$16 sps:$4 sm:$0xff]  }
 0x16e   :  { %2229 = vmatprep.mubr.bf16.mxu0 %v4346_v62  ;;  %2184 = vmatprep.subr.bf16.mxu1 %v3752_v0  ;;  %v3765_v62 = vld [vmem:[#allocation9 + $0x2c8] ss:$16 sps:$4 sm:$0xff]  }
 0x16f   :  { %2199 = vmatprep.subr.bf16.mxu0 %v3755_v2  ;;  %v3825_v0 = vld [vmem:[#allocation9 + $0x388] ss:$16 sps:$4 sm:$0xff]   ;;  %v3830_v2 = vld [vmem:[#allocation9 + $0x12c] ss:$16 sps:$4 sm:$0xff]  }
 0x171   :  { %2185 = vmatpush2.bf16.msra.mxu1 %v3750_v41  ;;  %2200 = vmatpush1.bf16.msra.mxu0 %v3753_v3  ;;  %v3833_v41 = vld [vmem:[#allocation9 + $0x36c] ss:$16 sps:$4 sm:$0xff]   ;;  %v3828_v3 = vld [vmem:[#allocation9 + $0x128] ss:$16 sps:$4 sm:$0xff]  }
 0x172   :  { %2201 = vmatprep.subr.bf16.mxu0 %v3758_v6  ;;  %2240 = vmatprep.subr.bf16.mxu1 %v3761_v7  ;;  %v3839_v6 = vld [vmem:[#allocation9 + $0x34c] ss:$16 sps:$4 sm:$0xff]   ;;  %v3834_v7 = vld [vmem:[#allocation9 + $0x108] ss:$16 sps:$4 sm:$0xff]  }
 0x174   :  { %2187 = vmatmul.mubr.bf16.vlgmr.msra.gmra.mxu1 %v4388_v8 }
 0x175   :  { %2202 = vmatpush1.bf16.msra.mxu0 %v3756_v35  ;;  %2241 = vmatpush1.bf16.msra.mxu1 %v3759_v48  ;;  %v3837_v35 = vld [vmem:[#allocation9 + $0x348] ss:$16 sps:$4 sm:$0xff]   ;;  %v3842_v48 = vld [vmem:[#allocation9 + $0x32c] ss:$16 sps:$4 sm:$0xff]  }
 0x176   :  { %2272 = vmatprep.mubr.bf16.mxu1 %v4356_v18  ;;  %2203 = vmatprep.subr.bf16.mxu0 %v3764_v9  ;;  %v3785_v18 = vld [vmem:[#allocation9 + $0x26c] ss:$16 sps:$4 sm:$0xff]  }
 0x177   :  { %2242 = vmatprep.subr.bf16.mxu1 %v3767_v10  ;;  %v3845_v9 = vld [vmem:[#allocation9 + $0x4ec] ss:$16 sps:$4 sm:$0xff]   ;;  %v3840_v10 = vld [vmem:[#allocation9 + $0x328] ss:$16 sps:$4 sm:$0xff]  }
 0x179   :  { %2204 = vmatpush1.bf16.msra.mxu0 %v3762_v11  ;;  %2243 = vmatpush1.bf16.msra.mxu1 %v3765_v62  ;;  %v3843_v11 = vld [vmem:[#allocation9 + $0x4e8] ss:$16 sps:$4 sm:$0xff]   ;;  %v3848_v62 = vld [vmem:[#allocation9 + $0x30c] ss:$16 sps:$4 sm:$0xff]  }
 0x17a   :  { %2205 = vmatprep.subr.bf16.mxu0 %v3770_v12  ;;  %2244 = vmatprep.subr.bf16.mxu1 %v3773_v14  ;;  %v3851_v12 = vld [vmem:[#allocation9 + $0x4cc] ss:$16 sps:$4 sm:$0xff]   ;;  %v3846_v14 = vld [vmem:[#allocation9 + $0x308] ss:$16 sps:$4 sm:$0xff]  }
 0x17d   :  { %2206 = vmatpush1.bf16.msra.mxu0 %v3768_v15  ;;  %2245 = vmatpush1.bf16.msra.mxu1 %v3771_v16  ;;  %v3849_v15 = vld [vmem:[#allocation9 + $0x4c8] ss:$16 sps:$4 sm:$0xff]   ;;  %v3854_v16 = vld [vmem:[#allocation9 + $0x4ac] ss:$16 sps:$4 sm:$0xff]  }
 0x17e   :  { %2207 = vmatprep.subr.bf16.mxu0 %v3776_v17  ;;  %2246 = vmatprep.subr.bf16.mxu1 %v3779_v19  ;;  %v3857_v17 = vld [vmem:[#allocation9 + $0x6ec] ss:$16 sps:$4 sm:$0xff]   ;;  %v3852_v19 = vld [vmem:[#allocation9 + $0x4a8] ss:$16 sps:$4 sm:$0xff]  }
 0x181   :  { %2208 = vmatpush1.bf16.msra.mxu0 %v3774_v20  ;;  %2247 = vmatpush1.bf16.msra.mxu1 %v3777_v21  ;;  %v3855_v20 = vld [vmem:[#allocation9 + $0x6e8] ss:$16 sps:$4 sm:$0xff]   ;;  %v3860_v21 = vld [vmem:[#allocation9 + $0x48c] ss:$16 sps:$4 sm:$0xff]  }
 0x182   :  { %2209 = vmatprep.subr.bf16.mxu0 %v3782_v22  ;;  %2248 = vmatprep.subr.bf16.mxu1 %v3785_v18  ;;  %v3863_v22 = vld [vmem:[#allocation9 + $0x6cc] ss:$16 sps:$4 sm:$0xff]   ;;  %v3861_v18 = vld [vmem:[#allocation9 + $0x6c8] ss:$16 sps:$4 sm:$0xff]  }
 0x185   :  { %2210 = vmatpush1.bf16.msra.mxu0 %v3780_v24  ;;  %2249 = vmatpush1.bf16.msra.mxu1 %v3783_v25  ;;  %v3869_v24 = vld [vmem:[#allocation9 + $0x6ac] ss:$16 sps:$4 sm:$0xff]   ;;  %v3864_v25 = vld [vmem:[#allocation9 + $0x468] ss:$16 sps:$4 sm:$0xff]  }
 0x186   :  { %2211 = vmatprep.subr.bf16.mxu0 %v3788_v27  ;;  %2250 = vmatprep.subr.bf16.mxu1 %v3791_v28  ;;  %v3867_v27 = vld [vmem:[#allocation9 + $0x6a8] ss:$16 sps:$4 sm:$0xff]   ;;  %v3872_v28 = vld [vmem:[#allocation9 + $0x44c] ss:$16 sps:$4 sm:$0xff]  }
 0x189   :  { %2212 = vmatpush1.bf16.msra.mxu0 %v3786_v29  ;;  %2251 = vmatpush1.bf16.msra.mxu1 %v3789_v30  ;;  %v3875_v29 = vld [vmem:[#allocation9 + $0x68c] ss:$16 sps:$4 sm:$0xff]   ;;  %v3873_v30 = vld [vmem:[#allocation9 + $0x688] ss:$16 sps:$4 sm:$0xff]  }
 0x18a   :  { %2213 = vmatprep.subr.bf16.mxu0 %v3794_v31  ;;  %2252 = vmatprep.subr.bf16.mxu1 %v3797_v32  ;;  %v3878_v31 = vld [vmem:[#allocation9 + $0x42c] ss:$16 sps:$4 sm:$0xff]   ;;  %v3876_v32 = vld [vmem:[#allocation9 + $0x428] ss:$16 sps:$4 sm:$0xff]  }
 0x18d   :  { %2214 = vmatpush2.bf16.msra.mxu0 %v3792_v33  ;;  %2253 = vmatpush1.bf16.msra.mxu1 %v3795_v34  ;;  %v3879_v33 = vld [vmem:[#allocation9 + $0x668] ss:$16 sps:$4 sm:$0xff]   ;;  %v3884_v34 = vld [vmem:[#allocation9 + $0x40c] ss:$16 sps:$4 sm:$0xff]  }
 0x18e   :  { %2215 = vmatprep.subr.bf16.mxu0 %v3800_v36  ;;  %2254 = vmatprep.subr.bf16.mxu1 %v3803_v37  ;;  %v3887_v36 = vld [vmem:[#allocation9 + $0x64c] ss:$16 sps:$4 sm:$0xff]   ;;  %v3882_v37 = vld [vmem:[#allocation9 + $0x408] ss:$16 sps:$4 sm:$0xff]  }
 0x191   :  { %2216 = vmatpush2.bf16.msra.mxu0 %v3798_v42  ;;  %2255 = vmatpush1.bf16.msra.mxu1 %v3801_v43  ;;  %v3885_v42 = vld [vmem:[#allocation9 + $0x648] ss:$16 sps:$4 sm:$0xff]   ;;  %v3890_v43 = vld [vmem:[#allocation9 + $0x5ec] ss:$16 sps:$4 sm:$0xff]  }
 0x192   :  { %2217 = vmatprep.subr.bf16.mxu0 %v3806_v45  ;;  %2256 = vmatprep.subr.bf16.mxu1 %v3809_v46  ;;  %v3893_v45 = vld [vmem:[#allocation9 + $0x62c] ss:$16 sps:$4 sm:$0xff]   ;;  %v3888_v46 = vld [vmem:[#allocation9 + $0x5e8] ss:$16 sps:$4 sm:$0xff]  }
 0x195   :  { %2218 = vmatpush2.bf16.msra.mxu0 %v3804_v47  ;;  %2257 = vmatpush2.bf16.msra.mxu1 %v3807_v50  ;;  %v3891_v47 = vld [vmem:[#allocation9 + $0x628] ss:$16 sps:$4 sm:$0xff]   ;;  %v3896_v50 = vld [vmem:[#allocation9 + $0x5cc] ss:$16 sps:$4 sm:$0xff]  }
 0x196   :  { %2219 = vmatprep.subr.bf16.mxu0 %v3812_v51  ;;  %2258 = vmatprep.subr.bf16.mxu1 %v3815_v53  ;;  %v3899_v51 = vld [vmem:[#allocation9 + $0x60c] ss:$16 sps:$4 sm:$0xff]   ;;  %v3894_v53 = vld [vmem:[#allocation9 + $0x5c8] ss:$16 sps:$4 sm:$0xff]  }
 0x199   :  { %2220 = vmatpush2.bf16.msra.mxu0 %v3810_v54  ;;  %2259 = vmatpush2.bf16.msra.mxu1 %v3813_v55  ;;  %v3897_v54 = vld [vmem:[#allocation9 + $0x608] ss:$16 sps:$4 sm:$0xff]   ;;  %v3902_v55 = vld [vmem:[#allocation9 + $0x5ac] ss:$16 sps:$4 sm:$0xff]  }
 0x19a   :  { %2221 = vmatprep.subr.bf16.mxu0 %v3818_v56  ;;  %2260 = vmatprep.subr.bf16.mxu1 %v3821_v57  ;;  %v3905_v56 = vld [vmem:[#allocation9 + $0x7ec] ss:$16 sps:$4 sm:$0xff]   ;;  %v3900_v57 = vld [vmem:[#allocation9 + $0x5a8] ss:$16 sps:$4 sm:$0xff]  }
 0x19d   :  { %2222 = vmatpush2.bf16.msra.mxu0 %v3816_v13  ;;  %2261 = vmatpush2.bf16.msra.mxu1 %v3819_v26  ;;  %v3903_v13 = vld [vmem:[#allocation9 + $0x7e8] ss:$16 sps:$4 sm:$0xff]   ;;  %v3908_v26 = vld [vmem:[#allocation9 + $0x58c] ss:$16 sps:$4 sm:$0xff]  }
 0x19e   :  { %2223 = vmatprep.subr.bf16.mxu0 %v3824_v58  ;;  %2262 = vmatprep.subr.bf16.mxu1 %v3827_v60  ;;  %v3911_v58 = vld [vmem:[#allocation9 + $0x7cc] ss:$16 sps:$4 sm:$0xff]   ;;  %v3906_v60 = vld [vmem:[#allocation9 + $0x588] ss:$16 sps:$4 sm:$0xff]  }
 0x1a1   :  { %2224 = vmatpush2.bf16.msra.mxu0 %v3822_v63  ;;  %2263 = vmatpush2.bf16.msra.mxu1 %v3825_v0  ;;  %v3909_v63 = vld [vmem:[#allocation9 + $0x7c8] ss:$16 sps:$4 sm:$0xff]   ;;  %v3914_v0 = vld [vmem:[#allocation9 + $0x56c] ss:$16 sps:$4 sm:$0xff]  }
 0x1a2   :  { %2225 = vmatprep.subr.bf16.mxu0 %v3830_v2  ;;  %2264 = vmatprep.subr.bf16.mxu1 %v3833_v41  ;;  %v3917_v2 = vld [vmem:[#allocation9 + $0x7ac] ss:$16 sps:$4 sm:$0xff]   ;;  %v3912_v41 = vld [vmem:[#allocation9 + $0x568] ss:$16 sps:$4 sm:$0xff]  }
 0x1a5   :  { %2226 = vmatpush2.bf16.msra.mxu0 %v3828_v3  ;;  %2265 = vmatpush2.bf16.msra.mxu1 %v3831_v4  ;;  %v3915_v3 = vld [vmem:[#allocation9 + $0x7a8] ss:$16 sps:$4 sm:$0xff]   ;;  %v3920_v4 = vld [vmem:[#allocation9 + $0x54c] ss:$16 sps:$4 sm:$0xff]  }
 0x1a6   :  { %2227 = vmatprep.subr.bf16.mxu0 %v3836_v5  ;;  %2266 = vmatprep.subr.bf16.mxu1 %v3839_v6  ;;  %v3923_v5 = vld [vmem:[#allocation9 + $0x78c] ss:$16 sps:$4 sm:$0xff]   ;;  %v3918_v6 = vld [vmem:[#allocation9 + $0x548] ss:$16 sps:$4 sm:$0xff]  }
 0x1a9   :  { %2228 = vmatpush2.bf16.msra.mxu0 %v3834_v7  ;;  %2267 = vmatpush2.bf16.msra.mxu1 %v3837_v35  ;;  %v3921_v7 = vld [vmem:[#allocation9 + $0x788] ss:$16 sps:$4 sm:$0xff]   ;;  %v3926_v35 = vld [vmem:[#allocation9 + $0x52c] ss:$16 sps:$4 sm:$0xff]  }
 0x1aa   :  { %2268 = vmatprep.subr.bf16.mxu1 %v3842_v48  ;;  %2283 = vmatprep.subr.bf16.mxu0 %v3845_v9  ;;  %v3929_v48 = vld [vmem:[#allocation9 + $0x76c] ss:$16 sps:$4 sm:$0xff]   ;;  %v3924_v9 = vld [vmem:[#allocation9 + $0x528] ss:$16 sps:$4 sm:$0xff]  }
 0x1ac   :  { %2230 = vmatmul.mubr.bf16.vlgmr.msra.gmra.mxu0 %v4349_v1  ;;  %v3858_v1 = vld [vmem:[#allocation9 + $0x488] ss:$16 sps:$4 sm:$0xff]  }
 0x1ad   :  { %2269 = vmatpush2.bf16.msra.mxu1 %v3840_v10  ;;  %2284 = vmatpush1.bf16.msra.mxu0 %v3843_v11  ;;  %v3927_v10 = vld [vmem:[#allocation9 + $0x768] ss:$16 sps:$4 sm:$0xff]   ;;  %v3932_v11 = vld [vmem:[#allocation9 + $0x50c] ss:$16 sps:$4 sm:$0xff]  }
 0x1ae   :  { %2315 = vmatprep.mubr.bf16.mxu0 %v4368_v44  ;;  %2270 = vmatprep.subr.bf16.mxu1 %v3848_v62  ;;  %v3866_v44 = vld [vmem:[#allocation9 + $0x46c] ss:$16 sps:$4 sm:$0xff]  }
 0x1af   :  { %2285 = vmatprep.subr.bf16.mxu0 %v3851_v12  ;;  %v3935_v62 = vld [vmem:[#allocation9 + $0x74c] ss:$16 sps:$4 sm:$0xff]   ;;  %v3930_v12 = vld [vmem:[#allocation9 + $0x508] ss:$16 sps:$4 sm:$0xff]  }
 0x1b1   :  { %2271 = vmatpush2.bf16.msra.mxu1 %v3846_v14  ;;  %2286 = vmatpush1.bf16.msra.mxu0 %v3849_v15  ;;  %v3933_v14 = vld [vmem:[#allocation9 + $0x748] ss:$16 sps:$4 sm:$0xff]   ;;  %v3938_v15 = vld [vmem:[#allocation9 + $0x72c] ss:$16 sps:$4 sm:$0xff]  }
 0x1b2   :  { %2287 = vmatprep.subr.bf16.mxu0 %v3854_v16  ;;  %2326 = vmatprep.subr.bf16.mxu1 %v3857_v17  ;;  %v3944_v16 = vld [vmem:[#allocation11 + $0x74] ss:$8 sps:$4 sm:$0xff]   ;;  %v3936_v17 = vld [vmem:[#allocation9 + $0x728] ss:$16 sps:$4 sm:$0xff]  }
 0x1b4   :  { %2273 = vmatmul.mubr.bf16.vlgmr.msra.gmra.mxu1 %v4359_v23  ;;  %v3870_v23 = vld [vmem:[#allocation9 + $0x448] ss:$16 sps:$4 sm:$0xff]  }
 0x1b5   :  { %2288 = vmatpush1.bf16.msra.mxu0 %v3852_v19  ;;  %2327 = vmatpush1.bf16.msra.mxu1 %v3855_v20  ;;  %v3942_v19 = vld [vmem:[#allocation11 + $0x70] ss:$8 sps:$4 sm:$0xff]   ;;  %v3941_v20 = vld [vmem:[#allocation9 + $0x70c] ss:$16 sps:$4 sm:$0xff]  }
 0x1b6   :  { %2358 = vmatprep.mubr.bf16.mxu1 %v4373_v61  ;;  %2289 = vmatprep.subr.bf16.mxu0 %v3860_v21  ;;  %v3881_v61 = vld [vmem:[#allocation9 + $0x66c] ss:$16 sps:$4 sm:$0xff]  }
 0x1b7   :  { %2328 = vmatprep.subr.bf16.mxu1 %v3863_v22  ;;  %v3947_v21 = vld [vmem:[#allocation11 + $0x64] ss:$8 sps:$4 sm:$0xff]   ;;  %v3939_v22 = vld [vmem:[#allocation9 + $0x708] ss:$16 sps:$4 sm:$0xff]  }
 0x1b9   :  { %2290 = vmatpush1.bf16.msra.mxu0 %v3858_v1  ;;  %2329 = vmatpush1.bf16.msra.mxu1 %v3861_v18  ;;  %v3945_v1 = vld [vmem:[#allocation11 + $0x60] ss:$8 sps:$4 sm:$0xff]   ;;  %v3950_v18 = vld [vmem:[#allocation11 + $0x54] ss:$8 sps:$4 sm:$0xff]  }
 0x1ba   :  { %2291 = vmatprep.subr.bf16.mxu0 %v3866_v44  ;;  %2330 = vmatprep.subr.bf16.mxu1 %v3869_v24  ;;  %v3948_v44 = vld [vmem:[#allocation11 + $0x50] ss:$8 sps:$4 sm:$0xff]   ;;  %v3953_v24 = vld [vmem:[#allocation11 + $0x44] ss:$8 sps:$4 sm:$0xff]  }
 0x1bd   :  { %2292 = vmatpush1.bf16.msra.mxu0 %v3864_v25  ;;  %2331 = vmatpush1.bf16.msra.mxu1 %v3867_v27  ;;  %v3951_v25 = vld [vmem:[#allocation11 + $0x40] ss:$8 sps:$4 sm:$0xff]   ;;  %v3956_v27 = vld [vmem:[#allocation11 + $0x34] ss:$8 sps:$4 sm:$0xff]  }
 0x1be   :  { %2293 = vmatprep.subr.bf16.mxu0 %v3872_v28  ;;  %2332 = vmatprep.subr.bf16.mxu1 %v3875_v29  ;;  %v3959_v28 = vld [vmem:[#allocation11 + $0x24] ss:$8 sps:$4 sm:$0xff]   ;;  %v3990_v29 = vld [vmem:[#allocation11 + $0x170] ss:$8 sps:$4 sm:$0xff]  }
 0x1c1   :  { %2294 = vmatpush1.bf16.msra.mxu0 %v3870_v23  ;;  %2333 = vmatpush1.bf16.msra.mxu1 %v3873_v30  ;;  %v3992_v23 = vld [vmem:[#allocation11 + $0x174] ss:$8 sps:$4 sm:$0xff]   ;;  %v3995_v30 = vld [vmem:[#allocation11 + $0x164] ss:$8 sps:$4 sm:$0xff]  }
 0x1c2   :  { %2295 = vmatprep.subr.bf16.mxu0 %v3878_v31  ;;  %2334 = vmatprep.subr.bf16.mxu1 %v3881_v61  ;;  %v3957_v31 = vld [vmem:[#allocation11 + $0x20] ss:$8 sps:$4 sm:$0xff]   ;;  %v3962_v61 = vld [vmem:[#allocation11 + $0x14] ss:$8 sps:$4 sm:$0xff]  }
 0x1c5   :  { %2296 = vmatpush1.bf16.msra.mxu0 %v3876_v32  ;;  %2335 = vmatpush1.bf16.msra.mxu1 %v3879_v33  ;;  %v3993_v32 = vld [vmem:[#allocation11 + $0x160] ss:$8 sps:$4 sm:$0xff]   ;;  %v3960_v33 = vld [vmem:[#allocation11 + $0x10] ss:$8 sps:$4 sm:$0xff]  }
 0x1c6   :  { %2297 = vmatprep.subr.bf16.mxu0 %v3884_v34  ;;  %2336 = vmatprep.subr.bf16.mxu1 %v3887_v36  ;;  %v3965_v34 = vld [vmem:[#allocation11 + $0x4] ss:$8 sps:$4 sm:$0xff]   ;;  %v3996_v36 = vld [vmem:[#allocation11 + $0x150] ss:$8 sps:$4 sm:$0xff]  }
 0x1c9   :  { %2298 = vmatpush1.bf16.msra.mxu0 %v3882_v37  ;;  %2337 = vmatpush1.bf16.msra.mxu1 %v3885_v42  ;;  %v4001_v37 = vld [vmem:[#allocation11 + $0x144] ss:$8 sps:$4 sm:$0xff]   ;;  %v3963_v42 = vld [vmem:[#allocation11] ss:$8 sps:$4 sm:$0xff]  }
 0x1ca   :  { %2299 = vmatprep.subr.bf16.mxu0 %v3890_v43  ;;  %2338 = vmatprep.subr.bf16.mxu1 %v3893_v45  ;;  %v3968_v43 = vld [vmem:[#allocation11 + $0xf4] ss:$8 sps:$4 sm:$0xff]   ;;  %v3999_v45 = vld [vmem:[#allocation11 + $0x140] ss:$8 sps:$4 sm:$0xff]  }
 0x1cd   :  { %2300 = vmatpush2.bf16.msra.mxu0 %v3888_v46  ;;  %2339 = vmatpush1.bf16.msra.mxu1 %v3891_v47  ;;  %v4004_v46 = vld [vmem:[#allocation11 + $0x134] ss:$8 sps:$4 sm:$0xff]   ;;  %v3966_v47 = vld [vmem:[#allocation11 + $0xf0] ss:$8 sps:$4 sm:$0xff]  }
 0x1ce   :  { %2301 = vmatprep.subr.bf16.mxu0 %v3896_v50  ;;  %2340 = vmatprep.subr.bf16.mxu1 %v3899_v51  ;;  %v3971_v50 = vld [vmem:[#allocation11 + $0xe4] ss:$8 sps:$4 sm:$0xff]   ;;  %v4002_v51 = vld [vmem:[#allocation11 + $0x130] ss:$8 sps:$4 sm:$0xff]  }
 0x1d1   :  { %2302 = vmatpush2.bf16.msra.mxu0 %v3894_v53  ;;  %2341 = vmatpush1.bf16.msra.mxu1 %v3897_v54  ;;  %v4007_v53 = vld [vmem:[#allocation11 + $0x124] ss:$8 sps:$4 sm:$0xff]   ;;  %v3969_v54 = vld [vmem:[#allocation11 + $0xe0] ss:$8 sps:$4 sm:$0xff]  }
 0x1d2   :  { %2303 = vmatprep.subr.bf16.mxu0 %v3902_v55  ;;  %2342 = vmatprep.subr.bf16.mxu1 %v3905_v56  ;;  %v3974_v55 = vld [vmem:[#allocation11 + $0xd4] ss:$8 sps:$4 sm:$0xff]   ;;  %v4005_v56 = vld [vmem:[#allocation11 + $0x120] ss:$8 sps:$4 sm:$0xff]  }
 0x1d5   :  { %2304 = vmatpush2.bf16.msra.mxu0 %v3900_v57  ;;  %2343 = vmatpush2.bf16.msra.mxu1 %v3903_v13  ;;  %v4010_v57 = vld [vmem:[#allocation11 + $0x114] ss:$8 sps:$4 sm:$0xff]   ;;  %v3972_v13 = vld [vmem:[#allocation11 + $0xd0] ss:$8 sps:$4 sm:$0xff]  }
 0x1d6   :  { %2305 = vmatprep.subr.bf16.mxu0 %v3908_v26  ;;  %2344 = vmatprep.subr.bf16.mxu1 %v3911_v58  ;;  %v3977_v26 = vld [vmem:[#allocation11 + $0xc4] ss:$8 sps:$4 sm:$0xff]   ;;  %v4008_v58 = vld [vmem:[#allocation11 + $0x110] ss:$8 sps:$4 sm:$0xff]  }
 0x1d9   :  { %2306 = vmatpush2.bf16.msra.mxu0 %v3906_v60  ;;  %2345 = vmatpush2.bf16.msra.mxu1 %v3909_v63  ;;  %v4013_v60 = vld [vmem:[#allocation11 + $0x104] ss:$8 sps:$4 sm:$0xff]   ;;  %v3975_v63 = vld [vmem:[#allocation11 + $0xc0] ss:$8 sps:$4 sm:$0xff]  }
 0x1da   :  { %2307 = vmatprep.subr.bf16.mxu0 %v3914_v0  ;;  %2346 = vmatprep.subr.bf16.mxu1 %v3917_v2  ;;  %v3980_v0 = vld [vmem:[#allocation11 + $0xb4] ss:$8 sps:$4 sm:$0xff]   ;;  %v4011_v2 = vld [vmem:[#allocation11 + $0x100] ss:$8 sps:$4 sm:$0xff]  }
 0x1dd   :  { %2308 = vmatpush2.bf16.msra.mxu0 %v3912_v41  ;;  %2347 = vmatpush2.bf16.msra.mxu1 %v3915_v3  ;;  %v4016_v41 = vld [vmem:[#allocation11 + $0x1f4] ss:$8 sps:$4 sm:$0xff]   ;;  %v3978_v3 = vld [vmem:[#allocation11 + $0xb0] ss:$8 sps:$4 sm:$0xff]  }
 0x1de   :  { %2309 = vmatprep.subr.bf16.mxu0 %v3920_v4  ;;  %2348 = vmatprep.subr.bf16.mxu1 %v3923_v5  ;;  %v3983_v4 = vld [vmem:[#allocation11 + $0xa4] ss:$8 sps:$4 sm:$0xff]   ;;  %v4014_v5 = vld [vmem:[#allocation11 + $0x1f0] ss:$8 sps:$4 sm:$0xff]  }
 0x1e1   :  { %2310 = vmatpush2.bf16.msra.mxu0 %v3918_v6  ;;  %2349 = vmatpush2.bf16.msra.mxu1 %v3921_v7  ;;  %v4019_v6 = vld [vmem:[#allocation11 + $0x1e4] ss:$8 sps:$4 sm:$0xff]   ;;  %v3981_v7 = vld [vmem:[#allocation11 + $0xa0] ss:$8 sps:$4 sm:$0xff]  }
 0x1e2   :  { %2311 = vmatprep.subr.bf16.mxu0 %v3926_v35  ;;  %2350 = vmatprep.subr.bf16.mxu1 %v3929_v48  ;;  %v3986_v48 = vld [vmem:[#allocation11 + $0x94] ss:$8 sps:$4 sm:$0xff]  }
 0x1e5   :  { %2312 = vmatpush2.bf16.msra.mxu0 %v3924_v9  ;;  %2351 = vmatpush2.bf16.msra.mxu1 %v3927_v10  ;;  %v4017_v9 = vld [vmem:[#allocation11 + $0x1e0] ss:$8 sps:$4 sm:$0xff]   ;;  %v4022_v10 = vld [vmem:[#allocation11 + $0x1d4] ss:$8 sps:$4 sm:$0xff]  }
 0x1e6   :  { %2313 = vmatprep.subr.bf16.mxu0 %v3932_v11  ;;  %2352 = vmatprep.subr.bf16.mxu1 %v3935_v62  ;;  %v3984_v11 = vld [vmem:[#allocation11 + $0x90] ss:$8 sps:$4 sm:$0xff]  }
 0x1e9   :  { %2314 = vmatpush2.bf16.msra.mxu0 %v3930_v12  ;;  %2353 = vmatpush2.bf16.msra.mxu1 %v3933_v14  ;;  %v3989_v12 = vld [vmem:[#allocation11 + $0x84] ss:$8 sps:$4 sm:$0xff]   ;;  %v4020_v14 = vld [vmem:[#allocation11 + $0x1d0] ss:$8 sps:$4 sm:$0xff]  }
 0x1ea   :  { %2354 = vmatprep.subr.bf16.mxu1 %v3938_v15  ;;  %2777 = vmatprep.subr.bf16.mxu0 %v3944_v16  ;;  %v3987_v15 = vld [vmem:[#allocation11 + $0x80] ss:$8 sps:$4 sm:$0xff]  }
 0x1ec   :  { %2316 = vmatmul.mubr.bf16.vlgmr.msra.gmra.mxu0 %v4382_v59  ;;  %v3954_v59 = vld [vmem:[#allocation11 + $0x30] ss:$8 sps:$4 sm:$0xff]   ;;  %v2059_v35 = vpop.f32.mrf.mxu0 }
 0x1ed   :  { %2355 = vmatpush2.bf16.msra.mxu1 %v3936_v17  ;;  %2778 = vmatpush1.bf16.msra.mxu0 %v3942_v19 }
 0x1ee   :  { %2356 = vmatprep.subr.bf16.mxu1 %v3941_v20  ;;  %2779 = vmatprep.subr.bf16.mxu0 %v3947_v21  ;;  %v2061_v62 = vpop.f32.mrf.mxu0 }
 0x1f0   :  { %v2063_v16 = vpop.f32.mrf.mxu0 }
 0x1f1   :  { %2357 = vmatpush2.bf16.msra.mxu1 %v3939_v22  ;;  %2780 = vmatpush1.bf16.msra.mxu0 %v3945_v1  ;;  %v4401_v22 = vld [vmem:[%s4432_s4] sm:$0xf] }
 0x1f2   :  { %2781 = vmatprep.subr.bf16.mxu0 %v3950_v18  ;;  %2820 = vmatprep.subr.bf16.mxu1 %v3992_v23  ;;  %v2065_v19 = vpop.f32.mrf.mxu0  ;;  %v4025_v1 = vld [vmem:[#allocation11 + $0x1c4] ss:$8 sps:$4 sm:$0xff]   ;;  %v4026_v23 = vld [vmem:[#allocation11 + $0x1b0] ss:$8 sps:$4 sm:$0xff]  }
 0x1f4   :  { %2359 = vmatmul.mubr.bf16.vlgmr.msra.gmra.mxu1 %v4388_v8  ;;  %v3998_v8 = vld [vmem:[#allocation11 + $0x154] ss:$8 sps:$4 sm:$0xff]   ;;  %v2102_v17 = vpop.f32.mrf.mxu1 }
 0x1f5   :  { %2782 = vmatpush1.bf16.msra.mxu0 %v3948_v44  ;;  %2821 = vmatpush1.bf16.msra.mxu1 %v3990_v29 }
 0x1f6   :  { %2783 = vmatprep.subr.bf16.mxu0 %v3953_v24  ;;  %2822 = vmatprep.subr.bf16.mxu1 %v3995_v30  ;;  %v2104_v20 = vpop.f32.mrf.mxu1  ;;  %v4023_v24 = vld [vmem:[#allocation11 + $0x1c0] ss:$8 sps:$4 sm:$0xff]  }
 0x1f8   :  { %v2106_v18 = vpop.f32.mrf.mxu1 }
 0x1f9   :  { %2784 = vmatpush1.bf16.msra.mxu0 %v3951_v25  ;;  %2823 = vmatpush1.bf16.msra.mxu1 %v3993_v32  ;;  %v732_v25 = vrot.slane %v4401_v22, %v4327_v39 }
 0x1fa   :  { %2785 = vmatprep.subr.bf16.mxu0 %v3956_v27  ;;  %2824 = vmatprep.subr.bf16.mxu1 %v3998_v8  ;;  %v728_v27 = vrot.slane %v4401_v22, %v4330_v40 }
 0x1fb   :  { %v2062_v30 = vadd.f32 %v2061_v62, %v732_v25  ;;  %v2066_v8 = vadd.f32 %v2065_v19, %v732_v25  ;;  %v4044_v62 = vld [vmem:[#allocation12 + $0x60] sm:$0xff]   ;;  %v740_v25 = vrot.slane %v4401_v22, %v156_v49 }
 0x1fd   :  { %2786 = vmatpush1.bf16.msra.mxu0 %v3954_v59  ;;  %2825 = vmatpush1.bf16.msra.mxu1 %v3996_v36  ;;  %v4028_v59 = vld [vmem:[#allocation11 + $0x1b4] ss:$8 sps:$4 sm:$0xff]   ;;  %v4031_v36 = vld [vmem:[#allocation11 + $0x1a4] ss:$8 sps:$4 sm:$0xff]  }
 0x1fe   :  { %2787 = vmatprep.subr.bf16.mxu0 %v3959_v28  ;;  %2826 = vmatprep.subr.bf16.mxu1 %v4001_v37  ;;  %v2108_v28 = vpop.f32.mrf.mxu1 }
 0x201   :  { %2788 = vmatpush1.bf16.msra.mxu0 %v3957_v31  ;;  %2827 = vmatpush1.bf16.msra.mxu1 %v3999_v45  ;;  %v2064_v31 = vadd.f32 %v2063_v16, %v728_v27  ;;  %v4029_v45 = vld [vmem:[#allocation11 + $0x1a0] ss:$8 sps:$4 sm:$0xff]  }
 0x202   :  { %2789 = vmatprep.subr.bf16.mxu0 %v3962_v61  ;;  %2828 = vmatprep.subr.bf16.mxu1 %v4004_v46  ;;  %v2060_v61 = vadd.f32 %v2059_v35, %v728_v27  ;;  %v2109_v46 = vadd.f32 %v2108_v28, %v2066_v8  ;;  %v4039_v35 = vld [vmem:[#allocation12 + $0x38] sm:$0xff]   ;;  %v736_v27 = vrot.slane %v4401_v22, %v152_v52 }
 0x204   :  { %v2103_v37 = vadd.f32 %v2102_v17, %v2060_v61 }
 0x205   :  { %2790 = vmatpush1.bf16.msra.mxu0 %v3960_v33  ;;  %2829 = vmatpush1.bf16.msra.mxu1 %v4002_v51  ;;  %v2105_v33 = vadd.f32 %v2104_v20, %v2062_v30 }
 0x206   :  { %2791 = vmatprep.subr.bf16.mxu0 %v3965_v34  ;;  %2830 = vmatprep.subr.bf16.mxu1 %v4007_v53  ;;  %v2107_v34 = vadd.f32 %v2106_v18, %v2064_v31 }
 0x209   :  { %2792 = vmatpush1.bf16.msra.mxu0 %v3963_v42  ;;  %2831 = vmatpush1.bf16.msra.mxu1 %v4005_v56 }
 0x20a   :  { %2793 = vmatprep.subr.bf16.mxu0 %v3968_v43  ;;  %2832 = vmatprep.subr.bf16.mxu1 %v4010_v57  ;;  %v4034_v57 = vld [vmem:[#allocation11 + $0x194] ss:$8 sps:$4 sm:$0xff]  }
 0x20d   :  { %2794 = vmatpush2.bf16.msra.mxu0 %v3966_v47  ;;  %2833 = vmatpush1.bf16.msra.mxu1 %v4008_v58  ;;  %v4032_v58 = vld [vmem:[#allocation11 + $0x190] ss:$8 sps:$4 sm:$0xff]  }
 0x20e   :  { %2795 = vmatprep.subr.bf16.mxu0 %v3971_v50  ;;  %2834 = vmatprep.subr.bf16.mxu1 %v4013_v60 }
 0x211   :  { %2796 = vmatpush2.bf16.msra.mxu0 %v3969_v54  ;;  %2835 = vmatpush1.bf16.msra.mxu1 %v4011_v2 }
 0x212   :  { %2797 = vmatprep.subr.bf16.mxu0 %v3974_v55  ;;  %2836 = vmatprep.subr.bf16.mxu1 %v4016_v41  ;;  %v4037_v41 = vld [vmem:[#allocation11 + $0x184] ss:$8 sps:$4 sm:$0xff]  }
 0x215   :  { %2798 = vmatpush2.bf16.msra.mxu0 %v3972_v13  ;;  %2837 = vmatpush2.bf16.msra.mxu1 %v4014_v5 }
 0x216   :  { %2799 = vmatprep.subr.bf16.mxu0 %v3977_v26  ;;  %2838 = vmatprep.subr.bf16.mxu1 %v4019_v6 }
 0x219   :  { %2800 = vmatpush2.bf16.msra.mxu0 %v3975_v63  ;;  %2839 = vmatpush2.bf16.msra.mxu1 %v4017_v9  ;;  %v4041_v9 = vld [vmem:[#allocation12 + $0x30] sm:$0xff]  }
 0x21a   :  { %2801 = vmatprep.subr.bf16.mxu0 %v3980_v0  ;;  %2840 = vmatprep.subr.bf16.mxu1 %v4022_v10  ;;  %v4042_v10 = vld [vmem:[#allocation12 + $0x68] sm:$0xff]  }
 0x21d   :  { %2802 = vmatpush2.bf16.msra.mxu0 %v3978_v3  ;;  %2841 = vmatpush2.bf16.msra.mxu1 %v4020_v14  ;;  %v4046_v14 = vld [vmem:[#allocation12 + $0x58] sm:$0xff]  }
 0x21e   :  { %2803 = vmatprep.subr.bf16.mxu0 %v3983_v4  ;;  %2842 = vmatprep.subr.bf16.mxu1 %v4025_v1  ;;  %v4035_v4 = vld [vmem:[#allocation11 + $0x180] ss:$8 sps:$4 sm:$0xff]  }
 0x221   :  { %2804 = vmatpush2.bf16.msra.mxu0 %v3981_v7  ;;  %2843 = vmatpush2.bf16.msra.mxu1 %v4023_v24  ;;  %v4038_v7 = vld [vmem:[#allocation12 + $0x78] sm:$0xff]  }
 0x222   :  { %2805 = vmatprep.subr.bf16.mxu0 %v3986_v48  ;;  %2844 = vmatprep.subr.bf16.mxu1 %v4028_v59  ;;  %v4040_v48 = vld [vmem:[#allocation12 + $0x70] sm:$0xff]  }
 0x225   :  { %2806 = vmatpush2.bf16.msra.mxu0 %v3984_v11  ;;  %2845 = vmatpush2.bf16.msra.mxu1 %v4026_v23  ;;  %v4043_v11 = vld [vmem:[#allocation12 + $0x28] sm:$0xff]  }
 0x226   :  { %2807 = vmatprep.subr.bf16.mxu0 %v3989_v12  ;;  %2846 = vmatprep.subr.bf16.mxu1 %v4031_v36  ;;  %v4045_v12 = vld [vmem:[#allocation12 + $0x20] sm:$0xff]  }
 0x229   :  { %2808 = vmatpush2.bf16.msra.mxu0 %v3987_v15  ;;  %2847 = vmatpush2.bf16.msra.mxu1 %v4029_v45  ;;  %v4047_v15 = vld [vmem:[#allocation12 + $0x18] sm:$0xff]  }
 0x22a   :  { %2848 = vmatprep.subr.bf16.mxu1 %v4034_v57  ;;  %3506 = vmatprep.subr.bf16.mxu0 %v4038_v7 }
 0x22c   :  { %v2145_v21 = vpop.f32.mrf.mxu0 }
 0x22d   :  { %v2146_v51 = vadd.f32 %v2145_v21, %v2103_v37  ;;  %2849 = vmatpush2.bf16.msra.mxu1 %v4032_v58  ;;  %v4050_v58 = vld [vmem:[#allocation12 + $0x48] sm:$0xff]  }
 0x22e   :  { %v2147_v44 = vpop.f32.mrf.mxu0  ;;  %2850 = vmatprep.subr.bf16.mxu1 %v4037_v41 }
 0x22f   :  { %v2148_v47 = vadd.f32 %v2147_v44, %v2105_v33 }
 0x230   :  { %v2149_v29 = vpop.f32.mrf.mxu0 }
 0x231   :  { %v2150_v50 = vadd.f32 %v2149_v29, %v2107_v34  ;;  %2851 = vmatpush2.bf16.msra.mxu1 %v4035_v4 }
 0x232   :  { %v2151_v42 = vpop.f32.mrf.mxu0 }
 0x233   :  { %v2152_v54 = vadd.f32 %v2151_v42, %v2109_v46 }
 0x234   :  { %v2188_v32 = vpop.f32.mrf.mxu1 }
 0x235   :  { %v2189_v13 = vadd.f32 %v2188_v32, %v2146_v51 }
 0x236   :  { %v2190_v43 = vpop.f32.mrf.mxu1 }
 0x237   :  { %v2191_v55 = vadd.f32 %v2190_v43, %v2148_v47  ;;  %v2369_v3 = vmax.f32 %v2189_v13, 0.0  ;;  %v4048_v13 = vld [vmem:[#allocation12 + $0x50] sm:$0xff]  }
 0x238   :  { %v2192_v53 = vpop.f32.mrf.mxu1 }
 0x239   :  { %v2193_v56 = vadd.f32 %v2192_v53, %v2150_v50  ;;  %v2370_v0 = vmax.f32 %v2191_v55, 0.0 }
 0x23a   :  { %v2194_v26 = vpop.f32.mrf.mxu1 }
 0x23b   :  { %v2195_v60 = vadd.f32 %v2194_v26, %v2152_v54  ;;  %v2373_v63 = vmax.f32 %v2193_v56, 0.0  ;;  %v4049_v26 = vld [vmem:[#allocation12 + $0x10] sm:$0xff]  }
 0x23d   :  { %v2374_v2 = vmax.f32 %v2195_v60, 0.0  ;;  %v2377_v6 = vpack.c.bf16 %v2373_v63, %v2369_v3  ;;  %v4051_v60 = vld [vmem:[#allocation12 + $0x8] sm:$0xff]   ;;  %v4052_v63 = vld [vmem:[#allocation12 + $0x40] sm:$0xff]  }
 0x23e   :  { %v2445_v3 = vld [vmem:[%s4434_s6] sm:$0x3] }
 0x23f   :  { %v2378_v5 = vpack.c.bf16 %v2374_v2, %v2370_v0  ;;  %v4053_v0 = vld [vmem:[#allocation12] sm:$0xff]  }
 0x241   :  { %2809 = vmatprep.mubr.bf16.mxu0 %v2378_v5  ;;  %v2454_v5 = vrot.slane %v2445_v3, %v4327_v39 }
 0x242   :  { %2810 = vmatmul.mubr.bf16.vlgmr.msra.gmra.mxu0 %v2377_v6  ;;  %v2450_v6 = vrot.slane %v2445_v3, %v4330_v40 }
 0x243   :  { %3507 = vmatpush3.bf16.msra.mxu0 %v4039_v35 }
 0x244   :  { %3508 = vmatprep.subr.bf16.mxu0 %v4040_v48 }
 0x247   :  { %3509 = vmatpush3.bf16.msra.mxu0 %v4041_v9 }
 0x248   :  { %3510 = vmatprep.subr.bf16.mxu0 %v4042_v10 }
 0x24b   :  { %3511 = vmatpush3.bf16.msra.mxu0 %v4043_v11 }
 0x24c   :  { %3512 = vmatprep.subr.bf16.mxu0 %v4044_v62 }
 0x24f   :  { %3513 = vmatpush3.bf16.msra.mxu0 %v4045_v12 }
 0x250   :  { %3514 = vmatprep.subr.bf16.mxu0 %v4046_v14 }
 0x253   :  { %3515 = vmatpush3.bf16.msra.mxu0 %v4047_v15 }
 0x254   :  { %3516 = vmatprep.subr.bf16.mxu0 %v4048_v13 }
 0x257   :  { %3517 = vmatpush3.bf16.msra.mxu0 %v4049_v26 }
 0x258   :  { %3518 = vmatprep.subr.bf16.mxu0 %v4050_v58 }
 0x25b   :  { %3519 = vmatpush3.bf16.msra.mxu0 %v4051_v60 }
 0x25c   :  { %3520 = vmatprep.subr.bf16.mxu0 %v4052_v63 }
 0x25f   :  { %3521 = vmatpush3.bf16.msra.mxu0 %v4053_v0 }
 0x26c   :  { %v2231_v16 = vpop.f32.mrf.mxu0 }
 0x26d   :  { %v2232_v30 = vadd.f32 %v2231_v16, %v736_v27 }
 0x26e   :  { %v2233_v17 = vpop.f32.mrf.mxu0 }
 0x26f   :  { %v2234_v29 = vadd.f32 %v2233_v17, %v740_v25 }
 0x270   :  { %v2235_v19 = vpop.f32.mrf.mxu0 }
 0x271   :  { %v2236_v23 = vadd.f32 %v2235_v19, %v736_v27 }
 0x272   :  { %v2237_v21 = vpop.f32.mrf.mxu0 }
 0x273   :  { %v2238_v61 = vadd.f32 %v2237_v21, %v740_v25  ;;  %v3048_v25 = vld [vmem:[#allocation2] sm:$0x1] }
 0x274   :  { %v2274_v20 = vpop.f32.mrf.mxu1  ;;  %3051 = vperm.xlu0 %3556, %v3048_v25  }
 0x275   :  { %v2275_v33 = vadd.f32 %v2274_v20, %v2232_v30 }
 0x276   :  { %v2276_v1 = vpop.f32.mrf.mxu1 }
 0x277   :  { %v2277_v32 = vadd.f32 %v2276_v1, %v2234_v29 }
 0x278   :  { %v2278_v44 = vpop.f32.mrf.mxu1 }
 0x279   :  { %v2279_v8 = vadd.f32 %v2278_v44, %v2236_v23 }
 0x27a   :  { %v2280_v59 = vpop.f32.mrf.mxu1 }
 0x27b   :  { %v2281_v37 = vadd.f32 %v2280_v59, %v2238_v61 }
 0x2ac   :  { %v2317_v18 = vpop.f32.mrf.mxu0 }
 0x2ad   :  { %v2318_v49 = vadd.f32 %v2317_v18, %v2275_v33 }
 0x2ae   :  { %v2319_v24 = vpop.f32.mrf.mxu0 }
 0x2af   :  { %v2320_v42 = vadd.f32 %v2319_v24, %v2277_v32  ;;  %v4219_v24 = vmov 0.0  }
 0x2b0   :  { %v2321_v28 = vpop.f32.mrf.mxu0  ;;  %3531 = vmatprep.subr.mxu1 %v4219_v24 }
 0x2b1   :  { %v2322_v43 = vadd.f32 %v2321_v28, %v2279_v8 }
 0x2b2   :  { %v2323_v34 = vpop.f32.mrf.mxu0 }
 0x2b3   :  { %v2324_v38 = vadd.f32 %v2323_v34, %v2281_v37  ;;  %v3047_v34 = vld [vmem:[%s4437_s9] sm:$0x1] }
 0x2b4   :  { %v2360_v31 = vpop.f32.mrf.mxu1 }
 0x2b5   :  { %v2361_v22 = vadd.f32 %v2360_v31, %v2318_v49  ;;  %v3489_v31 = vld [vmem:[%s4436_s8] ss:$0 sm:$0xff]  ;;  %s4174_s8 = scalar_lea.vmem %s3137_s17, 16 }
 0x2b6   :  { %v2362_v36 = vpop.f32.mrf.mxu1  ;;  %p4175_p2 = scmp.ne.s32.totalorder %s3137_s17, %s4174_s8  ;;  %p4180_p4 = scmp.lt.s32.totalorder %s4178_s18, %s4174_s8 }
 0x2b7   :  { %v2363_v46 = vadd.f32 %v2362_v36, %v2320_v42  ;;  %v2371_v55 = vmax.f32 %v2361_v22, 0.0 }
 0x2b8   :  { %v2364_v45 = vpop.f32.mrf.mxu1  ;;  %p4181_p5 = por %p4180_p4, %p4179_p3 }
 0x2b9   :  { %v2365_v52 = vadd.f32 %v2364_v45, %v2322_v43  ;;  %v2372_v53 = vmax.f32 %v2363_v46, 0.0 }
 0x2ba   :  { %v2366_v47 = vpop.f32.mrf.mxu1  ;;  %p4182_p6 = pnand %p4181_p5, %p4175_p2 }
 0x2bb   :  { %v2367_v50 = vadd.f32 %v2366_v47, %v2324_v38  ;;  %v2375_v51 = vmax.f32 %v2365_v52, 0.0 }
 0x2bd   :  { %v2376_v54 = vmax.f32 %v2367_v50, 0.0  ;;  %v2379_v57 = vpack.c.bf16 %v2375_v51, %v2371_v55 }
 0x2bf   :  { %v2380_v56 = vpack.c.bf16 %v2376_v54, %v2372_v53 }
 0x2c1   :  { %2852 = vmatprep.mubr.bf16.mxu1 %v2380_v56 }
 0x2c2   :  { %2853 = vmatmul.mubr.bf16.vlgmr.msra.gmra.mxu1 %v2379_v57 }
 0x2c3   :  { %3535 = vmatprep.mubr.msk.f32.mxu1 %vm4220_vm1, %v4219_v24 }
 0x2ef   :  { %v3052_v36 = vpop.permute.xlu0 %3051 }
 0x2f0   :  { %v3057_v37 = vrot.slane %v3052_v36, %v4330_v40 }
 0x302   :  { %v2811_v2 = vpop.f32.mrf.mxu0 }
 0x303   :  { %v2812_v11 = vadd.f32 %v2811_v2, %v2450_v6 }
 0x304   :  { %v2813_v41 = vpop.f32.mrf.mxu0 }
 0x305   :  { %v2814_v9 = vadd.f32 %v2813_v41, %v2454_v5 }
 0x306   :  { %v2815_v4 = vpop.f32.mrf.mxu0 }
 0x307   :  { %v2816_v10 = vadd.f32 %v2815_v4, %v2450_v6 }
 0x308   :  { %v2817_v35 = vpop.f32.mrf.mxu0 }
 0x309   :  { %v2818_v12 = vadd.f32 %v2817_v35, %v2454_v5 }
 0x382   :  { %v2854_v7 = vpop.f32.mrf.mxu1 }
 0x383   :  { %v2855_v16 = vadd.f32 %v2854_v7, %v2812_v11 }
 0x384   :  { %v2856_v48 = vpop.f32.mrf.mxu1 }
 0x385   :  { %v2857_v14 = vadd.f32 %v2856_v48, %v2814_v9  ;;  %v2863_v18 = vmax.f32 %v2855_v16, 0.0 }
 0x386   :  { %v2858_v62 = vpop.f32.mrf.mxu1 }
 0x387   :  { %v2859_v15 = vadd.f32 %v2858_v62, %v2816_v10  ;;  %v2864_v21 = vmax.f32 %v2857_v14, 0.0 }
 0x388   :  { %v2860_v17 = vpop.f32.mrf.mxu1 }
 0x389   :  { %v2861_v19 = vadd.f32 %v2860_v17, %v2818_v12  ;;  %v2865_v20 = vmax.f32 %v2859_v15, 0.0 }
 0x38b   :  { %v2866_v1 = vmax.f32 %v2861_v19, 0.0  ;;  %v2867_v44 = vpack.c.bf16 %v2865_v20, %v2863_v18 }
 0x38d   :  { %v2868_v39 = vpack.c.bf16 %v2866_v1, %v2864_v21 }
 0x38f   :  { %3036 = vmatprep.mubr.bf16.mxu0 %v2868_v39 }
 0x390   :  { %3037 = vmatmul.mubr.bf16.vlgmr.msra.gmra.mxu0 %v2867_v44 }
 0x450   :  { %v3522_v27 = vpop.f32.mrf.mxu0 }
 0x452   :  { %v3523_v59 = vpop.f32.mrf.mxu0 }
 0x453   :  { %v3524_v23 = vadd.f32 %v3523_v59, %v3522_v27 }
 0x454   :  { %v3525_v28 = vpop.f32.mrf.mxu0 }
 0x455   :  { %v3039_v32 = vadd.f32 %v3524_v23, %v3489_v31 }
 0x456   :  { %v3526_v29 = vpop.f32.mrf.mxu0 }
 0x457   :  { %v3527_v30 = vadd.f32 %v3526_v29, %v3525_v28  ;;  %v3045_v33 = vmax.f32 %v3039_v32, 0.0 }
 0x459   :  { %v3042_v61 = vadd.f32 %v3527_v30, %v3489_v31 }
 0x45b   :  { %v3046_v8 = vmax.f32 %v3042_v61, 0.0 }
 0x45d   :  { %3532 = vmatpush3.xpose.msra.mxu1 %v3046_v8 }
 0x45e   :  { %3533 = vmatprep.subr.mxu1 %v4219_v24 }
 0x461   :  { %3534 = vmatpush3.xpose.msra.mxu1 %v3045_v33 }
 0x464   :  { %3536 = vmatmul.mubr.f32.vlgmr.msra.gmra.mxu1 %v3047_v34 }
 0x524   :  { %v3124_v42 = vpop.f32.mrf.mxu1 }
 0x525   :  { %v3125_v43 = vadd.f32 %v3124_v42, %v3057_v37 }
 0x526   :  { %v3537_v49 = vpop.f32.mrf.mxu1 }
 0x527   :  { %3129 = vst.msk [vmem:[#allocation14] sm:$0x1] %vm3128_vm2, %v3125_v43 }
 0x528   :  { %4185 = shalt.err (!%p4182_p6)
}
 0x529   :  { %3139 = dma.vmem_to_hbm [thread:$0]  %s3137_s17, 16, %s4439_s11, [#allocation5]  }
 0x52a   :  { %4202 = dma.done.wait [#allocation5], 16  }
 0x52b   :  { %4203 = vsyncadd [#allocation5], 4294967280 }
 0x52c   :  { %3143 = vsyncpa [#allocation4], 1 }
 0x52d   :  { %3144 = vsyncpa [#allocation7], 1 }
 0x52e   :  { %3145 = vsyncpa [#allocation10], 1 }
 0x52f   :  { %3146 = vsyncpa [#allocation13], 1 }
 0x530   :  { %3147 = vsyncpa [#allocation5], 1 }

// kernel: tpu_custom_call.1
= control target key start
LH: loop header
LB: loop body
LE: loop exit
PB: predicated region body
PF: predicated region fallthrough
CT: control target
= control target key end

     0   :  { %s4428_s0 = inlined_call_operand.hbm [shape: bf16[16,32], index: 0, kind: input, shape index: {}]   ;;  %s4429_s1 = inlined_call_operand.hbm [shape: bf16[32,1024], index: 1, kind: input, shape index: {}]   ;;  %s4430_s2 = inlined_call_operand.hbm [shape: f32[1,1024], index: 2, kind: input, shape index: {}]   ;;  %s4431_s3 = inlined_call_operand.hbm [shape: bf16[1024,512], index: 3, kind: input, shape index: {}]   ;;  %s4432_s4 = inlined_call_operand.vmem [shape: f32[1,512], index: 4, kind: input, shape index: {}]   ;;  %s4433_s5 = inlined_call_operand.hbm [shape: bf16[512,256], index: 5, kind: input, shape index: {}]   ;;  %s4434_s6 = inlined_call_operand.vmem [shape: f32[1,256], index: 6, kind: input, shape index: {}]   ;;  %s4435_s7 = inlined_call_operand.hbm [shape: bf16[256,128], index: 7, kind: input, shape index: {}]   ;;  %s4436_s8 = inlined_call_operand.vmem [shape: f32[1,128], index: 8, kind: input, shape index: {}]   ;;  %s4437_s9 = inlined_call_operand.vmem [shape: f32[1,128], index: 9, kind: input, shape index: {}]   ;;  %s4438_s10 = inlined_call_operand.<no memory space> [shape: f32[1,1], index: 10, kind: input, shape index: {}]   ;;  %s4439_s11 = inlined_call_operand.hbm [shape: f32[1,16], index: 11, kind: output, shape index: {}]  }
   0x1   :  { %v16_v0 = vstv %s4438_s10 }
   0x2   :  { %17 = vst [vmem:[#allocation2] sm:$0x1] %v16_v0 }
   0x3   :  { %18 = vsyncpa [#allocation4], 0 }
   0x4   :  { %19 = vsyncpa [#allocation7], 0 }
   0x5   :  { %20 = vsyncpa [#allocation10], 0 }
   0x6   :  { %21 = vsyncpa [#allocation13], 0 }
   0x7   :  { %22 = vsyncpa [#allocation5], 0  ;;  %s4204_s19 = smov [#allocation6]  }
   0x8   :  { %s40_s20 = sshll.u32 %s4204_s19, 4  ;;  %s41_s20 = int_to_ptr.vmem [resolvable:$true] %s40_s20 }
   0x9   :  { %s4062_s21 = scalar_lea.vmem %s41_s20, 2048  ;;  %p4067_p1 = scmp.lt.s32.totalorder %s41_s20, %s41_s20 }
   0xa   :  { %p4063_p0 = scmp.ne.s32.totalorder %s41_s20, %s4062_s21  ;;  %p4068_p2 = scmp.lt.s32.totalorder %s4062_s21, %s4062_s21 }
   0xc   :  { %p4069_p3 = por %p4068_p2, %p4067_p1 }
   0xe   :  { %p4070_p4 = pnand %p4069_p3, %p4063_p0 }
  0x10   :  { %4073 = shalt.err (!%p4070_p4)
}
  0x11   :  { %s4205_s22 = smov 512   ;;  %s4206_s23 = smov 32  }
  0x12   :  { %46 = dma.hbm_to_vmem [thread:$0]  %s4429_s1, 2048, %s41_s20, [#allocation7], %s4205_s22, %s4205_s22, %s4206_s23  }
  0x13   :  { %s4207_s25 = smov [#allocation9]  }
  0x14   :  { %s62_s26 = sshll.u32 %s4207_s25, 4  ;;  %s63_s26 = int_to_ptr.vmem [resolvable:$true] %s62_s26 }
  0x15   :  { %s4082_s27 = scalar_lea.vmem %s63_s26, 32768  ;;  %p4087_p6 = scmp.lt.s32.totalorder %s63_s26, %s63_s26 }
  0x16   :  { %p4083_p5 = scmp.ne.s32.totalorder %s63_s26, %s4082_s27  ;;  %p4088_p7 = scmp.lt.s32.totalorder %s4082_s27, %s4082_s27 }
  0x18   :  { %p4089_p8 = por %p4088_p7, %p4087_p6 }
  0x1a   :  { %p4090_p9 = pnand %p4089_p8, %p4083_p5 }
  0x1c   :  { %4093 = shalt.err (!%p4090_p9)
}
  0x1d   :  { %s4208_s28 = smov 256   ;;  %s4209_s29 = smov 16  }
  0x1e   :  { %68 = dma.hbm_to_vmem [thread:$0]  %s4431_s3, 32768, %s63_s26, [#allocation10], %s4208_s28, %s4208_s28, %s4209_s29  }
  0x1f   :  { %s4210_s13 = smov [#allocation3]  }
  0x20   :  { %s28_s14 = sshll.u32 %s4210_s13, 4  ;;  %s29_s14 = int_to_ptr.vmem [resolvable:$true] %s28_s14 }
  0x21   :  { %s4102_s1 = scalar_lea.vmem %s29_s14, 128  ;;  %p4107_p11 = scmp.lt.s32.totalorder %s29_s14, %s29_s14 }
  0x22   :  { %p4103_p10 = scmp.ne.s32.totalorder %s29_s14, %s4102_s1  ;;  %p4108_p12 = scmp.lt.s32.totalorder %s4102_s1, %s4102_s1 }
  0x24   :  { %p4109_p13 = por %p4108_p12, %p4107_p11 }
  0x26   :  { %p4110_p0 = pnand %p4109_p13, %p4103_p10 }
  0x28   :  { %4113 = shalt.err (!%p4110_p0)
}
  0x29   :  { %s4211_s15 = smov 64   ;;  %s4212_s16 = smov 4  }
  0x2a   :  { %34 = dma.hbm_to_vmem [thread:$0]  %s4428_s0, 128, %s29_s14, [#allocation4], %s4211_s15, %s4211_s15, %s4212_s16  }
  0x2b   :  { %s4213_s3 = smov [#allocation8]   ;;  %s4214_s20 = smov [#allocation11]  }
  0x2c   :  { %s53_s19 = sshll.u32 %s4213_s3, 4  ;;  %s76_s21 = sshll.u32 %s4214_s20, 4  ;;  %s54_s19 = int_to_ptr.vmem [resolvable:$true] %s53_s19  ;;  %s77_s21 = int_to_ptr.vmem [resolvable:$true] %s76_s21 }
  0x2d   :  { %s4122_s22 = scalar_lea.vmem %s54_s19, 128  ;;  %p4127_p2 = scmp.lt.s32.totalorder %s54_s19, %s54_s19 }
  0x2e   :  { %p4123_p1 = scmp.ne.s32.totalorder %s54_s19, %s4122_s22  ;;  %p4128_p3 = scmp.lt.s32.totalorder %s4122_s22, %s4122_s22 }
  0x30   :  { %p4129_p4 = por %p4128_p3, %p4127_p2 }
  0x32   :  { %p4130_p5 = pnand %p4129_p4, %p4123_p1 }
  0x34   :  { %4133 = shalt.err (!%p4130_p5)
}
  0x35   :  { %56 = dma.hbm_to_vmem [thread:$0]  %s4430_s2, 128, %s54_s19, [#allocation7]  }
  0x36   :  { %s4142_s10 = scalar_lea.vmem %s77_s21, 8192  ;;  %p4147_p7 = scmp.lt.s32.totalorder %s77_s21, %s77_s21 }
  0x37   :  { %p4143_p6 = scmp.ne.s32.totalorder %s77_s21, %s4142_s10  ;;  %p4148_p8 = scmp.lt.s32.totalorder %s4142_s10, %s4142_s10 }
  0x39   :  { %p4149_p9 = por %p4148_p8, %p4147_p7 }
  0x3b   :  { %p4150_p10 = pnand %p4149_p9, %p4143_p6 }
  0x3d   :  { %4153 = shalt.err (!%p4150_p10)
}
  0x3e   :  { %s4215_s0 = smov 128   ;;  %s4216_s25 = smov 8  }
  0x3f   :  { %82 = dma.hbm_to_vmem [thread:$0]  %s4433_s5, 8192, %s77_s21, [#allocation10], %s4215_s0, %s4215_s0, %s4216_s25  }
  0x40   :  { %s4217_s28 = smov [#allocation12]  }
  0x41   :  { %s90_s29 = sshll.u32 %s4217_s28, 4  ;;  %s91_s29 = int_to_ptr.vmem [resolvable:$true] %s90_s29 }
  0x42   :  { %s4162_s30 = scalar_lea.vmem %s91_s29, 2048  ;;  %p4167_p12 = scmp.lt.s32.totalorder %s91_s29, %s91_s29 }
  0x43   :  { %p4163_p11 = scmp.ne.s32.totalorder %s91_s29, %s4162_s30  ;;  %p4168_p13 = scmp.lt.s32.totalorder %s4162_s30, %s4162_s30 }
  0x45   :  { %p4169_p0 = por %p4168_p13, %p4167_p12 }
  0x47   :  { %p4170_p1 = pnand %p4169_p0, %p4163_p11 }
  0x49   :  { %4173 = shalt.err (!%p4170_p1)
}
  0x4a   :  { %96 = dma.hbm_to_vmem [thread:$0]  %s4435_s7, 2048, %s91_s29, [#allocation13], %s4211_s15, %s4211_s15, %s4212_s16  }
  0x4b   :  { %4194 = dma.done.wait [#allocation4], 128  }
  0x4c   :  { %4195 = vsyncadd [#allocation4], 4294967168 }
  0x4d   :  { %4196 = dma.done.wait [#allocation7], 2176  }
  0x4e   :  { %4197 = vsyncadd [#allocation7], 4294965120 }
  0x4f   :  { %4198 = dma.done.wait [#allocation10], 40960  }
  0x50   :  { %4199 = vsyncadd [#allocation10], 4294926336 }
  0x51   :  { %4200 = dma.done.wait [#allocation13], 2048  }
  0x52   :  { %4201 = vsyncadd [#allocation13], 4294965248  ;;  %v4218_v1 = vmov 0   ;;  %v132_v2 = vld [vmem:[#allocation6 + $0x40] sm:$0xff]  ;;  %v133_v9 = vld [vmem:[#allocation6 + $0x48] sm:$0xff]  ;;  %vm267_vm0 = vcmask 261120  }
  0x53   :  { %303 = vmatprep.mubr.bf16.mxu1 %v4218_v1  ;;  %3556 = vset.pattern.permute.xlu0 %v4218_v1  ;;  %v136_v3 = vld [vmem:[#allocation6 + $0x60] sm:$0xff]  ;;  %v137_v10 = vld [vmem:[#allocation6 + $0x68] sm:$0xff]  ;;  %v4311_v12 = vld [vmem:[#allocation3] sm:$0xff]   ;;  %vm4220_vm1 = vmmov 0   ;;  %s4221_s16 = smov [#allocation14]   ;;  %vm3128_vm2 = vcmask 122880  }
  0x54   :  { %v124_v4 = vld [vmem:[#allocation6] sm:$0xff]  ;;  %v3158_v5 = vcombine.high %v132_v2, %v136_v3  ;;  %v3157_v6 = vcombine.low %v132_v2, %v136_v3  ;;  %v3160_v13 = vcombine.high %v133_v9, %v137_v10  ;;  %v125_v14 = vld [vmem:[#allocation6 + $0x8] sm:$0xff]  ;;  %v3159_v18 = vcombine.low %v133_v9, %v137_v10  ;;  %v134_v19 = vld [vmem:[#allocation6 + $0x50] sm:$0xff]  ;;  %s3136_s17 = sshll.u32 %s4221_s16, 4  ;;  %s3137_s17 = int_to_ptr.vmem [resolvable:$true] %s3136_s17 }
  0x55   :  { %v128_v7 = vld [vmem:[#allocation6 + $0x20] sm:$0xff]  ;;  %v129_v15 = vld [vmem:[#allocation6 + $0x28] sm:$0xff]  ;;  %v138_v22 = vld [vmem:[#allocation6 + $0x70] sm:$0xff]  ;;  %s4178_s18 = scalar_lea.vmem %s3137_s17, 32  ;;  %p4179_p3 = scmp.lt.s32.totalorder %s3137_s17, %s3137_s17 }
  0x56   :  { %v3150_v8 = vcombine.high %v124_v4, %v128_v7  ;;  %283 = vmatprep.subr.bf16.mxu1 %v3158_v5  ;;  %v3149_v11 = vcombine.low %v124_v4, %v128_v7  ;;  %v3558_v16 = vld [vmem:[#allocation9 + $0xe4] ss:$16 sps:$4 sm:$0xff]   ;;  %v3560_v17 = vld [vmem:[#allocation9 + $0xe0] ss:$16 sps:$4 sm:$0xff]   ;;  %v3152_v21 = vcombine.high %v125_v14, %v129_v15  ;;  %v3151_v25 = vcombine.low %v125_v14, %v129_v15  ;;  %v126_v27 = vld [vmem:[#allocation6 + $0x10] sm:$0xff] }
  0x57   :  { %284 = vmatpush1.bf16.msra.mxu1 %v3157_v6  ;;  %v3561_v20 = vld [vmem:[#allocation9 + $0xc4] ss:$16 sps:$4 sm:$0xff]   ;;  %2025 = vmatprep.subr.bf16.mxu0 %v3558_v16  ;;  %v3563_v23 = vld [vmem:[#allocation9 + $0xc0] ss:$16 sps:$4 sm:$0xff]   ;;  %v3162_v26 = vcombine.high %v134_v19, %v138_v22  ;;  %v130_v28 = vld [vmem:[#allocation6 + $0x30] sm:$0xff]  ;;  %v3161_v31 = vcombine.low %v134_v19, %v138_v22 }
  0x58   :  { %285 = vmatprep.subr.bf16.mxu1 %v3150_v8  ;;  %2026 = vmatpush1.bf16.msra.mxu0 %v3560_v17  ;;  %v3564_v24 = vld [vmem:[#allocation9 + $0xa4] ss:$16 sps:$4 sm:$0xff]   ;;  %v3569_v29 = vld [vmem:[#allocation9 + $0xa0] ss:$16 sps:$4 sm:$0xff]   ;;  %v3154_v33 = vcombine.high %v126_v27, %v130_v28  ;;  %v3153_v37 = vcombine.low %v126_v27, %v130_v28 }
  0x59   :  { %2027 = vmatprep.subr.bf16.mxu0 %v3561_v20  ;;  %v3570_v30 = vld [vmem:[#allocation9 + $0x84] ss:$16 sps:$4 sm:$0xff]   ;;  %v3575_v35 = vld [vmem:[#allocation9 + $0x80] ss:$16 sps:$4 sm:$0xff]  }
  0x5a   :  { %v135_v32 = vld [vmem:[#allocation6 + $0x58] sm:$0xff] }
  0x5b   :  { %286 = vmatpush1.bf16.msra.mxu1 %v3149_v11  ;;  %v139_v34 = vld [vmem:[#allocation6 + $0x78] sm:$0xff] }
  0x5c   :  { %326 = vmatprep.subr.bf16.mxu1 %v3160_v13  ;;  %2028 = vmatpush1.bf16.msra.mxu0 %v3563_v23  ;;  %v3576_v36 = vld [vmem:[#allocation9 + $0x64] ss:$16 sps:$4 sm:$0xff]   ;;  %v3164_v38 = vcombine.high %v135_v32, %v139_v34  ;;  %v3581_v41 = vld [vmem:[#allocation9 + $0x60] ss:$16 sps:$4 sm:$0xff]   ;;  %v3163_v43 = vcombine.low %v135_v32, %v139_v34 }
  0x5d   :  { %2029 = vmatprep.subr.bf16.mxu0 %v3564_v24  ;;  %v127_v39 = vld [vmem:[#allocation6 + $0x18] sm:$0xff] }
  0x5e   :  { %3165 = vmatmul.mubr.msk.bf16.vlgmr.msra.gmra.mxu1 %vm267_vm0, %v4311_v12  ;;  %v131_v40 = vld [vmem:[#allocation6 + $0x38] sm:$0xff] }
  0x5f   :  { %327 = vmatpush1.bf16.msra.mxu1 %v3159_v18  ;;  %346 = vmatprep.mubr.bf16.mxu1 %v4218_v1  ;;  %v3582_v42 = vld [vmem:[#allocation9 + $0x44] ss:$16 sps:$4 sm:$0xff]   ;;  %v3156_v44 = vcombine.high %v127_v39, %v131_v40  ;;  %v3587_v45 = vld [vmem:[#allocation9 + $0x40] ss:$16 sps:$4 sm:$0xff]   ;;  %v3155_v47 = vcombine.low %v127_v39, %v131_v40 }
  0x60   :  { %328 = vmatprep.subr.bf16.mxu1 %v3152_v21  ;;  %2030 = vmatpush1.bf16.msra.mxu0 %v3569_v29  ;;  %v3588_v46 = vld [vmem:[#allocation9 + $0x24] ss:$16 sps:$4 sm:$0xff]   ;;  %v3593_v49 = vld [vmem:[#allocation9 + $0x20] ss:$16 sps:$4 sm:$0xff]  }
  0x61   :  { %2031 = vmatprep.subr.bf16.mxu0 %v3570_v30  ;;  %v3568_v48 = vld [vmem:[#allocation9 + $0x2e4] ss:$16 sps:$4 sm:$0xff]   ;;  %v3566_v51 = vld [vmem:[#allocation9 + $0x2e0] ss:$16 sps:$4 sm:$0xff]  }
  0x62   :  { %v3594_v50 = vld [vmem:[#allocation9 + $0x4] ss:$16 sps:$4 sm:$0xff]   ;;  %v3599_v53 = vld [vmem:[#allocation9] ss:$16 sps:$4 sm:$0xff]  }
  0x63   :  { %329 = vmatpush1.bf16.msra.mxu1 %v3151_v25  ;;  %v3574_v52 = vld [vmem:[#allocation9 + $0x2c4] ss:$16 sps:$4 sm:$0xff]   ;;  %v3572_v55 = vld [vmem:[#allocation9 + $0x2c0] ss:$16 sps:$4 sm:$0xff]  }
  0x64   :  { %369 = vmatprep.subr.bf16.mxu1 %v3162_v26  ;;  %2032 = vmatpush1.bf16.msra.mxu0 %v3575_v35  ;;  %v3600_v54 = vld [vmem:[#allocation9 + $0x1e4] ss:$16 sps:$4 sm:$0xff]   ;;  %v3578_v57 = vld [vmem:[#allocation9 + $0x2a0] ss:$16 sps:$4 sm:$0xff]  }
  0x65   :  { %2033 = vmatprep.subr.bf16.mxu0 %v3576_v36  ;;  %v3580_v56 = vld [vmem:[#allocation9 + $0x2a4] ss:$16 sps:$4 sm:$0xff]   ;;  %v3605_v58 = vld [vmem:[#allocation9 + $0x1e0] ss:$16 sps:$4 sm:$0xff]  }
  0x66   :  { %3166 = vmatmul.mubr.msk.bf16.vlgmr.msra.gmra.mxu1 %vm267_vm0, %v4311_v12  ;;  %v3606_v59 = vld [vmem:[#allocation9 + $0x1c4] ss:$16 sps:$4 sm:$0xff]   ;;  %v3611_v61 = vld [vmem:[#allocation9 + $0x1c0] ss:$16 sps:$4 sm:$0xff]  }
  0x67   :  { %370 = vmatpush1.bf16.msra.mxu1 %v3161_v31  ;;  %389 = vmatprep.mubr.bf16.mxu1 %v4218_v1  ;;  %v3586_v60 = vld [vmem:[#allocation9 + $0x284] ss:$16 sps:$4 sm:$0xff]   ;;  %v3584_v63 = vld [vmem:[#allocation9 + $0x280] ss:$16 sps:$4 sm:$0xff]  }
  0x68   :  { %371 = vmatprep.subr.bf16.mxu1 %v3154_v33  ;;  %2034 = vmatpush1.bf16.msra.mxu0 %v3581_v41  ;;  %v3612_v62 = vld [vmem:[#allocation9 + $0x1a4] ss:$16 sps:$4 sm:$0xff]   ;;  %v3590_v3 = vld [vmem:[#allocation9 + $0x260] ss:$16 sps:$4 sm:$0xff]   ;;  %v4332_v41 = vld [vmem:[#allocation8] sm:$0xff] }
  0x69   :  { %2035 = vmatprep.subr.bf16.mxu0 %v3582_v42  ;;  %v3592_v0 = vld [vmem:[#allocation9 + $0x264] ss:$16 sps:$4 sm:$0xff]   ;;  %v3623_v5 = vld [vmem:[#allocation9 + $0x180] ss:$16 sps:$4 sm:$0xff]  }
  0x6a   :  { %v3618_v2 = vld [vmem:[#allocation9 + $0x184] ss:$16 sps:$4 sm:$0xff]   ;;  %v3596_v7 = vld [vmem:[#allocation9 + $0x240] ss:$16 sps:$4 sm:$0xff]  }
  0x6b   :  { %372 = vmatpush1.bf16.msra.mxu1 %v3153_v37  ;;  %v3598_v4 = vld [vmem:[#allocation9 + $0x244] ss:$16 sps:$4 sm:$0xff]   ;;  %v3629_v9 = vld [vmem:[#allocation9 + $0x160] ss:$16 sps:$4 sm:$0xff]   ;;  %v142_v37 = vlaneseq }
  0x6c   :  { %412 = vmatprep.subr.bf16.mxu1 %v3164_v38  ;;  %2036 = vmatpush1.bf16.msra.mxu0 %v3587_v45  ;;  %v3624_v6 = vld [vmem:[#allocation9 + $0x164] ss:$16 sps:$4 sm:$0xff]   ;;  %v3602_v10 = vld [vmem:[#allocation9 + $0x220] ss:$16 sps:$4 sm:$0xff]  }
  0x6d   :  { %2037 = vmatprep.subr.bf16.mxu0 %v3588_v46  ;;  %v3604_v8 = vld [vmem:[#allocation9 + $0x224] ss:$16 sps:$4 sm:$0xff]   ;;  %v3614_v14 = vld [vmem:[#allocation9 + $0x3e0] ss:$16 sps:$4 sm:$0xff]   ;;  %v4324_v38 = vshrl.u32 %v142_v37, 7 }
  0x6e   :  { %3167 = vmatmul.mubr.msk.bf16.vlgmr.msra.gmra.mxu1 %vm267_vm0, %v4311_v12  ;;  %v3610_v11 = vld [vmem:[#allocation9 + $0x204] ss:$16 sps:$4 sm:$0xff]   ;;  %v3620_v16 = vld [vmem:[#allocation9 + $0x3c0] ss:$16 sps:$4 sm:$0xff]  }
  0x6f   :  { %413 = vmatpush1.bf16.msra.mxu1 %v3163_v43  ;;  %432 = vmatprep.mubr.bf16.mxu1 %v4218_v1  ;;  %v3617_v1 = vld [vmem:[#allocation9 + $0x1a0] ss:$16 sps:$4 sm:$0xff]   ;;  %v3616_v13 = vld [vmem:[#allocation9 + $0x3e4] ss:$16 sps:$4 sm:$0xff]   ;;  %v4327_v39 = vsub.s32 1, %v4324_v38  ;;  %v4330_v40 = vsub.s32 0, %v4324_v38 }
  0x70   :  { %414 = vmatprep.subr.bf16.mxu1 %v3156_v44  ;;  %2038 = vmatpush1.bf16.msra.mxu0 %v3593_v49  ;;  %v3622_v15 = vld [vmem:[#allocation9 + $0x3c4] ss:$16 sps:$4 sm:$0xff]   ;;  %v3626_v18 = vld [vmem:[#allocation9 + $0x3a0] ss:$16 sps:$4 sm:$0xff]   ;;  %v156_v49 = vsub.s32 3, %v4324_v38 }
  0x71   :  { %2039 = vmatprep.subr.bf16.mxu0 %v3594_v50  ;;  %v3628_v17 = vld [vmem:[#allocation9 + $0x3a4] ss:$16 sps:$4 sm:$0xff]   ;;  %v3632_v21 = vld [vmem:[#allocation9 + $0x380] ss:$16 sps:$4 sm:$0xff]   ;;  %v149_v43 = vrot.slane %v4332_v41, %v4327_v39  ;;  %v145_v44 = vrot.slane %v4332_v41, %v4330_v40 }
  0x72   :  { %v3630_v19 = vld [vmem:[#allocation9 + $0x144] ss:$16 sps:$4 sm:$0xff]   ;;  %v3635_v22 = vld [vmem:[#allocation9 + $0x140] ss:$16 sps:$4 sm:$0xff]  }
  0x73   :  { %415 = vmatpush1.bf16.msra.mxu1 %v3155_v47  ;;  %v3634_v20 = vld [vmem:[#allocation9 + $0x384] ss:$16 sps:$4 sm:$0xff]   ;;  %v3638_v25 = vld [vmem:[#allocation9 + $0x360] ss:$16 sps:$4 sm:$0xff]  }
  0x74   :  { %2068 = vmatprep.subr.bf16.mxu1 %v3568_v48  ;;  %2040 = vmatpush1.bf16.msra.mxu0 %v3599_v53  ;;  %v3636_v23 = vld [vmem:[#allocation9 + $0x124] ss:$16 sps:$4 sm:$0xff]   ;;  %v3641_v26 = vld [vmem:[#allocation9 + $0x120] ss:$16 sps:$4 sm:$0xff]  }
  0x75   :  { %2041 = vmatprep.subr.bf16.mxu0 %v3600_v54  ;;  %v3640_v24 = vld [vmem:[#allocation9 + $0x364] ss:$16 sps:$4 sm:$0xff]   ;;  %v3644_v29 = vld [vmem:[#allocation9 + $0x340] ss:$16 sps:$4 sm:$0xff]  }
  0x76   :  { %3168 = vmatmul.mubr.msk.bf16.vlgmr.msra.gmra.mxu1 %vm267_vm0, %v4311_v12  ;;  %v3608_v12 = vld [vmem:[#allocation9 + $0x200] ss:$16 sps:$4 sm:$0xff]   ;;  %v3642_v27 = vld [vmem:[#allocation9 + $0x104] ss:$16 sps:$4 sm:$0xff]  }
  0x77   :  { %2069 = vmatpush1.bf16.msra.mxu1 %v3566_v51  ;;  %v3646_v28 = vld [vmem:[#allocation9 + $0x344] ss:$16 sps:$4 sm:$0xff]   ;;  %v3647_v30 = vld [vmem:[#allocation9 + $0x100] ss:$16 sps:$4 sm:$0xff]  }
  0x78   :  { %2070 = vmatprep.subr.bf16.mxu1 %v3574_v52  ;;  %2042 = vmatpush2.bf16.msra.mxu0 %v3605_v58  ;;  %v3650_v31 = vld [vmem:[#allocation9 + $0x324] ss:$16 sps:$4 sm:$0xff]   ;;  %v3648_v33 = vld [vmem:[#allocation9 + $0x320] ss:$16 sps:$4 sm:$0xff]   ;;  %v152_v52 = vsub.s32 2, %v4324_v38  ;;  %v157_v58 = vrot.slane %v4332_v41, %v156_v49 }
  0x79   :  { %2043 = vmatprep.subr.bf16.mxu0 %v3606_v59  ;;  %v3653_v32 = vld [vmem:[#allocation9 + $0x4e4] ss:$16 sps:$4 sm:$0xff]   ;;  %v3654_v35 = vld [vmem:[#allocation9 + $0x300] ss:$16 sps:$4 sm:$0xff]  }
  0x7a   :  { %v3656_v34 = vld [vmem:[#allocation9 + $0x304] ss:$16 sps:$4 sm:$0xff]  }
  0x7b   :  { %2071 = vmatpush1.bf16.msra.mxu1 %v3572_v55  ;;  %v3665_v36 = vld [vmem:[#allocation9 + $0x6e4] ss:$16 sps:$4 sm:$0xff]  }
  0x7c   :  { %2072 = vmatprep.subr.bf16.mxu1 %v3580_v56  ;;  %2044 = vmatpush2.bf16.msra.mxu0 %v3611_v61 }
  0x7d   :  { %2045 = vmatprep.subr.bf16.mxu0 %v3612_v62 }
  0x7f   :  { %2073 = vmatpush1.bf16.msra.mxu1 %v3578_v57 }
  0x80   :  { %2074 = vmatprep.subr.bf16.mxu1 %v3586_v60  ;;  %2046 = vmatpush2.bf16.msra.mxu0 %v3617_v1  ;;  %v153_v60 = vrot.slane %v4332_v41, %v152_v52 }
  0x81   :  { %2047 = vmatprep.subr.bf16.mxu0 %v3618_v2 }
  0x83   :  { %2075 = vmatpush1.bf16.msra.mxu1 %v3584_v63  ;;  %v3651_v63 = vld [vmem:[#allocation9 + $0x4e0] ss:$16 sps:$4 sm:$0xff]  }
  0x84   :  { %2076 = vmatprep.subr.bf16.mxu1 %v3592_v0  ;;  %2048 = vmatpush2.bf16.msra.mxu0 %v3623_v5  ;;  %v164_v0 = vsub.s32 5, %v4324_v38 }
  0x85   :  { %2049 = vmatprep.subr.bf16.mxu0 %v3624_v6 }
  0x87   :  { %2077 = vmatpush1.bf16.msra.mxu1 %v3590_v3  ;;  %v3659_v3 = vld [vmem:[#allocation9 + $0x4c4] ss:$16 sps:$4 sm:$0xff]  }
  0x88   :  { %2078 = vmatprep.subr.bf16.mxu1 %v3598_v4  ;;  %2050 = vmatpush2.bf16.msra.mxu0 %v3629_v9  ;;  %v3657_v9 = vld [vmem:[#allocation9 + $0x4c0] ss:$16 sps:$4 sm:$0xff]  }
  0x89   :  { %2051 = vmatprep.subr.bf16.mxu0 %v3630_v19  ;;  %v3660_v19 = vld [vmem:[#allocation9 + $0x4a0] ss:$16 sps:$4 sm:$0xff]  }
  0x8b   :  { %2079 = vmatpush1.bf16.msra.mxu1 %v3596_v7 }
  0x8c   :  { %2080 = vmatprep.subr.bf16.mxu1 %v3604_v8  ;;  %2052 = vmatpush2.bf16.msra.mxu0 %v3635_v22  ;;  %v172_v22 = vsub.s32 7, %v4324_v38 }
  0x8d   :  { %2053 = vmatprep.subr.bf16.mxu0 %v3636_v23 }
  0x8f   :  { %2081 = vmatpush1.bf16.msra.mxu1 %v3602_v10  ;;  %v165_v10 = vrot.slane %v4332_v41, %v164_v0  ;;  %v3695_v0 = vld [vmem:[#allocation9 + $0x644] ss:$16 sps:$4 sm:$0xff]  }
  0x90   :  { %2082 = vmatprep.subr.bf16.mxu1 %v3610_v11  ;;  %2054 = vmatpush2.bf16.msra.mxu0 %v3641_v26 }
  0x91   :  { %2055 = vmatprep.subr.bf16.mxu0 %v3642_v27 }
  0x93   :  { %2083 = vmatpush1.bf16.msra.mxu1 %v3608_v12  ;;  %v3662_v12 = vld [vmem:[#allocation9 + $0x4a4] ss:$16 sps:$4 sm:$0xff]  }
  0x94   :  { %2084 = vmatprep.subr.bf16.mxu1 %v3616_v13  ;;  %2056 = vmatpush2.bf16.msra.mxu0 %v3647_v30 }
  0x95   :  { %2111 = vmatprep.subr.bf16.mxu0 %v3653_v32  ;;  %v173_v32 = vrot.slane %v4332_v41, %v172_v22  ;;  %v3722_v22 = vld [vmem:[#allocation9 + $0x564] ss:$16 sps:$4 sm:$0xff]  }
  0x97   :  { %2085 = vmatpush2.bf16.msra.mxu1 %v3614_v14 }
  0x98   :  { %2086 = vmatprep.subr.bf16.mxu1 %v3622_v15 }
  0x9b   :  { %2087 = vmatpush2.bf16.msra.mxu1 %v3620_v16 }
  0x9c   :  { %2088 = vmatprep.subr.bf16.mxu1 %v3628_v17 }
  0x9f   :  { %2089 = vmatpush2.bf16.msra.mxu1 %v3626_v18 }
  0xa0   :  { %2090 = vmatprep.subr.bf16.mxu1 %v3634_v20  ;;  %v3663_v20 = vld [vmem:[#allocation9 + $0x6e0] ss:$16 sps:$4 sm:$0xff]  }
  0xa3   :  { %2091 = vmatpush2.bf16.msra.mxu1 %v3632_v21 }
  0xa4   :  { %2092 = vmatprep.subr.bf16.mxu1 %v3640_v24  ;;  %v3668_v24 = vld [vmem:[#allocation9 + $0x484] ss:$16 sps:$4 sm:$0xff]  }
  0xa7   :  { %2093 = vmatpush2.bf16.msra.mxu1 %v3638_v25  ;;  %v3671_v25 = vld [vmem:[#allocation9 + $0x6c4] ss:$16 sps:$4 sm:$0xff]  }
  0xa8   :  { %2094 = vmatprep.subr.bf16.mxu1 %v3646_v28  ;;  %v3666_v28 = vld [vmem:[#allocation9 + $0x480] ss:$16 sps:$4 sm:$0xff]  }
  0xab   :  { %2095 = vmatpush2.bf16.msra.mxu1 %v3644_v29  ;;  %v3669_v29 = vld [vmem:[#allocation9 + $0x6c0] ss:$16 sps:$4 sm:$0xff]  }
  0xac   :  { %2096 = vmatprep.subr.bf16.mxu1 %v3650_v31 }
  0xaf   :  { %2097 = vmatpush2.bf16.msra.mxu1 %v3648_v33  ;;  %v3674_v33 = vld [vmem:[#allocation9 + $0x464] ss:$16 sps:$4 sm:$0xff]  }
  0xb0   :  { %2098 = vmatprep.subr.bf16.mxu1 %v3656_v34  ;;  %v3677_v34 = vld [vmem:[#allocation9 + $0x6a4] ss:$16 sps:$4 sm:$0xff]  }
  0xb3   :  { %2099 = vmatpush2.bf16.msra.mxu1 %v3654_v35 }
  0xb4   :  { %2154 = vmatprep.subr.bf16.mxu1 %v3665_v36 }
 0x11e   :  { %v305_v42 = vpop.f32.mrf.mxu1 }
 0x11f   :  { %v306_v50 = vadd.f32 %v305_v42, %v145_v44  ;;  %v3672_v42 = vld [vmem:[#allocation9 + $0x460] ss:$16 sps:$4 sm:$0xff]  }
 0x120   :  { %v307_v45 = vpop.f32.mrf.mxu1 }
 0x121   :  { %v308_v47 = vadd.f32 %v307_v45, %v149_v43  ;;  %v443_v59 = vmax.f32 %v306_v50, 0.0 }
 0x122   :  { %v309_v46 = vpop.f32.mrf.mxu1 }
 0x123   :  { %v310_v48 = vadd.f32 %v309_v46, %v145_v44  ;;  %v444_v56 = vmax.f32 %v308_v47, 0.0  ;;  %v3680_v46 = vld [vmem:[#allocation9 + $0x444] ss:$16 sps:$4 sm:$0xff]  }
 0x124   :  { %v311_v51 = vpop.f32.mrf.mxu1  ;;  %v3683_v47 = vld [vmem:[#allocation9 + $0x684] ss:$16 sps:$4 sm:$0xff]  }
 0x125   :  { %v312_v53 = vadd.f32 %v311_v51, %v149_v43  ;;  %v451_v54 = vmax.f32 %v310_v48, 0.0  ;;  %v3675_v43 = vld [vmem:[#allocation9 + $0x6a0] ss:$16 sps:$4 sm:$0xff]  }
 0x126   :  { %v348_v55 = vpop.f32.mrf.mxu1  ;;  %v3678_v51 = vld [vmem:[#allocation9 + $0x440] ss:$16 sps:$4 sm:$0xff]  }
 0x127   :  { %v452_v57 = vmax.f32 %v312_v53, 0.0  ;;  %v4349_v1 = vpack.c.bf16 %v451_v54, %v443_v59  ;;  %v349_v6 = vadd.f32 %v348_v55, %v153_v60  ;;  %v3681_v53 = vld [vmem:[#allocation9 + $0x680] ss:$16 sps:$4 sm:$0xff]  }
 0x128   :  { %v350_v61 = vpop.f32.mrf.mxu1  ;;  %v3684_v59 = vld [vmem:[#allocation9 + $0x420] ss:$16 sps:$4 sm:$0xff]  }
 0x129   :  { %v4346_v62 = vpack.c.bf16 %v452_v57, %v444_v56  ;;  %v351_v4 = vadd.f32 %v350_v61, %v157_v58  ;;  %v445_v16 = vmax.f32 %v349_v6, 0.0  ;;  %v3686_v56 = vld [vmem:[#allocation9 + $0x424] ss:$16 sps:$4 sm:$0xff]   ;;  %v3696_v6 = vld [vmem:[#allocation9 + $0x5e0] ss:$16 sps:$4 sm:$0xff]  }
 0x12a   :  { %v352_v2 = vpop.f32.mrf.mxu1  ;;  %v3689_v57 = vld [vmem:[#allocation9 + $0x664] ss:$16 sps:$4 sm:$0xff]  }
 0x12b   :  { %v353_v5 = vadd.f32 %v352_v2, %v153_v60  ;;  %2057 = vmatprep.mubr.bf16.mxu0 %v4346_v62  ;;  %v446_v14 = vmax.f32 %v351_v4, 0.0  ;;  %v3687_v60 = vld [vmem:[#allocation9 + $0x660] ss:$16 sps:$4 sm:$0xff]   ;;  %v3698_v4 = vld [vmem:[#allocation9 + $0x5e4] ss:$16 sps:$4 sm:$0xff]  }
 0x12c   :  { %v354_v7 = vpop.f32.mrf.mxu1  ;;  %2058 = vmatmul.mubr.bf16.vlgmr.msra.gmra.mxu0 %v4349_v1  ;;  %v3690_v2 = vld [vmem:[#allocation9 + $0x400] ss:$16 sps:$4 sm:$0xff]  }
 0x12d   :  { %v355_v8 = vadd.f32 %v354_v7, %v157_v58  ;;  %2112 = vmatpush1.bf16.msra.mxu0 %v3651_v63  ;;  %v453_v11 = vmax.f32 %v353_v5, 0.0  ;;  %v3692_v63 = vld [vmem:[#allocation9 + $0x404] ss:$16 sps:$4 sm:$0xff]   ;;  %v3699_v7 = vld [vmem:[#allocation9 + $0x620] ss:$16 sps:$4 sm:$0xff]  }
 0x12e   :  { %2113 = vmatprep.subr.bf16.mxu0 %v3659_v3  ;;  %v4354_v13 = vpop.f32.mrf.mxu1  ;;  %v3693_v3 = vld [vmem:[#allocation9 + $0x640] ss:$16 sps:$4 sm:$0xff]   ;;  %v3701_v5 = vld [vmem:[#allocation9 + $0x624] ss:$16 sps:$4 sm:$0xff]  }
 0x12f   :  { %v454_v15 = vmax.f32 %v355_v8, 0.0  ;;  %v4359_v23 = vpack.c.bf16 %v453_v11, %v445_v16  ;;  %v3704_v8 = vld [vmem:[#allocation9 + $0x5c4] ss:$16 sps:$4 sm:$0xff]   ;;  %v3705_v11 = vld [vmem:[#allocation9 + $0x600] ss:$16 sps:$4 sm:$0xff]  }
 0x130   :  { %v393_v17 = vpop.f32.mrf.mxu1  ;;  %v3711_v16 = vld [vmem:[#allocation9 + $0x7e0] ss:$16 sps:$4 sm:$0xff]  }
 0x131   :  { %v4356_v18 = vpack.c.bf16 %v454_v15, %v446_v14  ;;  %2114 = vmatpush1.bf16.msra.mxu0 %v3657_v9  ;;  %v394_v21 = vadd.f32 %v393_v17, %v165_v10  ;;  %v3707_v9 = vld [vmem:[#allocation9 + $0x604] ss:$16 sps:$4 sm:$0xff]   ;;  %v3708_v15 = vld [vmem:[#allocation9 + $0x5a0] ss:$16 sps:$4 sm:$0xff]  }
 0x132   :  { %2115 = vmatprep.subr.bf16.mxu0 %v3662_v12  ;;  %v4361_v26 = vpop.f32.mrf.mxu1  ;;  %v3710_v12 = vld [vmem:[#allocation9 + $0x5a4] ss:$16 sps:$4 sm:$0xff]  }
 0x133   :  { %2100 = vmatprep.mubr.bf16.mxu1 %v4356_v18  ;;  %v448_v30 = vmax.f32 %v394_v21, 0.0  ;;  %v3713_v14 = vld [vmem:[#allocation9 + $0x7e4] ss:$16 sps:$4 sm:$0xff]   ;;  %v3717_v21 = vld [vmem:[#allocation9 + $0x7c0] ss:$16 sps:$4 sm:$0xff]  }
 0x134   :  { %2101 = vmatmul.mubr.bf16.vlgmr.msra.gmra.mxu1 %v4359_v23  ;;  %v397_v27 = vpop.f32.mrf.mxu1  ;;  %v3716_v17 = vld [vmem:[#allocation9 + $0x584] ss:$16 sps:$4 sm:$0xff]  }
 0x135   :  { %2116 = vmatpush1.bf16.msra.mxu0 %v3660_v19  ;;  %2155 = vmatpush1.bf16.msra.mxu1 %v3663_v20  ;;  %v398_v31 = vadd.f32 %v397_v27, %v165_v10  ;;  %v3702_v10 = vld [vmem:[#allocation9 + $0x5c0] ss:$16 sps:$4 sm:$0xff]   ;;  %v3719_v19 = vld [vmem:[#allocation9 + $0x7c4] ss:$16 sps:$4 sm:$0xff]  }
 0x136   :  { %2117 = vmatprep.subr.bf16.mxu0 %v3668_v24  ;;  %2156 = vmatprep.subr.bf16.mxu1 %v3671_v25  ;;  %v4366_v35 = vpop.f32.mrf.mxu1  ;;  %v3714_v20 = vld [vmem:[#allocation9 + $0x580] ss:$16 sps:$4 sm:$0xff]   ;;  %v3725_v24 = vld [vmem:[#allocation9 + $0x7a4] ss:$16 sps:$4 sm:$0xff]  }
 0x137   :  { %v456_v36 = vmax.f32 %v398_v31, 0.0  ;;  %v3720_v25 = vld [vmem:[#allocation9 + $0x560] ss:$16 sps:$4 sm:$0xff]  }
 0x138   :  { %v436_v37 = vpop.f32.mrf.mxu1  ;;  %v3723_v27 = vld [vmem:[#allocation9 + $0x7a0] ss:$16 sps:$4 sm:$0xff]  }
 0x139   :  { %2118 = vmatpush1.bf16.msra.mxu0 %v3666_v28  ;;  %2157 = vmatpush1.bf16.msra.mxu1 %v3669_v29  ;;  %v4368_v44 = vpack.c.bf16 %v456_v36, %v448_v30  ;;  %v437_v45 = vadd.f32 %v436_v37, %v173_v32  ;;  %v160_v28 = vsub.s32 4, %v4324_v38  ;;  %v3728_v29 = vld [vmem:[#allocation9 + $0x544] ss:$16 sps:$4 sm:$0xff]   ;;  %v3726_v31 = vld [vmem:[#allocation9 + $0x540] ss:$16 sps:$4 sm:$0xff]  }
 0x13a   :  { %2119 = vmatprep.subr.bf16.mxu0 %v3674_v33  ;;  %2158 = vmatprep.subr.bf16.mxu1 %v3677_v34  ;;  %v4370_v48 = vpop.f32.mrf.mxu1  ;;  %v3731_v30 = vld [vmem:[#allocation9 + $0x784] ss:$16 sps:$4 sm:$0xff]   ;;  %v3732_v37 = vld [vmem:[#allocation9 + $0x520] ss:$16 sps:$4 sm:$0xff]  }
 0x13b   :  { %2143 = vmatprep.mubr.bf16.mxu0 %v4368_v44  ;;  %v450_v54 = vmax.f32 %v437_v45, 0.0  ;;  %v161_v33 = vrot.slane %v4332_v41, %v160_v28  ;;  %v3734_v34 = vld [vmem:[#allocation9 + $0x524] ss:$16 sps:$4 sm:$0xff]   ;;  %v3791_v28 = vld [vmem:[#allocation9 + $0x24c] ss:$16 sps:$4 sm:$0xff]  }
 0x13c   :  { %v440_v50 = vpop.f32.mrf.mxu1  ;;  %v3737_v36 = vld [vmem:[#allocation9 + $0x764] ss:$16 sps:$4 sm:$0xff]  }
 0x13d   :  { %2120 = vmatpush1.bf16.msra.mxu0 %v3672_v42  ;;  %2159 = vmatpush1.bf16.msra.mxu1 %v3675_v43  ;;  %v441_v55 = vadd.f32 %v440_v50, %v173_v32  ;;  %v3729_v32 = vld [vmem:[#allocation9 + $0x780] ss:$16 sps:$4 sm:$0xff]   ;;  %v392_v43 = vadd.f32 %v4354_v13, %v161_v33  ;;  %v396_v45 = vadd.f32 %v4361_v26, %v161_v33  ;;  %v3743_v50 = vld [vmem:[#allocation9 + $0x744] ss:$16 sps:$4 sm:$0xff]   ;;  %v3749_v13 = vld [vmem:[#allocation9 + $0xec] ss:$16 sps:$4 sm:$0xff]  }
 0x13e   :  { %2121 = vmatprep.subr.bf16.mxu0 %v3680_v46  ;;  %2160 = vmatprep.subr.bf16.mxu1 %v3683_v47  ;;  %v3735_v42 = vld [vmem:[#allocation9 + $0x760] ss:$16 sps:$4 sm:$0xff]   ;;  %v168_v46 = vsub.s32 6, %v4324_v38  ;;  %v3740_v47 = vld [vmem:[#allocation9 + $0x504] ss:$16 sps:$4 sm:$0xff]  }
 0x13f   :  { %v458_v58 = vmax.f32 %v441_v55, 0.0  ;;  %v455_v55 = vmax.f32 %v396_v45, 0.0  ;;  %v3744_v26 = vld [vmem:[#allocation9 + $0x720] ss:$16 sps:$4 sm:$0xff]   ;;  %v3792_v33 = vld [vmem:[#allocation9 + $0x1e8] ss:$16 sps:$4 sm:$0xff]  }
 0x140   :  { %v3806_v45 = vld [vmem:[#allocation9 + $0x1ac] ss:$16 sps:$4 sm:$0xff]  }
 0x141   :  { %2122 = vmatpush1.bf16.msra.mxu0 %v3678_v51  ;;  %2161 = vmatpush1.bf16.msra.mxu1 %v3681_v53  ;;  %v4373_v61 = vpack.c.bf16 %v458_v58, %v450_v54  ;;  %v3738_v51 = vld [vmem:[#allocation9 + $0x500] ss:$16 sps:$4 sm:$0xff]   ;;  %v447_v54 = vmax.f32 %v392_v43, 0.0  ;;  %v3747_v58 = vld [vmem:[#allocation9 + $0xe8] ss:$16 sps:$4 sm:$0xff]  }
 0x142   :  { %2123 = vmatprep.subr.bf16.mxu0 %v3686_v56  ;;  %2162 = vmatprep.subr.bf16.mxu1 %v3689_v57  ;;  %v3741_v53 = vld [vmem:[#allocation9 + $0x740] ss:$16 sps:$4 sm:$0xff]   ;;  %v169_v56 = vrot.slane %v4332_v41, %v168_v46  ;;  %v3746_v57 = vld [vmem:[#allocation9 + $0x724] ss:$16 sps:$4 sm:$0xff]   ;;  %v3801_v43 = vld [vmem:[#allocation9 + $0x208] ss:$16 sps:$4 sm:$0xff]  }
 0x143   :  { %2186 = vmatprep.mubr.bf16.mxu1 %v4373_v61  ;;  %v3750_v41 = vld [vmem:[#allocation9 + $0x700] ss:$16 sps:$4 sm:$0xff]   ;;  %v3809_v46 = vld [vmem:[#allocation9 + $0x3ec] ss:$16 sps:$4 sm:$0xff]  }
 0x145   :  { %2124 = vmatpush1.bf16.msra.mxu0 %v3684_v59  ;;  %2163 = vmatpush1.bf16.msra.mxu1 %v3687_v60  ;;  %v4382_v59 = vpack.c.bf16 %v455_v55, %v447_v54  ;;  %v435_v60 = vadd.f32 %v4366_v35, %v169_v56  ;;  %v3756_v35 = vld [vmem:[#allocation9 + $0xa8] ss:$16 sps:$4 sm:$0xff]  }
 0x146   :  { %2125 = vmatprep.subr.bf16.mxu0 %v3692_v63  ;;  %2164 = vmatprep.subr.bf16.mxu1 %v3695_v0  ;;  %v439_v63 = vadd.f32 %v4370_v48, %v169_v56  ;;  %v3752_v0 = vld [vmem:[#allocation9 + $0x704] ss:$16 sps:$4 sm:$0xff]   ;;  %v3759_v48 = vld [vmem:[#allocation9 + $0x2e8] ss:$16 sps:$4 sm:$0xff]   ;;  %v3818_v56 = vld [vmem:[#allocation9 + $0x16c] ss:$16 sps:$4 sm:$0xff]  }
 0x147   :  { %v3810_v54 = vld [vmem:[#allocation9 + $0x188] ss:$16 sps:$4 sm:$0xff]  }
 0x148   :  { %v3813_v55 = vld [vmem:[#allocation9 + $0x3c8] ss:$16 sps:$4 sm:$0xff]  }
 0x149   :  { %2126 = vmatpush1.bf16.msra.mxu0 %v3690_v2  ;;  %2165 = vmatpush1.bf16.msra.mxu1 %v3693_v3  ;;  %v3755_v2 = vld [vmem:[#allocation9 + $0xcc] ss:$16 sps:$4 sm:$0xff]   ;;  %v3753_v3 = vld [vmem:[#allocation9 + $0xc8] ss:$16 sps:$4 sm:$0xff]  }
 0x14a   :  { %2127 = vmatprep.subr.bf16.mxu0 %v3698_v4  ;;  %2166 = vmatprep.subr.bf16.mxu1 %v3701_v5  ;;  %v449_v4 = vmax.f32 %v435_v60, 0.0  ;;  %v457_v5 = vmax.f32 %v439_v63, 0.0  ;;  %v3827_v60 = vld [vmem:[#allocation9 + $0x38c] ss:$16 sps:$4 sm:$0xff]   ;;  %v3822_v63 = vld [vmem:[#allocation9 + $0x148] ss:$16 sps:$4 sm:$0xff]  }
 0x14d   :  { %2128 = vmatpush2.bf16.msra.mxu0 %v3696_v6  ;;  %2167 = vmatpush1.bf16.msra.mxu1 %v3699_v7  ;;  %v3758_v6 = vld [vmem:[#allocation9 + $0xac] ss:$16 sps:$4 sm:$0xff]  }
 0x14e   :  { %2129 = vmatprep.subr.bf16.mxu0 %v3704_v8  ;;  %2168 = vmatprep.subr.bf16.mxu1 %v3707_v9  ;;  %v3761_v7 = vld [vmem:[#allocation9 + $0x2ec] ss:$16 sps:$4 sm:$0xff]   ;;  %v4388_v8 = vpack.c.bf16 %v457_v5, %v449_v4  ;;  %v3831_v4 = vld [vmem:[#allocation9 + $0x368] ss:$16 sps:$4 sm:$0xff]  }
 0x14f   :  { %v3764_v9 = vld [vmem:[#allocation9 + $0x8c] ss:$16 sps:$4 sm:$0xff]  }
 0x150   :  { %v3836_v5 = vld [vmem:[#allocation9 + $0x10c] ss:$16 sps:$4 sm:$0xff]  }
 0x151   :  { %2130 = vmatpush2.bf16.msra.mxu0 %v3702_v10  ;;  %2169 = vmatpush1.bf16.msra.mxu1 %v3705_v11  ;;  %v3767_v10 = vld [vmem:[#allocation9 + $0x2cc] ss:$16 sps:$4 sm:$0xff]   ;;  %v3762_v11 = vld [vmem:[#allocation9 + $0x88] ss:$16 sps:$4 sm:$0xff]  }
 0x152   :  { %2131 = vmatprep.subr.bf16.mxu0 %v3710_v12  ;;  %2170 = vmatprep.subr.bf16.mxu1 %v3713_v14  ;;  %v3770_v12 = vld [vmem:[#allocation9 + $0x6c] ss:$16 sps:$4 sm:$0xff]  }
 0x153   :  { %v3773_v14 = vld [vmem:[#allocation9 + $0x2ac] ss:$16 sps:$4 sm:$0xff]  }
 0x155   :  { %2132 = vmatpush2.bf16.msra.mxu0 %v3708_v15  ;;  %2171 = vmatpush2.bf16.msra.mxu1 %v3711_v16  ;;  %v3768_v15 = vld [vmem:[#allocation9 + $0x68] ss:$16 sps:$4 sm:$0xff]  }
 0x156   :  { %2133 = vmatprep.subr.bf16.mxu0 %v3716_v17  ;;  %2172 = vmatprep.subr.bf16.mxu1 %v3719_v19  ;;  %v3771_v16 = vld [vmem:[#allocation9 + $0x2a8] ss:$16 sps:$4 sm:$0xff]   ;;  %v3776_v17 = vld [vmem:[#allocation9 + $0x4c] ss:$16 sps:$4 sm:$0xff]  }
 0x157   :  { %v3779_v19 = vld [vmem:[#allocation9 + $0x28c] ss:$16 sps:$4 sm:$0xff]  }
 0x159   :  { %2134 = vmatpush2.bf16.msra.mxu0 %v3714_v20  ;;  %2173 = vmatpush2.bf16.msra.mxu1 %v3717_v21  ;;  %v3774_v20 = vld [vmem:[#allocation9 + $0x48] ss:$16 sps:$4 sm:$0xff]  }
 0x15a   :  { %2135 = vmatprep.subr.bf16.mxu0 %v3722_v22  ;;  %2174 = vmatprep.subr.bf16.mxu1 %v3725_v24  ;;  %v3777_v21 = vld [vmem:[#allocation9 + $0x288] ss:$16 sps:$4 sm:$0xff]   ;;  %v3782_v22 = vld [vmem:[#allocation9 + $0x2c] ss:$16 sps:$4 sm:$0xff]  }
 0x15b   :  { %v3780_v24 = vld [vmem:[#allocation9 + $0x28] ss:$16 sps:$4 sm:$0xff]  }
 0x15d   :  { %2136 = vmatpush2.bf16.msra.mxu0 %v3720_v25  ;;  %2175 = vmatpush2.bf16.msra.mxu1 %v3723_v27  ;;  %v3783_v25 = vld [vmem:[#allocation9 + $0x268] ss:$16 sps:$4 sm:$0xff]   ;;  %v3788_v27 = vld [vmem:[#allocation9 + $0xc] ss:$16 sps:$4 sm:$0xff]  }
 0x15e   :  { %2137 = vmatprep.subr.bf16.mxu0 %v3728_v29  ;;  %2176 = vmatprep.subr.bf16.mxu1 %v3731_v30  ;;  %v3786_v29 = vld [vmem:[#allocation9 + $0x8] ss:$16 sps:$4 sm:$0xff]  }
 0x15f   :  { %v3789_v30 = vld [vmem:[#allocation9 + $0x248] ss:$16 sps:$4 sm:$0xff]  }
 0x161   :  { %2138 = vmatpush2.bf16.msra.mxu0 %v3726_v31  ;;  %2177 = vmatpush2.bf16.msra.mxu1 %v3729_v32  ;;  %v3794_v31 = vld [vmem:[#allocation9 + $0x1ec] ss:$16 sps:$4 sm:$0xff]  }
 0x162   :  { %2139 = vmatprep.subr.bf16.mxu0 %v3734_v34  ;;  %2178 = vmatprep.subr.bf16.mxu1 %v3737_v36  ;;  %v3797_v32 = vld [vmem:[#allocation9 + $0x22c] ss:$16 sps:$4 sm:$0xff]   ;;  %v3795_v34 = vld [vmem:[#allocation9 + $0x228] ss:$16 sps:$4 sm:$0xff]  }
 0x163   :  { %v3800_v36 = vld [vmem:[#allocation9 + $0x1cc] ss:$16 sps:$4 sm:$0xff]  }
 0x165   :  { %2140 = vmatpush2.bf16.msra.mxu0 %v3732_v37  ;;  %2179 = vmatpush2.bf16.msra.mxu1 %v3735_v42  ;;  %v3803_v37 = vld [vmem:[#allocation9 + $0x20c] ss:$16 sps:$4 sm:$0xff]   ;;  %v3798_v42 = vld [vmem:[#allocation9 + $0x1c8] ss:$16 sps:$4 sm:$0xff]  }
 0x166   :  { %2141 = vmatprep.subr.bf16.mxu0 %v3740_v47  ;;  %2180 = vmatprep.subr.bf16.mxu1 %v3743_v50  ;;  %v3804_v47 = vld [vmem:[#allocation9 + $0x1a8] ss:$16 sps:$4 sm:$0xff]  }
 0x167   :  { %v3807_v50 = vld [vmem:[#allocation9 + $0x3e8] ss:$16 sps:$4 sm:$0xff]  }
 0x169   :  { %2142 = vmatpush2.bf16.msra.mxu0 %v3738_v51  ;;  %2181 = vmatpush2.bf16.msra.mxu1 %v3741_v53  ;;  %v3812_v51 = vld [vmem:[#allocation9 + $0x18c] ss:$16 sps:$4 sm:$0xff]  }
 0x16a   :  { %2182 = vmatprep.subr.bf16.mxu1 %v3746_v57  ;;  %2197 = vmatprep.subr.bf16.mxu0 %v3749_v13  ;;  %v3815_v53 = vld [vmem:[#allocation9 + $0x3cc] ss:$16 sps:$4 sm:$0xff]   ;;  %v3816_v13 = vld [vmem:[#allocation9 + $0x168] ss:$16 sps:$4 sm:$0xff]  }
 0x16b   :  { %v3821_v57 = vld [vmem:[#allocation9 + $0x3ac] ss:$16 sps:$4 sm:$0xff]  }
 0x16c   :  { %2144 = vmatmul.mubr.bf16.vlgmr.msra.gmra.mxu0 %v4382_v59 }
 0x16d   :  { %2183 = vmatpush2.bf16.msra.mxu1 %v3744_v26  ;;  %2198 = vmatpush1.bf16.msra.mxu0 %v3747_v58  ;;  %v3819_v26 = vld [vmem:[#allocation9 + $0x3a8] ss:$16 sps:$4 sm:$0xff]   ;;  %v3824_v58 = vld [vmem:[#allocation9 + $0x14c] ss:$16 sps:$4 sm:$0xff]  }
 0x16e   :  { %2229 = vmatprep.mubr.bf16.mxu0 %v4346_v62  ;;  %2184 = vmatprep.subr.bf16.mxu1 %v3752_v0  ;;  %v3765_v62 = vld [vmem:[#allocation9 + $0x2c8] ss:$16 sps:$4 sm:$0xff]  }
 0x16f   :  { %2199 = vmatprep.subr.bf16.mxu0 %v3755_v2  ;;  %v3825_v0 = vld [vmem:[#allocation9 + $0x388] ss:$16 sps:$4 sm:$0xff]   ;;  %v3830_v2 = vld [vmem:[#allocation9 + $0x12c] ss:$16 sps:$4 sm:$0xff]  }
 0x171   :  { %2185 = vmatpush2.bf16.msra.mxu1 %v3750_v41  ;;  %2200 = vmatpush1.bf16.msra.mxu0 %v3753_v3  ;;  %v3833_v41 = vld [vmem:[#allocation9 + $0x36c] ss:$16 sps:$4 sm:$0xff]   ;;  %v3828_v3 = vld [vmem:[#allocation9 + $0x128] ss:$16 sps:$4 sm:$0xff]  }
 0x172   :  { %2201 = vmatprep.subr.bf16.mxu0 %v3758_v6  ;;  %2240 = vmatprep.subr.bf16.mxu1 %v3761_v7  ;;  %v3839_v6 = vld [vmem:[#allocation9 + $0x34c] ss:$16 sps:$4 sm:$0xff]   ;;  %v3834_v7 = vld [vmem:[#allocation9 + $0x108] ss:$16 sps:$4 sm:$0xff]  }
 0x174   :  { %2187 = vmatmul.mubr.bf16.vlgmr.msra.gmra.mxu1 %v4388_v8 }
 0x175   :  { %2202 = vmatpush1.bf16.msra.mxu0 %v3756_v35  ;;  %2241 = vmatpush1.bf16.msra.mxu1 %v3759_v48  ;;  %v3837_v35 = vld [vmem:[#allocation9 + $0x348] ss:$16 sps:$4 sm:$0xff]   ;;  %v3842_v48 = vld [vmem:[#allocation9 + $0x32c] ss:$16 sps:$4 sm:$0xff]  }
 0x176   :  { %2272 = vmatprep.mubr.bf16.mxu1 %v4356_v18  ;;  %2203 = vmatprep.subr.bf16.mxu0 %v3764_v9  ;;  %v3785_v18 = vld [vmem:[#allocation9 + $0x26c] ss:$16 sps:$4 sm:$0xff]  }
 0x177   :  { %2242 = vmatprep.subr.bf16.mxu1 %v3767_v10  ;;  %v3845_v9 = vld [vmem:[#allocation9 + $0x4ec] ss:$16 sps:$4 sm:$0xff]   ;;  %v3840_v10 = vld [vmem:[#allocation9 + $0x328] ss:$16 sps:$4 sm:$0xff]  }
 0x179   :  { %2204 = vmatpush1.bf16.msra.mxu0 %v3762_v11  ;;  %2243 = vmatpush1.bf16.msra.mxu1 %v3765_v62  ;;  %v3843_v11 = vld [vmem:[#allocation9 + $0x4e8] ss:$16 sps:$4 sm:$0xff]   ;;  %v3848_v62 = vld [vmem:[#allocation9 + $0x30c] ss:$16 sps:$4 sm:$0xff]  }
 0x17a   :  { %2205 = vmatprep.subr.bf16.mxu0 %v3770_v12  ;;  %2244 = vmatprep.subr.bf16.mxu1 %v3773_v14  ;;  %v3851_v12 = vld [vmem:[#allocation9 + $0x4cc] ss:$16 sps:$4 sm:$0xff]   ;;  %v3846_v14 = vld [vmem:[#allocation9 + $0x308] ss:$16 sps:$4 sm:$0xff]  }
 0x17d   :  { %2206 = vmatpush1.bf16.msra.mxu0 %v3768_v15  ;;  %2245 = vmatpush1.bf16.msra.mxu1 %v3771_v16  ;;  %v3849_v15 = vld [vmem:[#allocation9 + $0x4c8] ss:$16 sps:$4 sm:$0xff]   ;;  %v3854_v16 = vld [vmem:[#allocation9 + $0x4ac] ss:$16 sps:$4 sm:$0xff]  }
 0x17e   :  { %2207 = vmatprep.subr.bf16.mxu0 %v3776_v17  ;;  %2246 = vmatprep.subr.bf16.mxu1 %v3779_v19  ;;  %v3857_v17 = vld [vmem:[#allocation9 + $0x6ec] ss:$16 sps:$4 sm:$0xff]   ;;  %v3852_v19 = vld [vmem:[#allocation9 + $0x4a8] ss:$16 sps:$4 sm:$0xff]  }
 0x181   :  { %2208 = vmatpush1.bf16.msra.mxu0 %v3774_v20  ;;  %2247 = vmatpush1.bf16.msra.mxu1 %v3777_v21  ;;  %v3855_v20 = vld [vmem:[#allocation9 + $0x6e8] ss:$16 sps:$4 sm:$0xff]   ;;  %v3860_v21 = vld [vmem:[#allocation9 + $0x48c] ss:$16 sps:$4 sm:$0xff]  }
 0x182   :  { %2209 = vmatprep.subr.bf16.mxu0 %v3782_v22  ;;  %2248 = vmatprep.subr.bf16.mxu1 %v3785_v18  ;;  %v3863_v22 = vld [vmem:[#allocation9 + $0x6cc] ss:$16 sps:$4 sm:$0xff]   ;;  %v3861_v18 = vld [vmem:[#allocation9 + $0x6c8] ss:$16 sps:$4 sm:$0xff]  }
 0x185   :  { %2210 = vmatpush1.bf16.msra.mxu0 %v3780_v24  ;;  %2249 = vmatpush1.bf16.msra.mxu1 %v3783_v25  ;;  %v3869_v24 = vld [vmem:[#allocation9 + $0x6ac] ss:$16 sps:$4 sm:$0xff]   ;;  %v3864_v25 = vld [vmem:[#allocation9 + $0x468] ss:$16 sps:$4 sm:$0xff]  }
 0x186   :  { %2211 = vmatprep.subr.bf16.mxu0 %v3788_v27  ;;  %2250 = vmatprep.subr.bf16.mxu1 %v3791_v28  ;;  %v3867_v27 = vld [vmem:[#allocation9 + $0x6a8] ss:$16 sps:$4 sm:$0xff]   ;;  %v3872_v28 = vld [vmem:[#allocation9 + $0x44c] ss:$16 sps:$4 sm:$0xff]  }
 0x189   :  { %2212 = vmatpush1.bf16.msra.mxu0 %v3786_v29  ;;  %2251 = vmatpush1.bf16.msra.mxu1 %v3789_v30  ;;  %v3875_v29 = vld [vmem:[#allocation9 + $0x68c] ss:$16 sps:$4 sm:$0xff]   ;;  %v3873_v30 = vld [vmem:[#allocation9 + $0x688] ss:$16 sps:$4 sm:$0xff]  }
 0x18a   :  { %2213 = vmatprep.subr.bf16.mxu0 %v3794_v31  ;;  %2252 = vmatprep.subr.bf16.mxu1 %v3797_v32  ;;  %v3878_v31 = vld [vmem:[#allocation9 + $0x42c] ss:$16 sps:$4 sm:$0xff]   ;;  %v3876_v32 = vld [vmem:[#allocation9 + $0x428] ss:$16 sps:$4 sm:$0xff]  }
 0x18d   :  { %2214 = vmatpush2.bf16.msra.mxu0 %v3792_v33  ;;  %2253 = vmatpush1.bf16.msra.mxu1 %v3795_v34  ;;  %v3879_v33 = vld [vmem:[#allocation9 + $0x668] ss:$16 sps:$4 sm:$0xff]   ;;  %v3884_v34 = vld [vmem:[#allocation9 + $0x40c] ss:$16 sps:$4 sm:$0xff]  }
 0x18e   :  { %2215 = vmatprep.subr.bf16.mxu0 %v3800_v36  ;;  %2254 = vmatprep.subr.bf16.mxu1 %v3803_v37  ;;  %v3887_v36 = vld [vmem:[#allocation9 + $0x64c] ss:$16 sps:$4 sm:$0xff]   ;;  %v3882_v37 = vld [vmem:[#allocation9 + $0x408] ss:$16 sps:$4 sm:$0xff]  }
 0x191   :  { %2216 = vmatpush2.bf16.msra.mxu0 %v3798_v42  ;;  %2255 = vmatpush1.bf16.msra.mxu1 %v3801_v43  ;;  %v3885_v42 = vld [vmem:[#allocation9 + $0x648] ss:$16 sps:$4 sm:$0xff]   ;;  %v3890_v43 = vld [vmem:[#allocation9 + $0x5ec] ss:$16 sps:$4 sm:$0xff]  }
 0x192   :  { %2217 = vmatprep.subr.bf16.mxu0 %v3806_v45  ;;  %2256 = vmatprep.subr.bf16.mxu1 %v3809_v46  ;;  %v3893_v45 = vld [vmem:[#allocation9 + $0x62c] ss:$16 sps:$4 sm:$0xff]   ;;  %v3888_v46 = vld [vmem:[#allocation9 + $0x5e8] ss:$16 sps:$4 sm:$0xff]  }
 0x195   :  { %2218 = vmatpush2.bf16.msra.mxu0 %v3804_v47  ;;  %2257 = vmatpush2.bf16.msra.mxu1 %v3807_v50  ;;  %v3891_v47 = vld [vmem:[#allocation9 + $0x628] ss:$16 sps:$4 sm:$0xff]   ;;  %v3896_v50 = vld [vmem:[#allocation9 + $0x5cc] ss:$16 sps:$4 sm:$0xff]  }
 0x196   :  { %2219 = vmatprep.subr.bf16.mxu0 %v3812_v51  ;;  %2258 = vmatprep.subr.bf16.mxu1 %v3815_v53  ;;  %v3899_v51 = vld [vmem:[#allocation9 + $0x60c] ss:$16 sps:$4 sm:$0xff]   ;;  %v3894_v53 = vld [vmem:[#allocation9 + $0x5c8] ss:$16 sps:$4 sm:$0xff]  }
 0x199   :  { %2220 = vmatpush2.bf16.msra.mxu0 %v3810_v54  ;;  %2259 = vmatpush2.bf16.msra.mxu1 %v3813_v55  ;;  %v3897_v54 = vld [vmem:[#allocation9 + $0x608] ss:$16 sps:$4 sm:$0xff]   ;;  %v3902_v55 = vld [vmem:[#allocation9 + $0x5ac] ss:$16 sps:$4 sm:$0xff]  }
 0x19a   :  { %2221 = vmatprep.subr.bf16.mxu0 %v3818_v56  ;;  %2260 = vmatprep.subr.bf16.mxu1 %v3821_v57  ;;  %v3905_v56 = vld [vmem:[#allocation9 + $0x7ec] ss:$16 sps:$4 sm:$0xff]   ;;  %v3900_v57 = vld [vmem:[#allocation9 + $0x5a8] ss:$16 sps:$4 sm:$0xff]  }
 0x19d   :  { %2222 = vmatpush2.bf16.msra.mxu0 %v3816_v13  ;;  %2261 = vmatpush2.bf16.msra.mxu1 %v3819_v26  ;;  %v3903_v13 = vld [vmem:[#allocation9 + $0x7e8] ss:$16 sps:$4 sm:$0xff]   ;;  %v3908_v26 = vld [vmem:[#allocation9 + $0x58c] ss:$16 sps:$4 sm:$0xff]  }
 0x19e   :  { %2223 = vmatprep.subr.bf16.mxu0 %v3824_v58  ;;  %2262 = vmatprep.subr.bf16.mxu1 %v3827_v60  ;;  %v3911_v58 = vld [vmem:[#allocation9 + $0x7cc] ss:$16 sps:$4 sm:$0xff]   ;;  %v3906_v60 = vld [vmem:[#allocation9 + $0x588] ss:$16 sps:$4 sm:$0xff]  }
 0x1a1   :  { %2224 = vmatpush2.bf16.msra.mxu0 %v3822_v63  ;;  %2263 = vmatpush2.bf16.msra.mxu1 %v3825_v0  ;;  %v3909_v63 = vld [vmem:[#allocation9 + $0x7c8] ss:$16 sps:$4 sm:$0xff]   ;;  %v3914_v0 = vld [vmem:[#allocation9 + $0x56c] ss:$16 sps:$4 sm:$0xff]  }
 0x1a2   :  { %2225 = vmatprep.subr.bf16.mxu0 %v3830_v2  ;;  %2264 = vmatprep.subr.bf16.mxu1 %v3833_v41  ;;  %v3917_v2 = vld [vmem:[#allocation9 + $0x7ac] ss:$16 sps:$4 sm:$0xff]   ;;  %v3912_v41 = vld [vmem:[#allocation9 + $0x568] ss:$16 sps:$4 sm:$0xff]  }
 0x1a5   :  { %2226 = vmatpush2.bf16.msra.mxu0 %v3828_v3  ;;  %2265 = vmatpush2.bf16.msra.mxu1 %v3831_v4  ;;  %v3915_v3 = vld [vmem:[#allocation9 + $0x7a8] ss:$16 sps:$4 sm:$0xff]   ;;  %v3920_v4 = vld [vmem:[#allocation9 + $0x54c] ss:$16 sps:$4 sm:$0xff]  }
 0x1a6   :  { %2227 = vmatprep.subr.bf16.mxu0 %v3836_v5  ;;  %2266 = vmatprep.subr.bf16.mxu1 %v3839_v6  ;;  %v3923_v5 = vld [vmem:[#allocation9 + $0x78c] ss:$16 sps:$4 sm:$0xff]   ;;  %v3918_v6 = vld [vmem:[#allocation9 + $0x548] ss:$16 sps:$4 sm:$0xff]  }
 0x1a9   :  { %2228 = vmatpush2.bf16.msra.mxu0 %v3834_v7  ;;  %2267 = vmatpush2.bf16.msra.mxu1 %v3837_v35  ;;  %v3921_v7 = vld [vmem:[#allocation9 + $0x788] ss:$16 sps:$4 sm:$0xff]   ;;  %v3926_v35 = vld [vmem:[#allocation9 + $0x52c] ss:$16 sps:$4 sm:$0xff]  }
 0x1aa   :  { %2268 = vmatprep.subr.bf16.mxu1 %v3842_v48  ;;  %2283 = vmatprep.subr.bf16.mxu0 %v3845_v9  ;;  %v3929_v48 = vld [vmem:[#allocation9 + $0x76c] ss:$16 sps:$4 sm:$0xff]   ;;  %v3924_v9 = vld [vmem:[#allocation9 + $0x528] ss:$16 sps:$4 sm:$0xff]  }
 0x1ac   :  { %2230 = vmatmul.mubr.bf16.vlgmr.msra.gmra.mxu0 %v4349_v1  ;;  %v3858_v1 = vld [vmem:[#allocation9 + $0x488] ss:$16 sps:$4 sm:$0xff]  }
 0x1ad   :  { %2269 = vmatpush2.bf16.msra.mxu1 %v3840_v10  ;;  %2284 = vmatpush1.bf16.msra.mxu0 %v3843_v11  ;;  %v3927_v10 = vld [vmem:[#allocation9 + $0x768] ss:$16 sps:$4 sm:$0xff]   ;;  %v3932_v11 = vld [vmem:[#allocation9 + $0x50c] ss:$16 sps:$4 sm:$0xff]  }
 0x1ae   :  { %2315 = vmatprep.mubr.bf16.mxu0 %v4368_v44  ;;  %2270 = vmatprep.subr.bf16.mxu1 %v3848_v62  ;;  %v3866_v44 = vld [vmem:[#allocation9 + $0x46c] ss:$16 sps:$4 sm:$0xff]  }
 0x1af   :  { %2285 = vmatprep.subr.bf16.mxu0 %v3851_v12  ;;  %v3935_v62 = vld [vmem:[#allocation9 + $0x74c] ss:$16 sps:$4 sm:$0xff]   ;;  %v3930_v12 = vld [vmem:[#allocation9 + $0x508] ss:$16 sps:$4 sm:$0xff]  }
 0x1b1   :  { %2271 = vmatpush2.bf16.msra.mxu1 %v3846_v14  ;;  %2286 = vmatpush1.bf16.msra.mxu0 %v3849_v15  ;;  %v3933_v14 = vld [vmem:[#allocation9 + $0x748] ss:$16 sps:$4 sm:$0xff]   ;;  %v3938_v15 = vld [vmem:[#allocation9 + $0x72c] ss:$16 sps:$4 sm:$0xff]  }
 0x1b2   :  { %2287 = vmatprep.subr.bf16.mxu0 %v3854_v16  ;;  %2326 = vmatprep.subr.bf16.mxu1 %v3857_v17  ;;  %v3944_v16 = vld [vmem:[#allocation11 + $0x74] ss:$8 sps:$4 sm:$0xff]   ;;  %v3936_v17 = vld [vmem:[#allocation9 + $0x728] ss:$16 sps:$4 sm:$0xff]  }
 0x1b4   :  { %2273 = vmatmul.mubr.bf16.vlgmr.msra.gmra.mxu1 %v4359_v23  ;;  %v3870_v23 = vld [vmem:[#allocation9 + $0x448] ss:$16 sps:$4 sm:$0xff]  }
 0x1b5   :  { %2288 = vmatpush1.bf16.msra.mxu0 %v3852_v19  ;;  %2327 = vmatpush1.bf16.msra.mxu1 %v3855_v20  ;;  %v3942_v19 = vld [vmem:[#allocation11 + $0x70] ss:$8 sps:$4 sm:$0xff]   ;;  %v3941_v20 = vld [vmem:[#allocation9 + $0x70c] ss:$16 sps:$4 sm:$0xff]  }
 0x1b6   :  { %2358 = vmatprep.mubr.bf16.mxu1 %v4373_v61  ;;  %2289 = vmatprep.subr.bf16.mxu0 %v3860_v21  ;;  %v3881_v61 = vld [vmem:[#allocation9 + $0x66c] ss:$16 sps:$4 sm:$0xff]  }
 0x1b7   :  { %2328 = vmatprep.subr.bf16.mxu1 %v3863_v22  ;;  %v3947_v21 = vld [vmem:[#allocation11 + $0x64] ss:$8 sps:$4 sm:$0xff]   ;;  %v3939_v22 = vld [vmem:[#allocation9 + $0x708] ss:$16 sps:$4 sm:$0xff]  }
 0x1b9   :  { %2290 = vmatpush1.bf16.msra.mxu0 %v3858_v1  ;;  %2329 = vmatpush1.bf16.msra.mxu1 %v3861_v18  ;;  %v3945_v1 = vld [vmem:[#allocation11 + $0x60] ss:$8 sps:$4 sm:$0xff]   ;;  %v3950_v18 = vld [vmem:[#allocation11 + $0x54] ss:$8 sps:$4 sm:$0xff]  }
 0x1ba   :  { %2291 = vmatprep.subr.bf16.mxu0 %v3866_v44  ;;  %2330 = vmatprep.subr.bf16.mxu1 %v3869_v24  ;;  %v3948_v44 = vld [vmem:[#allocation11 + $0x50] ss:$8 sps:$4 sm:$0xff]   ;;  %v3953_v24 = vld [vmem:[#allocation11 + $0x44] ss:$8 sps:$4 sm:$0xff]  }
 0x1bd   :  { %2292 = vmatpush1.bf16.msra.mxu0 %v3864_v25  ;;  %2331 = vmatpush1.bf16.msra.mxu1 %v3867_v27  ;;  %v3951_v25 = vld [vmem:[#allocation11 + $0x40] ss:$8 sps:$4 sm:$0xff]   ;;  %v3956_v27 = vld [vmem:[#allocation11 + $0x34] ss:$8 sps:$4 sm:$0xff]  }
 0x1be   :  { %2293 = vmatprep.subr.bf16.mxu0 %v3872_v28  ;;  %2332 = vmatprep.subr.bf16.mxu1 %v3875_v29  ;;  %v3959_v28 = vld [vmem:[#allocation11 + $0x24] ss:$8 sps:$4 sm:$0xff]   ;;  %v3990_v29 = vld [vmem:[#allocation11 + $0x170] ss:$8 sps:$4 sm:$0xff]  }
 0x1c1   :  { %2294 = vmatpush1.bf16.msra.mxu0 %v3870_v23  ;;  %2333 = vmatpush1.bf16.msra.mxu1 %v3873_v30  ;;  %v3992_v23 = vld [vmem:[#allocation11 + $0x174] ss:$8 sps:$4 sm:$0xff]   ;;  %v3995_v30 = vld [vmem:[#allocation11 + $0x164] ss:$8 sps:$4 sm:$0xff]  }
 0x1c2   :  { %2295 = vmatprep.subr.bf16.mxu0 %v3878_v31  ;;  %2334 = vmatprep.subr.bf16.mxu1 %v3881_v61  ;;  %v3957_v31 = vld [vmem:[#allocation11 + $0x20] ss:$8 sps:$4 sm:$0xff]   ;;  %v3962_v61 = vld [vmem:[#allocation11 + $0x14] ss:$8 sps:$4 sm:$0xff]  }
 0x1c5   :  { %2296 = vmatpush1.bf16.msra.mxu0 %v3876_v32  ;;  %2335 = vmatpush1.bf16.msra.mxu1 %v3879_v33  ;;  %v3993_v32 = vld [vmem:[#allocation11 + $0x160] ss:$8 sps:$4 sm:$0xff]   ;;  %v3960_v33 = vld [vmem:[#allocation11 + $0x10] ss:$8 sps:$4 sm:$0xff]  }
 0x1c6   :  { %2297 = vmatprep.subr.bf16.mxu0 %v3884_v34  ;;  %2336 = vmatprep.subr.bf16.mxu1 %v3887_v36  ;;  %v3965_v34 = vld [vmem:[#allocation11 + $0x4] ss:$8 sps:$4 sm:$0xff]   ;;  %v3996_v36 = vld [vmem:[#allocation11 + $0x150] ss:$8 sps:$4 sm:$0xff]  }
 0x1c9   :  { %2298 = vmatpush1.bf16.msra.mxu0 %v3882_v37  ;;  %2337 = vmatpush1.bf16.msra.mxu1 %v3885_v42  ;;  %v4001_v37 = vld [vmem:[#allocation11 + $0x144] ss:$8 sps:$4 sm:$0xff]   ;;  %v3963_v42 = vld [vmem:[#allocation11] ss:$8 sps:$4 sm:$0xff]  }
 0x1ca   :  { %2299 = vmatprep.subr.bf16.mxu0 %v3890_v43  ;;  %2338 = vmatprep.subr.bf16.mxu1 %v3893_v45  ;;  %v3968_v43 = vld [vmem:[#allocation11 + $0xf4] ss:$8 sps:$4 sm:$0xff]   ;;  %v3999_v45 = vld [vmem:[#allocation11 + $0x140] ss:$8 sps:$4 sm:$0xff]  }
 0x1cd   :  { %2300 = vmatpush2.bf16.msra.mxu0 %v3888_v46  ;;  %2339 = vmatpush1.bf16.msra.mxu1 %v3891_v47  ;;  %v4004_v46 = vld [vmem:[#allocation11 + $0x134] ss:$8 sps:$4 sm:$0xff]   ;;  %v3966_v47 = vld [vmem:[#allocation11 + $0xf0] ss:$8 sps:$4 sm:$0xff]  }
 0x1ce   :  { %2301 = vmatprep.subr.bf16.mxu0 %v3896_v50  ;;  %2340 = vmatprep.subr.bf16.mxu1 %v3899_v51  ;;  %v3971_v50 = vld [vmem:[#allocation11 + $0xe4] ss:$8 sps:$4 sm:$0xff]   ;;  %v4002_v51 = vld [vmem:[#allocation11 + $0x130] ss:$8 sps:$4 sm:$0xff]  }
 0x1d1   :  { %2302 = vmatpush2.bf16.msra.mxu0 %v3894_v53  ;;  %2341 = vmatpush1.bf16.msra.mxu1 %v3897_v54  ;;  %v4007_v53 = vld [vmem:[#allocation11 + $0x124] ss:$8 sps:$4 sm:$0xff]   ;;  %v3969_v54 = vld [vmem:[#allocation11 + $0xe0] ss:$8 sps:$4 sm:$0xff]  }
 0x1d2   :  { %2303 = vmatprep.subr.bf16.mxu0 %v3902_v55  ;;  %2342 = vmatprep.subr.bf16.mxu1 %v3905_v56  ;;  %v3974_v55 = vld [vmem:[#allocation11 + $0xd4] ss:$8 sps:$4 sm:$0xff]   ;;  %v4005_v56 = vld [vmem:[#allocation11 + $0x120] ss:$8 sps:$4 sm:$0xff]  }
 0x1d5   :  { %2304 = vmatpush2.bf16.msra.mxu0 %v3900_v57  ;;  %2343 = vmatpush2.bf16.msra.mxu1 %v3903_v13  ;;  %v4010_v57 = vld [vmem:[#allocation11 + $0x114] ss:$8 sps:$4 sm:$0xff]   ;;  %v3972_v13 = vld [vmem:[#allocation11 + $0xd0] ss:$8 sps:$4 sm:$0xff]  }
 0x1d6   :  { %2305 = vmatprep.subr.bf16.mxu0 %v3908_v26  ;;  %2344 = vmatprep.subr.bf16.mxu1 %v3911_v58  ;;  %v3977_v26 = vld [vmem:[#allocation11 + $0xc4] ss:$8 sps:$4 sm:$0xff]   ;;  %v4008_v58 = vld [vmem:[#allocation11 + $0x110] ss:$8 sps:$4 sm:$0xff]  }
 0x1d9   :  { %2306 = vmatpush2.bf16.msra.mxu0 %v3906_v60  ;;  %2345 = vmatpush2.bf16.msra.mxu1 %v3909_v63  ;;  %v4013_v60 = vld [vmem:[#allocation11 + $0x104] ss:$8 sps:$4 sm:$0xff]   ;;  %v3975_v63 = vld [vmem:[#allocation11 + $0xc0] ss:$8 sps:$4 sm:$0xff]  }
 0x1da   :  { %2307 = vmatprep.subr.bf16.mxu0 %v3914_v0  ;;  %2346 = vmatprep.subr.bf16.mxu1 %v3917_v2  ;;  %v3980_v0 = vld [vmem:[#allocation11 + $0xb4] ss:$8 sps:$4 sm:$0xff]   ;;  %v4011_v2 = vld [vmem:[#allocation11 + $0x100] ss:$8 sps:$4 sm:$0xff]  }
 0x1dd   :  { %2308 = vmatpush2.bf16.msra.mxu0 %v3912_v41  ;;  %2347 = vmatpush2.bf16.msra.mxu1 %v3915_v3  ;;  %v4016_v41 = vld [vmem:[#allocation11 + $0x1f4] ss:$8 sps:$4 sm:$0xff]   ;;  %v3978_v3 = vld [vmem:[#allocation11 + $0xb0] ss:$8 sps:$4 sm:$0xff]  }
 0x1de   :  { %2309 = vmatprep.subr.bf16.mxu0 %v3920_v4  ;;  %2348 = vmatprep.subr.bf16.mxu1 %v3923_v5  ;;  %v3983_v4 = vld [vmem:[#allocation11 + $0xa4] ss:$8 sps:$4 sm:$0xff]   ;;  %v4014_v5 = vld [vmem:[#allocation11 + $0x1f0] ss:$8 sps:$4 sm:$0xff]  }
 0x1e1   :  { %2310 = vmatpush2.bf16.msra.mxu0 %v3918_v6  ;;  %2349 = vmatpush2.bf16.msra.mxu1 %v3921_v7  ;;  %v4019_v6 = vld [vmem:[#allocation11 + $0x1e4] ss:$8 sps:$4 sm:$0xff]   ;;  %v3981_v7 = vld [vmem:[#allocation11 + $0xa0] ss:$8 sps:$4 sm:$0xff]  }
 0x1e2   :  { %2311 = vmatprep.subr.bf16.mxu0 %v3926_v35  ;;  %2350 = vmatprep.subr.bf16.mxu1 %v3929_v48  ;;  %v3986_v48 = vld [vmem:[#allocation11 + $0x94] ss:$8 sps:$4 sm:$0xff]  }
 0x1e5   :  { %2312 = vmatpush2.bf16.msra.mxu0 %v3924_v9  ;;  %2351 = vmatpush2.bf16.msra.mxu1 %v3927_v10  ;;  %v4017_v9 = vld [vmem:[#allocation11 + $0x1e0] ss:$8 sps:$4 sm:$0xff]   ;;  %v4022_v10 = vld [vmem:[#allocation11 + $0x1d4] ss:$8 sps:$4 sm:$0xff]  }
 0x1e6   :  { %2313 = vmatprep.subr.bf16.mxu0 %v3932_v11  ;;  %2352 = vmatprep.subr.bf16.mxu1 %v3935_v62  ;;  %v3984_v11 = vld [vmem:[#allocation11 + $0x90] ss:$8 sps:$4 sm:$0xff]  }
 0x1e9   :  { %2314 = vmatpush2.bf16.msra.mxu0 %v3930_v12  ;;  %2353 = vmatpush2.bf16.msra.mxu1 %v3933_v14  ;;  %v3989_v12 = vld [vmem:[#allocation11 + $0x84] ss:$8 sps:$4 sm:$0xff]   ;;  %v4020_v14 = vld [vmem:[#allocation11 + $0x1d0] ss:$8 sps:$4 sm:$0xff]  }
 0x1ea   :  { %2354 = vmatprep.subr.bf16.mxu1 %v3938_v15  ;;  %2777 = vmatprep.subr.bf16.mxu0 %v3944_v16  ;;  %v3987_v15 = vld [vmem:[#allocation11 + $0x80] ss:$8 sps:$4 sm:$0xff]  }
 0x1ec   :  { %2316 = vmatmul.mubr.bf16.vlgmr.msra.gmra.mxu0 %v4382_v59  ;;  %v3954_v59 = vld [vmem:[#allocation11 + $0x30] ss:$8 sps:$4 sm:$0xff]   ;;  %v2059_v35 = vpop.f32.mrf.mxu0 }
 0x1ed   :  { %2355 = vmatpush2.bf16.msra.mxu1 %v3936_v17  ;;  %2778 = vmatpush1.bf16.msra.mxu0 %v3942_v19 }
 0x1ee   :  { %2356 = vmatprep.subr.bf16.mxu1 %v3941_v20  ;;  %2779 = vmatprep.subr.bf16.mxu0 %v3947_v21  ;;  %v2061_v62 = vpop.f32.mrf.mxu0 }
 0x1f0   :  { %v2063_v16 = vpop.f32.mrf.mxu0 }
 0x1f1   :  { %2357 = vmatpush2.bf16.msra.mxu1 %v3939_v22  ;;  %2780 = vmatpush1.bf16.msra.mxu0 %v3945_v1  ;;  %v4401_v22 = vld [vmem:[%s4432_s4] sm:$0xf] }
 0x1f2   :  { %2781 = vmatprep.subr.bf16.mxu0 %v3950_v18  ;;  %2820 = vmatprep.subr.bf16.mxu1 %v3992_v23  ;;  %v2065_v19 = vpop.f32.mrf.mxu0  ;;  %v4025_v1 = vld [vmem:[#allocation11 + $0x1c4] ss:$8 sps:$4 sm:$0xff]   ;;  %v4026_v23 = vld [vmem:[#allocation11 + $0x1b0] ss:$8 sps:$4 sm:$0xff]  }
 0x1f4   :  { %2359 = vmatmul.mubr.bf16.vlgmr.msra.gmra.mxu1 %v4388_v8  ;;  %v3998_v8 = vld [vmem:[#allocation11 + $0x154] ss:$8 sps:$4 sm:$0xff]   ;;  %v2102_v17 = vpop.f32.mrf.mxu1 }
 0x1f5   :  { %2782 = vmatpush1.bf16.msra.mxu0 %v3948_v44  ;;  %2821 = vmatpush1.bf16.msra.mxu1 %v3990_v29 }
 0x1f6   :  { %2783 = vmatprep.subr.bf16.mxu0 %v3953_v24  ;;  %2822 = vmatprep.subr.bf16.mxu1 %v3995_v30  ;;  %v2104_v20 = vpop.f32.mrf.mxu1  ;;  %v4023_v24 = vld [vmem:[#allocation11 + $0x1c0] ss:$8 sps:$4 sm:$0xff]  }
 0x1f8   :  { %v2106_v18 = vpop.f32.mrf.mxu1 }
 0x1f9   :  { %2784 = vmatpush1.bf16.msra.mxu0 %v3951_v25  ;;  %2823 = vmatpush1.bf16.msra.mxu1 %v3993_v32  ;;  %v732_v25 = vrot.slane %v4401_v22, %v4327_v39 }
 0x1fa   :  { %2785 = vmatprep.subr.bf16.mxu0 %v3956_v27  ;;  %2824 = vmatprep.subr.bf16.mxu1 %v3998_v8  ;;  %v728_v27 = vrot.slane %v4401_v22, %v4330_v40 }
 0x1fb   :  { %v2062_v30 = vadd.f32 %v2061_v62, %v732_v25  ;;  %v2066_v8 = vadd.f32 %v2065_v19, %v732_v25  ;;  %v4044_v62 = vld [vmem:[#allocation12 + $0x60] sm:$0xff]   ;;  %v740_v25 = vrot.slane %v4401_v22, %v156_v49 }
 0x1fd   :  { %2786 = vmatpush1.bf16.msra.mxu0 %v3954_v59  ;;  %2825 = vmatpush1.bf16.msra.mxu1 %v3996_v36  ;;  %v4028_v59 = vld [vmem:[#allocation11 + $0x1b4] ss:$8 sps:$4 sm:$0xff]   ;;  %v4031_v36 = vld [vmem:[#allocation11 + $0x1a4] ss:$8 sps:$4 sm:$0xff]  }
 0x1fe   :  { %2787 = vmatprep.subr.bf16.mxu0 %v3959_v28  ;;  %2826 = vmatprep.subr.bf16.mxu1 %v4001_v37  ;;  %v2108_v28 = vpop.f32.mrf.mxu1 }
 0x201   :  { %2788 = vmatpush1.bf16.msra.mxu0 %v3957_v31  ;;  %2827 = vmatpush1.bf16.msra.mxu1 %v3999_v45  ;;  %v2064_v31 = vadd.f32 %v2063_v16, %v728_v27  ;;  %v4029_v45 = vld [vmem:[#allocation11 + $0x1a0] ss:$8 sps:$4 sm:$0xff]  }
 0x202   :  { %2789 = vmatprep.subr.bf16.mxu0 %v3962_v61  ;;  %2828 = vmatprep.subr.bf16.mxu1 %v4004_v46  ;;  %v2060_v61 = vadd.f32 %v2059_v35, %v728_v27  ;;  %v2109_v46 = vadd.f32 %v2108_v28, %v2066_v8  ;;  %v4039_v35 = vld [vmem:[#allocation12 + $0x38] sm:$0xff]   ;;  %v736_v27 = vrot.slane %v4401_v22, %v152_v52 }
 0x204   :  { %v2103_v37 = vadd.f32 %v2102_v17, %v2060_v61 }
 0x205   :  { %2790 = vmatpush1.bf16.msra.mxu0 %v3960_v33  ;;  %2829 = vmatpush1.bf16.msra.mxu1 %v4002_v51  ;;  %v2105_v33 = vadd.f32 %v2104_v20, %v2062_v30 }
 0x206   :  { %2791 = vmatprep.subr.bf16.mxu0 %v3965_v34  ;;  %2830 = vmatprep.subr.bf16.mxu1 %v4007_v53  ;;  %v2107_v34 = vadd.f32 %v2106_v18, %v2064_v31 }
 0x209   :  { %2792 = vmatpush1.bf16.msra.mxu0 %v3963_v42  ;;  %2831 = vmatpush1.bf16.msra.mxu1 %v4005_v56 }
 0x20a   :  { %2793 = vmatprep.subr.bf16.mxu0 %v3968_v43  ;;  %2832 = vmatprep.subr.bf16.mxu1 %v4010_v57  ;;  %v4034_v57 = vld [vmem:[#allocation11 + $0x194] ss:$8 sps:$4 sm:$0xff]  }
 0x20d   :  { %2794 = vmatpush2.bf16.msra.mxu0 %v3966_v47  ;;  %2833 = vmatpush1.bf16.msra.mxu1 %v4008_v58  ;;  %v4032_v58 = vld [vmem:[#allocation11 + $0x190] ss:$8 sps:$4 sm:$0xff]  }
 0x20e   :  { %2795 = vmatprep.subr.bf16.mxu0 %v3971_v50  ;;  %2834 = vmatprep.subr.bf16.mxu1 %v4013_v60 }
 0x211   :  { %2796 = vmatpush2.bf16.msra.mxu0 %v3969_v54  ;;  %2835 = vmatpush1.bf16.msra.mxu1 %v4011_v2 }
 0x212   :  { %2797 = vmatprep.subr.bf16.mxu0 %v3974_v55  ;;  %2836 = vmatprep.subr.bf16.mxu1 %v4016_v41  ;;  %v4037_v41 = vld [vmem:[#allocation11 + $0x184] ss:$8 sps:$4 sm:$0xff]  }
 0x215   :  { %2798 = vmatpush2.bf16.msra.mxu0 %v3972_v13  ;;  %2837 = vmatpush2.bf16.msra.mxu1 %v4014_v5 }
 0x216   :  { %2799 = vmatprep.subr.bf16.mxu0 %v3977_v26  ;;  %2838 = vmatprep.subr.bf16.mxu1 %v4019_v6 }
 0x219   :  { %2800 = vmatpush2.bf16.msra.mxu0 %v3975_v63  ;;  %2839 = vmatpush2.bf16.msra.mxu1 %v4017_v9  ;;  %v4041_v9 = vld [vmem:[#allocation12 + $0x30] sm:$0xff]  }
 0x21a   :  { %2801 = vmatprep.subr.bf16.mxu0 %v3980_v0  ;;  %2840 = vmatprep.subr.bf16.mxu1 %v4022_v10  ;;  %v4042_v10 = vld [vmem:[#allocation12 + $0x68] sm:$0xff]  }
 0x21d   :  { %2802 = vmatpush2.bf16.msra.mxu0 %v3978_v3  ;;  %2841 = vmatpush2.bf16.msra.mxu1 %v4020_v14  ;;  %v4046_v14 = vld [vmem:[#allocation12 + $0x58] sm:$0xff]  }
 0x21e   :  { %2803 = vmatprep.subr.bf16.mxu0 %v3983_v4  ;;  %2842 = vmatprep.subr.bf16.mxu1 %v4025_v1  ;;  %v4035_v4 = vld [vmem:[#allocation11 + $0x180] ss:$8 sps:$4 sm:$0xff]  }
 0x221   :  { %2804 = vmatpush2.bf16.msra.mxu0 %v3981_v7  ;;  %2843 = vmatpush2.bf16.msra.mxu1 %v4023_v24  ;;  %v4038_v7 = vld [vmem:[#allocation12 + $0x78] sm:$0xff]  }
 0x222   :  { %2805 = vmatprep.subr.bf16.mxu0 %v3986_v48  ;;  %2844 = vmatprep.subr.bf16.mxu1 %v4028_v59  ;;  %v4040_v48 = vld [vmem:[#allocation12 + $0x70] sm:$0xff]  }
 0x225   :  { %2806 = vmatpush2.bf16.msra.mxu0 %v3984_v11  ;;  %2845 = vmatpush2.bf16.msra.mxu1 %v4026_v23  ;;  %v4043_v11 = vld [vmem:[#allocation12 + $0x28] sm:$0xff]  }
 0x226   :  { %2807 = vmatprep.subr.bf16.mxu0 %v3989_v12  ;;  %2846 = vmatprep.subr.bf16.mxu1 %v4031_v36  ;;  %v4045_v12 = vld [vmem:[#allocation12 + $0x20] sm:$0xff]  }
 0x229   :  { %2808 = vmatpush2.bf16.msra.mxu0 %v3987_v15  ;;  %2847 = vmatpush2.bf16.msra.mxu1 %v4029_v45  ;;  %v4047_v15 = vld [vmem:[#allocation12 + $0x18] sm:$0xff]  }
 0x22a   :  { %2848 = vmatprep.subr.bf16.mxu1 %v4034_v57  ;;  %3506 = vmatprep.subr.bf16.mxu0 %v4038_v7 }
 0x22c   :  { %v2145_v21 = vpop.f32.mrf.mxu0 }
 0x22d   :  { %v2146_v51 = vadd.f32 %v2145_v21, %v2103_v37  ;;  %2849 = vmatpush2.bf16.msra.mxu1 %v4032_v58  ;;  %v4050_v58 = vld [vmem:[#allocation12 + $0x48] sm:$0xff]  }
 0x22e   :  { %v2147_v44 = vpop.f32.mrf.mxu0  ;;  %2850 = vmatprep.subr.bf16.mxu1 %v4037_v41 }
 0x22f   :  { %v2148_v47 = vadd.f32 %v2147_v44, %v2105_v33 }
 0x230   :  { %v2149_v29 = vpop.f32.mrf.mxu0 }
 0x231   :  { %v2150_v50 = vadd.f32 %v2149_v29, %v2107_v34  ;;  %2851 = vmatpush2.bf16.msra.mxu1 %v4035_v4 }
 0x232   :  { %v2151_v42 = vpop.f32.mrf.mxu0 }
 0x233   :  { %v2152_v54 = vadd.f32 %v2151_v42, %v2109_v46 }
 0x234   :  { %v2188_v32 = vpop.f32.mrf.mxu1 }
 0x235   :  { %v2189_v13 = vadd.f32 %v2188_v32, %v2146_v51 }
 0x236   :  { %v2190_v43 = vpop.f32.mrf.mxu1 }
 0x237   :  { %v2191_v55 = vadd.f32 %v2190_v43, %v2148_v47  ;;  %v2369_v3 = vmax.f32 %v2189_v13, 0.0  ;;  %v4048_v13 = vld [vmem:[#allocation12 + $0x50] sm:$0xff]  }
 0x238   :  { %v2192_v53 = vpop.f32.mrf.mxu1 }
 0x239   :  { %v2193_v56 = vadd.f32 %v2192_v53, %v2150_v50  ;;  %v2370_v0 = vmax.f32 %v2191_v55, 0.0 }
 0x23a   :  { %v2194_v26 = vpop.f32.mrf.mxu1 }
 0x23b   :  { %v2195_v60 = vadd.f32 %v2194_v26, %v2152_v54  ;;  %v2373_v63 = vmax.f32 %v2193_v56, 0.0  ;;  %v4049_v26 = vld [vmem:[#allocation12 + $0x10] sm:$0xff]  }
 0x23d   :  { %v2374_v2 = vmax.f32 %v2195_v60, 0.0  ;;  %v2377_v6 = vpack.c.bf16 %v2373_v63, %v2369_v3  ;;  %v4051_v60 = vld [vmem:[#allocation12 + $0x8] sm:$0xff]   ;;  %v4052_v63 = vld [vmem:[#allocation12 + $0x40] sm:$0xff]  }
 0x23e   :  { %v2445_v3 = vld [vmem:[%s4434_s6] sm:$0x3] }
 0x23f   :  { %v2378_v5 = vpack.c.bf16 %v2374_v2, %v2370_v0  ;;  %v4053_v0 = vld [vmem:[#allocation12] sm:$0xff]  }
 0x241   :  { %2809 = vmatprep.mubr.bf16.mxu0 %v2378_v5  ;;  %v2454_v5 = vrot.slane %v2445_v3, %v4327_v39 }
 0x242   :  { %2810 = vmatmul.mubr.bf16.vlgmr.msra.gmra.mxu0 %v2377_v6  ;;  %v2450_v6 = vrot.slane %v2445_v3, %v4330_v40 }
 0x243   :  { %3507 = vmatpush3.bf16.msra.mxu0 %v4039_v35 }
 0x244   :  { %3508 = vmatprep.subr.bf16.mxu0 %v4040_v48 }
 0x247   :  { %3509 = vmatpush3.bf16.msra.mxu0 %v4041_v9 }
 0x248   :  { %3510 = vmatprep.subr.bf16.mxu0 %v4042_v10 }
 0x24b   :  { %3511 = vmatpush3.bf16.msra.mxu0 %v4043_v11 }
 0x24c   :  { %3512 = vmatprep.subr.bf16.mxu0 %v4044_v62 }
 0x24f   :  { %3513 = vmatpush3.bf16.msra.mxu0 %v4045_v12 }
 0x250   :  { %3514 = vmatprep.subr.bf16.mxu0 %v4046_v14 }
 0x253   :  { %3515 = vmatpush3.bf16.msra.mxu0 %v4047_v15 }
 0x254   :  { %3516 = vmatprep.subr.bf16.mxu0 %v4048_v13 }
 0x257   :  { %3517 = vmatpush3.bf16.msra.mxu0 %v4049_v26 }
 0x258   :  { %3518 = vmatprep.subr.bf16.mxu0 %v4050_v58 }
 0x25b   :  { %3519 = vmatpush3.bf16.msra.mxu0 %v4051_v60 }
 0x25c   :  { %3520 = vmatprep.subr.bf16.mxu0 %v4052_v63 }
 0x25f   :  { %3521 = vmatpush3.bf16.msra.mxu0 %v4053_v0 }
 0x26c   :  { %v2231_v16 = vpop.f32.mrf.mxu0 }
 0x26d   :  { %v2232_v30 = vadd.f32 %v2231_v16, %v736_v27 }
 0x26e   :  { %v2233_v17 = vpop.f32.mrf.mxu0 }
 0x26f   :  { %v2234_v29 = vadd.f32 %v2233_v17, %v740_v25 }
 0x270   :  { %v2235_v19 = vpop.f32.mrf.mxu0 }
 0x271   :  { %v2236_v23 = vadd.f32 %v2235_v19, %v736_v27 }
 0x272   :  { %v2237_v21 = vpop.f32.mrf.mxu0 }
 0x273   :  { %v2238_v61 = vadd.f32 %v2237_v21, %v740_v25  ;;  %v3048_v25 = vld [vmem:[#allocation2] sm:$0x1] }
 0x274   :  { %v2274_v20 = vpop.f32.mrf.mxu1  ;;  %3051 = vperm.xlu0 %3556, %v3048_v25  }
 0x275   :  { %v2275_v33 = vadd.f32 %v2274_v20, %v2232_v30 }
 0x276   :  { %v2276_v1 = vpop.f32.mrf.mxu1 }
 0x277   :  { %v2277_v32 = vadd.f32 %v2276_v1, %v2234_v29 }
 0x278   :  { %v2278_v44 = vpop.f32.mrf.mxu1 }
 0x279   :  { %v2279_v8 = vadd.f32 %v2278_v44, %v2236_v23 }
 0x27a   :  { %v2280_v59 = vpop.f32.mrf.mxu1 }
 0x27b   :  { %v2281_v37 = vadd.f32 %v2280_v59, %v2238_v61 }
 0x2ac   :  { %v2317_v18 = vpop.f32.mrf.mxu0 }
 0x2ad   :  { %v2318_v49 = vadd.f32 %v2317_v18, %v2275_v33 }
 0x2ae   :  { %v2319_v24 = vpop.f32.mrf.mxu0 }
 0x2af   :  { %v2320_v42 = vadd.f32 %v2319_v24, %v2277_v32  ;;  %v4219_v24 = vmov 0.0  }
 0x2b0   :  { %v2321_v28 = vpop.f32.mrf.mxu0  ;;  %3531 = vmatprep.subr.mxu1 %v4219_v24 }
 0x2b1   :  { %v2322_v43 = vadd.f32 %v2321_v28, %v2279_v8 }
 0x2b2   :  { %v2323_v34 = vpop.f32.mrf.mxu0 }
 0x2b3   :  { %v2324_v38 = vadd.f32 %v2323_v34, %v2281_v37  ;;  %v3047_v34 = vld [vmem:[%s4437_s9] sm:$0x1] }
 0x2b4   :  { %v2360_v31 = vpop.f32.mrf.mxu1 }
 0x2b5   :  { %v2361_v22 = vadd.f32 %v2360_v31, %v2318_v49  ;;  %v3489_v31 = vld [vmem:[%s4436_s8] ss:$0 sm:$0xff]  ;;  %s4174_s8 = scalar_lea.vmem %s3137_s17, 16 }
 0x2b6   :  { %v2362_v36 = vpop.f32.mrf.mxu1  ;;  %p4175_p2 = scmp.ne.s32.totalorder %s3137_s17, %s4174_s8  ;;  %p4180_p4 = scmp.lt.s32.totalorder %s4178_s18, %s4174_s8 }
 0x2b7   :  { %v2363_v46 = vadd.f32 %v2362_v36, %v2320_v42  ;;  %v2371_v55 = vmax.f32 %v2361_v22, 0.0 }
 0x2b8   :  { %v2364_v45 = vpop.f32.mrf.mxu1  ;;  %p4181_p5 = por %p4180_p4, %p4179_p3 }
 0x2b9   :  { %v2365_v52 = vadd.f32 %v2364_v45, %v2322_v43  ;;  %v2372_v53 = vmax.f32 %v2363_v46, 0.0 }
 0x2ba   :  { %v2366_v47 = vpop.f32.mrf.mxu1  ;;  %p4182_p6 = pnand %p4181_p5, %p4175_p2 }
 0x2bb   :  { %v2367_v50 = vadd.f32 %v2366_v47, %v2324_v38  ;;  %v2375_v51 = vmax.f32 %v2365_v52, 0.0 }
 0x2bd   :  { %v2376_v54 = vmax.f32 %v2367_v50, 0.0  ;;  %v2379_v57 = vpack.c.bf16 %v2375_v51, %v2371_v55 }
 0x2bf   :  { %v2380_v56 = vpack.c.bf16 %v2376_v54, %v2372_v53 }
 0x2c1   :  { %2852 = vmatprep.mubr.bf16.mxu1 %v2380_v56 }
 0x2c2   :  { %2853 = vmatmul.mubr.bf16.vlgmr.msra.gmra.mxu1 %v2379_v57 }
 0x2c3   :  { %3535 = vmatprep.mubr.msk.f32.mxu1 %vm4220_vm1, %v4219_v24 }
 0x2ef   :  { %v3052_v36 = vpop.permute.xlu0 %3051 }
 0x2f0   :  { %v3057_v37 = vrot.slane %v3052_v36, %v4330_v40 }
 0x302   :  { %v2811_v2 = vpop.f32.mrf.mxu0 }
 0x303   :  { %v2812_v11 = vadd.f32 %v2811_v2, %v2450_v6 }
 0x304   :  { %v2813_v41 = vpop.f32.mrf.mxu0 }
 0x305   :  { %v2814_v9 = vadd.f32 %v2813_v41, %v2454_v5 }
 0x306   :  { %v2815_v4 = vpop.f32.mrf.mxu0 }
 0x307   :  { %v2816_v10 = vadd.f32 %v2815_v4, %v2450_v6 }
 0x308   :  { %v2817_v35 = vpop.f32.mrf.mxu0 }
 0x309   :  { %v2818_v12 = vadd.f32 %v2817_v35, %v2454_v5 }
 0x382   :  { %v2854_v7 = vpop.f32.mrf.mxu1 }
 0x383   :  { %v2855_v16 = vadd.f32 %v2854_v7, %v2812_v11 }
 0x384   :  { %v2856_v48 = vpop.f32.mrf.mxu1 }
 0x385   :  { %v2857_v14 = vadd.f32 %v2856_v48, %v2814_v9  ;;  %v2863_v18 = vmax.f32 %v2855_v16, 0.0 }
 0x386   :  { %v2858_v62 = vpop.f32.mrf.mxu1 }
 0x387   :  { %v2859_v15 = vadd.f32 %v2858_v62, %v2816_v10  ;;  %v2864_v21 = vmax.f32 %v2857_v14, 0.0 }
 0x388   :  { %v2860_v17 = vpop.f32.mrf.mxu1 }
 0x389   :  { %v2861_v19 = vadd.f32 %v2860_v17, %v2818_v12  ;;  %v2865_v20 = vmax.f32 %v2859_v15, 0.0 }
 0x38b   :  { %v2866_v1 = vmax.f32 %v2861_v19, 0.0  ;;  %v2867_v44 = vpack.c.bf16 %v2865_v20, %v2863_v18 }
 0x38d   :  { %v2868_v39 = vpack.c.bf16 %v2866_v1, %v2864_v21 }
 0x38f   :  { %3036 = vmatprep.mubr.bf16.mxu0 %v2868_v39 }
 0x390   :  { %3037 = vmatmul.mubr.bf16.vlgmr.msra.gmra.mxu0 %v2867_v44 }
 0x450   :  { %v3522_v27 = vpop.f32.mrf.mxu0 }
 0x452   :  { %v3523_v59 = vpop.f32.mrf.mxu0 }
 0x453   :  { %v3524_v23 = vadd.f32 %v3523_v59, %v3522_v27 }
 0x454   :  { %v3525_v28 = vpop.f32.mrf.mxu0 }
 0x455   :  { %v3039_v32 = vadd.f32 %v3524_v23, %v3489_v31 }
 0x456   :  { %v3526_v29 = vpop.f32.mrf.mxu0 }
 0x457   :  { %v3527_v30 = vadd.f32 %v3526_v29, %v3525_v28  ;;  %v3045_v33 = vmax.f32 %v3039_v32, 0.0 }
 0x459   :  { %v3042_v61 = vadd.f32 %v3527_v30, %v3489_v31 }
 0x45b   :  { %v3046_v8 = vmax.f32 %v3042_v61, 0.0 }
 0x45d   :  { %3532 = vmatpush3.xpose.msra.mxu1 %v3046_v8 }
 0x45e   :  { %3533 = vmatprep.subr.mxu1 %v4219_v24 }
 0x461   :  { %3534 = vmatpush3.xpose.msra.mxu1 %v3045_v33 }
 0x464   :  { %3536 = vmatmul.mubr.f32.vlgmr.msra.gmra.mxu1 %v3047_v34 }
 0x524   :  { %v3124_v42 = vpop.f32.mrf.mxu1 }
 0x525   :  { %v3125_v43 = vadd.f32 %v3124_v42, %v3057_v37 }
 0x526   :  { %v3537_v49 = vpop.f32.mrf.mxu1 }
 0x527   :  { %3129 = vst.msk [vmem:[#allocation14] sm:$0x1] %vm3128_vm2, %v3125_v43 }
 0x528   :  { %4185 = shalt.err (!%p4182_p6)
}
 0x529   :  { %3139 = dma.vmem_to_hbm [thread:$0]  %s3137_s17, 16, %s4439_s11, [#allocation5]  }
 0x52a   :  { %4202 = dma.done.wait [#allocation5], 16  }
 0x52b   :  { %4203 = vsyncadd [#allocation5], 4294967280 }
 0x52c   :  { %3143 = vsyncpa [#allocation4], 1 }
 0x52d   :  { %3144 = vsyncpa [#allocation7], 1 }
 0x52e   :  { %3145 = vsyncpa [#allocation10], 1 }
 0x52f   :  { %3146 = vsyncpa [#allocation13], 1 }
 0x530   :  { %3147 = vsyncpa [#allocation5], 1 }

</bundles_post_ra>
